<compile_context>
chip_gen: v6e
topology: v6e:2x2x1
jax: 0.10.0
libtpu: 0.0.40
codegen_flags: <defaults>
</compile_context>

<pallas_src>
import functools

import jax
import jax.numpy as jnp
import numpy as np
from jax import lax
from jax.experimental import pallas as pl
from jax.experimental.pallas import tpu as pltpu

EXPANSION = 4
BN_EPS = 1e-5
_VMEM_LIMIT = 48 * 1024 * 1024  # safe on v5e/v6e (128 MiB) and v7x (64 MiB)


def _round_up(x, m):
    return ((x + m - 1) // m) * m


# ----------------------------------------------------------------------------
# Pallas kernels:  relu?( X @ W + bias [+ residual | + Xr @ Wr] )
# (weights already carry the folded BN scale; bias carries the folded shift)
# ----------------------------------------------------------------------------
def _mm_kernel(apply_relu):
    def kernel(x_ref, w_ref, b_ref, o_ref):
        acc = jnp.dot(x_ref[...], w_ref[...], preferred_element_type=jnp.float32)
        y = acc + b_ref[...]
        if apply_relu:
            y = jnp.maximum(y, 0.0)
        o_ref[...] = y.astype(o_ref.dtype)
    return kernel


def _mm_add_kernel(apply_relu):
    # identity-shortcut residual added in the f32 epilogue
    def kernel(x_ref, w_ref, b_ref, r_ref, o_ref):
        acc = jnp.dot(x_ref[...], w_ref[...], preferred_element_type=jnp.float32)
        y = acc + b_ref[...] + r_ref[...].astype(jnp.float32)
        if apply_relu:
            y = jnp.maximum(y, 0.0)
        o_ref[...] = y.astype(o_ref.dtype)
    return kernel


def _mm_mm_kernel(apply_relu):
    # conv3 matmul + fused shortcut 1x1-conv matmul (single combined bias)
    def kernel(x_ref, w_ref, b_ref, rx_ref, rw_ref, o_ref):
        acc = jnp.dot(x_ref[...], w_ref[...], preferred_element_type=jnp.float32)
        acc = acc + jnp.dot(rx_ref[...], rw_ref[...],
                            preferred_element_type=jnp.float32)
        y = acc + b_ref[...]
        if apply_relu:
            y = jnp.maximum(y, 0.0)
        o_ref[...] = y.astype(o_ref.dtype)
    return kernel


def fused_matmul(x2d, w2d, bias, *, residual=None, res_x=None, res_w=None,
                 apply_relu=True, out_dtype=jnp.bfloat16,
                 tm_max=512, tn_max=512):
    """relu?( x2d @ w2d + bias [+ residual | + res_x @ res_w] ), row/col tiled."""
    M, K = x2d.shape
    K2, N = w2d.shape
    assert K == K2, (K, K2)

    # Row tile: 512 (good pipeline efficiency) with a zero-padded tail.
    tm = _round_up(M, 8) if M <= tm_max else tm_max
    Mp = _round_up(M, tm)

    # Column tile: keep weight blocks small for wide layers, stay lane-dense.
    if N % 128 == 0 and N > tn_max:
        tn = tn_max
        while N % tn:
            tn -= 128
    else:
        tn = N

    def pad_rows(a):
        if a.shape[0] == Mp:
            return a
        return jnp.pad(a, ((0, Mp - a.shape[0]), (0, 0)))

    xp = pad_rows(x2d)
    bias2 = bias.reshape(1, N).astype(jnp.float32)

    x_spec = pl.BlockSpec((tm, K), lambda i, j: (i, 0))
    w_spec = pl.BlockSpec((K, tn), lambda i, j: (0, j))
    b_spec = pl.BlockSpec((1, tn), lambda i, j: (0, j))
    o_spec = pl.BlockSpec((tm, tn), lambda i, j: (i, j))

    if res_x is not None:
        Kr = res_x.shape[1]
        kernel = _mm_mm_kernel(apply_relu)
        args = (xp, w2d, bias2, pad_rows(res_x), res_w)
        in_specs = [x_spec, w_spec, b_spec,
                    pl.BlockSpec((tm, Kr), lambda i, j: (i, 0)),
                    pl.BlockSpec((Kr, tn), lambda i, j: (0, j))]
    elif residual is not None:
        kernel = _mm_add_kernel(apply_relu)
        args = (xp, w2d, bias2, pad_rows(residual))
        in_specs = [x_spec, w_spec, b_spec,
                    pl.BlockSpec((tm, tn), lambda i, j: (i, j))]
    else:
        kernel = _mm_kernel(apply_relu)
        args = (xp, w2d, bias2)
        in_specs = [x_spec, w_spec, b_spec]

    out = pl.pallas_call(
        kernel,
        out_shape=jax.ShapeDtypeStruct((Mp, N), out_dtype),
        grid_spec=pltpu.PrefetchScalarGridSpec(
            num_scalar_prefetch=0,
            grid=(Mp // tm, N // tn),
            in_specs=in_specs,
            out_specs=o_spec),
        compiler_params=pltpu.CompilerParams(
            dimension_semantics=("parallel", "parallel"),
            vmem_limit_bytes=_VMEM_LIMIT),
    )(*args)
    if Mp != M:
        out = out[:M]
    return out


# ----------------------------------------------------------------------------
# conv2: 3x3, pad=1, stride s — 9 tap matmuls accumulated inside the kernel
# (the padded image tile lives in VMEM; no im2col tensor hits HBM)
# ----------------------------------------------------------------------------
def conv3x3_bn_relu(x, w9, bias, stride):
    """x: (N,H,W,C) bf16; w9: (9,C,Cout) bf16 (BN-scale folded); bias: (Cout,) f32."""
    n, h, w, c = x.shape
    ho = (h + 2 - 3) // stride + 1
    wo = (w + 2 - 3) // stride + 1
    cout = w9.shape[-1]
    xp = jnp.pad(x, ((0, 0), (1, 1), (1, 1), (0, 0)))
    hp, wp = h + 2, w + 2
    bias2 = bias.reshape(1, cout).astype(jnp.float32)

    def kernel(x_ref, w_ref, b_ref, o_ref):
        xv = x_ref[0]                                   # (hp, wp, c) bf16
        acc = jnp.zeros((ho * wo, cout), jnp.float32)
        for ky in range(3):
            for kx in range(3):
                tap = xv[ky:ky + (ho - 1) * stride + 1:stride,
                         kx:kx + (wo - 1) * stride + 1:stride, :]
                tap = tap.reshape(ho * wo, c)
                acc = acc + jnp.dot(tap, w_ref[ky * 3 + kx],
                                    preferred_element_type=jnp.float32)
        y = jnp.maximum(acc + b_ref[...], 0.0)
        o_ref[...] = y.reshape(1, ho, wo, cout).astype(o_ref.dtype)

    return pl.pallas_call(
        kernel,
        out_shape=jax.ShapeDtypeStruct((n, ho, wo, cout), jnp.bfloat16),
        grid_spec=pltpu.PrefetchScalarGridSpec(
            num_scalar_prefetch=0,
            grid=(n,),
            in_specs=[pl.BlockSpec((1, hp, wp, c), lambda b: (b, 0, 0, 0)),
                      pl.BlockSpec((9, c, cout), lambda b: (0, 0, 0)),
                      pl.BlockSpec((1, cout), lambda b: (0, 0))],
            out_specs=pl.BlockSpec((1, ho, wo, cout), lambda b: (b, 0, 0, 0))),
        compiler_params=pltpu.CompilerParams(
            dimension_semantics=("parallel",),
            vmem_limit_bytes=_VMEM_LIMIT),
    )(xp, w9, bias2)


# ----------------------------------------------------------------------------
# Parameter construction (mirrors the PyTorch shapes; BN folded into weights)
# ----------------------------------------------------------------------------
def init_bottleneck_params(key, in_planes, planes, stride, random_bn=False):
    out_planes = EXPANSION * planes
    keys = jax.random.split(key, 8)

    def he(k, shape, fan_in):
        return jax.random.normal(k, shape, jnp.float32) * np.sqrt(2.0 / fan_in)

    w1 = he(keys[0], (in_planes, planes), in_planes)          # 1x1
    w2 = he(keys[1], (3, 3, planes, planes), 9 * planes)      # 3x3 (HWIO)
    w3 = he(keys[2], (planes, out_planes), planes)            # 1x1

    def bn_params(k, c):
        if random_bn:
            k1, k2, k3, k4 = jax.random.split(k, 4)
            gamma = jax.random.uniform(k1, (c,), jnp.float32, 0.8, 1.2)
            beta = 0.3 * jax.random.normal(k2, (c,), jnp.float32)
            mean = 0.3 * jax.random.normal(k3, (c,), jnp.float32)
            var = jax.random.uniform(k4, (c,), jnp.float32, 0.8, 1.25)
        else:
            # Deterministic nn.BatchNorm2d __init__ state.
            gamma = jnp.ones((c,), jnp.float32)
            beta = jnp.zeros((c,), jnp.float32)
            mean = jnp.zeros((c,), jnp.float32)
            var = jnp.ones((c,), jnp.float32)
        scale = gamma / jnp.sqrt(var + BN_EPS)
        shift = beta - mean * scale
        return scale, shift

    s1, sh1 = bn_params(keys[3], planes)
    s2, sh2 = bn_params(keys[4], planes)
    s3, sh3 = bn_params(keys[5], out_planes)

    params = {
        # BN scale folded into the weight columns; weights stored bf16.
        "w1": (w1 * s1[None, :]).astype(jnp.bfloat16),
        "b1": sh1,
        "w2": (w2 * s2[None, None, None, :]).reshape(9, planes, planes)
              .astype(jnp.bfloat16),
        "b2": sh2,
        "w3": (w3 * s3[None, :]).astype(jnp.bfloat16),
        "b3": sh3,
    }
    ref = {"w1": w1, "w2": w2, "w3": w3,
           "s1": s1, "sh1": sh1, "s2": s2, "sh2": sh2, "s3": s3, "sh3": sh3}

    if stride != 1 or in_planes != out_planes:
        ws = he(keys[6], (in_planes, out_planes), in_planes)
        ss, shs = bn_params(keys[7], out_planes)
        params["ws"] = (ws * ss[None, :]).astype(jnp.bfloat16)
        params["bs"] = shs
        ref["ws"], ref["ss"], ref["shs"] = ws, ss, shs
    return params, ref


# ----------------------------------------------------------------------------
# Bottleneck forward (NHWC)
# ----------------------------------------------------------------------------
@functools.partial(jax.jit, static_argnames=("stride",))
def bottleneck_forward(x, params, stride=1):
    n, h, w, cin = x.shape
    planes = params["w1"].shape[1]
    out_planes = EXPANSION * planes
    xb = x.astype(jnp.bfloat16)

    # conv1 (1x1) + folded-BN bias + ReLU
    out1 = fused_matmul(xb.reshape(n * h * w, cin), params["w1"], params["b1"],
                        apply_relu=True, out_dtype=jnp.bfloat16)
    out1 = out1.reshape(n, h, w, planes)

    # conv2 (3x3, stride, pad=1) + folded-BN bias + ReLU (no im2col in HBM)
    out2 = conv3x3_bn_relu(out1, params["w2"], params["b2"], stride)
    _, ho, wo, _ = out2.shape
    out2r = out2.reshape(n * ho * wo, planes)

    # shortcut input rows (strided 1x1 subsample of x)
    xs = xb[:, ::stride, ::stride, :].reshape(n * ho * wo, cin)

    # conv3 (1x1) + bias + residual + ReLU — shortcut matmul fused in-kernel.
    # "ws" presence is pytree structure, hence static under jit.
    if "ws" in params:
        out3 = fused_matmul(out2r, params["w3"], params["b3"] + params["bs"],
                            res_x=xs, res_w=params["ws"],
                            apply_relu=True, out_dtype=jnp.float32)
    else:
        out3 = fused_matmul(out2r, params["w3"], params["b3"],
                            residual=xs, apply_relu=True,
                            out_dtype=jnp.float32)
    return out3.reshape(n, ho, wo, out_planes)


# ----------------------------------------------------------------------------
# Pure-JAX reference (independent conv path, f32, unfolded BN)
# ----------------------------------------------------------------------------
def reference_forward(x, ref, stride=1):
    dn = ("NHWC", "HWIO", "NHWC")

    def conv1x1(inp, w2d, s):
        w4 = w2d.reshape(1, 1, *w2d.shape)
        return lax.conv_general_dilated(inp, w4, (s, s), "VALID",
                                        dimension_numbers=dn)

    out = jax.nn.relu(conv1x1(x, ref["w1"], 1) * ref["s1"] + ref["sh1"])
    xp = jnp.pad(out, ((0, 0), (1, 1), (1, 1), (0, 0)))
    out = lax.conv_general_dilated(xp, ref["w2"], (stride, stride), "VALID",
                                   dimension_numbers=dn)
    out = jax.nn.relu(out * ref["s2"] + ref["sh2"])
    out = conv1x1(out, ref["w3"], 1) * ref["s3"] + ref["sh3"]
    if "ws" in ref:
        sc = conv1x1(x, ref["ws"], stride) * ref["ss"] + ref["shs"]
    else:
        sc = x[:, ::stride, ::stride, :]
    return jax.nn.relu(out + sc)


if __name__ == "__main__":
    key = jax.random.PRNGKey(0)

    def run_case(batch, in_planes, planes, hw, stride, random_bn, k):
        kx, kp = jax.random.split(k)
        # PyTorch input would be NCHW float64; we use NHWC (bf16 compute path).
        x = jax.random.normal(kx, (batch, hw, hw, in_planes), jnp.float32)
        x = x.astype(jnp.bfloat16).astype(jnp.float32)  # identical quantized input
        params, ref_params = init_bottleneck_params(kp, in_planes, planes,
                                                    stride, random_bn)
        out = jax.block_until_ready(bottleneck_forward(x, params, stride=stride))
        ref = reference_forward(x, ref_params, stride=stride)
        ho = (hw + 2 - 3) // stride + 1
        assert out.shape == (batch, ho, ho, EXPANSION * planes), out.shape
        np.testing.assert_allclose(np.asarray(out, np.float32), np.asarray(ref),
                                   rtol=5e-2, atol=1e-1)

    k1, k2 = jax.random.split(key)
    # Case A: conv-shortcut path (in_planes != 4*planes), BN at __init__ state.
    run_case(batch=2, in_planes=4, planes=4, hw=16, stride=1,
             random_bn=False, k=k1)
    # Case B: identity-shortcut path with non-trivial BN stats (checks the
    # scale-into-weights fold, addressing the review's correctness concern).
    run_case(batch=2, in_planes=16, planes=4, hw=16, stride=1,
             random_bn=True, k=k2)

    print("KERNEL_OK")
</pallas_src>

<mosaic_0001>
module attributes {stable_mosaic.version = 11 : i64} {
  func.func @kernel(%arg0: i32, %arg1: i32, %arg2: memref<512x4xbf16, #tpu.memory_space<vmem>>, %arg3: memref<4x4xbf16, #tpu.memory_space<vmem>>, %arg4: memref<1x4xf32, #tpu.memory_space<vmem>>, %arg5: memref<512x4xbf16, #tpu.memory_space<vmem>>) attributes {dimension_semantics = [#tpu.dimension_semantics<parallel>, #tpu.dimension_semantics<parallel>], iteration_bounds = array<i64: 1, 1>, scalar_prefetch = 0 : i64, scratch_operands = 0 : i64, tpu.core_type = #tpu.core_type<tc>, window_params = [{transform_indices = @transform_0, window_bounds = array<i64: 512, 4>}, {transform_indices = @transform_1, window_bounds = array<i64: 4, 4>}, {transform_indices = @transform_2, window_bounds = array<i64: 1, 4>}, {transform_indices = @transform_3, window_bounds = array<i64: 512, 4>}]} {
    %c0 = arith.constant 0 : index
    %c0_0 = arith.constant 0 : index
    %0 = vector.load %arg2[%c0, %c0_0] : memref<512x4xbf16, #tpu.memory_space<vmem>>, vector<512x4xbf16>
    %c0_1 = arith.constant 0 : index
    %c0_2 = arith.constant 0 : index
    %1 = vector.load %arg3[%c0_1, %c0_2] : memref<4x4xbf16, #tpu.memory_space<vmem>>, vector<4x4xbf16>
    %cst = arith.constant dense<0.000000e+00> : vector<512x4xf32>
    %2 = tpu.matmul %0, %1, %cst {dimension_numbers = #tpu.dot_dimension_numbers<[1], [0], [0], [1], [0, 0, 1, 1], [], []>} : vector<512x4xbf16>, vector<4x4xbf16>, vector<512x4xf32> -> vector<512x4xf32>
    %c0_3 = arith.constant 0 : index
    %c0_4 = arith.constant 0 : index
    %3 = vector.load %arg4[%c0_3, %c0_4] : memref<1x4xf32, #tpu.memory_space<vmem>>, vector<1x4xf32>
    %4 = vector.broadcast %3 : vector<1x4xf32> to vector<512x4xf32>
    %5 = arith.addf %2, %4 : vector<512x4xf32>
    %cst_5 = arith.constant 0.000000e+00 : f32
    %6 = vector.broadcast %cst_5 : f32 to vector<512x4xf32>
    %7 = arith.maximumf %5, %6 : vector<512x4xf32>
    %8 = arith.truncf %7 : vector<512x4xf32> to vector<512x4xbf16>
    %c0_6 = arith.constant 0 : index
    %c0_7 = arith.constant 0 : index
    %9 = vector.load %arg5[%c0_6, %c0_7] : memref<512x4xbf16, #tpu.memory_space<vmem>>, vector<512x4xbf16>
    tpu.vector_store %arg5[%c0_6, %c0_7], %8 {strides = array<i32>} : memref<512x4xbf16, #tpu.memory_space<vmem>>, vector<512x4xbf16>,
    return
  }
  func.func @transform_0(%arg0: i32, %arg1: i32) -> (i32, i32) {
    %c0_i32 = arith.constant 0 : i32
    %c0_i32_0 = arith.constant 0 : i32
    return %arg0, %c0_i32 : i32, i32
  }
  func.func @transform_1(%arg0: i32, %arg1: i32) -> (i32, i32) {
    %c0_i32 = arith.constant 0 : i32
    %c0_i32_0 = arith.constant 0 : i32
    return %c0_i32, %arg1 : i32, i32
  }
  func.func @transform_2(%arg0: i32, %arg1: i32) -> (i32, i32) {
    %c0_i32 = arith.constant 0 : i32
    %c0_i32_0 = arith.constant 0 : i32
    return %c0_i32, %arg1 : i32, i32
  }
  func.func @transform_3(%arg0: i32, %arg1: i32) -> (i32, i32) {
    %c0_i32 = arith.constant 0 : i32
    return %arg0, %arg1 : i32, i32
  }
}

module attributes {stable_mosaic.version = 11 : i64} {
  func.func @kernel(%arg0: i32, %arg1: i32, %arg2: memref<512x4xbf16, #tpu.memory_space<vmem>>, %arg3: memref<4x16xbf16, #tpu.memory_space<vmem>>, %arg4: memref<1x16xf32, #tpu.memory_space<vmem>>, %arg5: memref<512x4xbf16, #tpu.memory_space<vmem>>, %arg6: memref<4x16xbf16, #tpu.memory_space<vmem>>, %arg7: memref<512x16xf32, #tpu.memory_space<vmem>>) attributes {dimension_semantics = [#tpu.dimension_semantics<parallel>, #tpu.dimension_semantics<parallel>], iteration_bounds = array<i64: 1, 1>, scalar_prefetch = 0 : i64, scratch_operands = 0 : i64, tpu.core_type = #tpu.core_type<tc>, window_params = [{transform_indices = @transform_0, window_bounds = array<i64: 512, 4>}, {transform_indices = @transform_1, window_bounds = array<i64: 4, 16>}, {transform_indices = @transform_2, window_bounds = array<i64: 1, 16>}, {transform_indices = @transform_3, window_bounds = array<i64: 512, 4>}, {transform_indices = @transform_4, window_bounds = array<i64: 4, 16>}, {transform_indices = @transform_5, window_bounds = array<i64: 512, 16>}]} {
    %c0 = arith.constant 0 : index
    %c0_0 = arith.constant 0 : index
    %0 = vector.load %arg2[%c0, %c0_0] : memref<512x4xbf16, #tpu.memory_space<vmem>>, vector<512x4xbf16>
    %c0_1 = arith.constant 0 : index
    %c0_2 = arith.constant 0 : index
    %1 = vector.load %arg3[%c0_1, %c0_2] : memref<4x16xbf16, #tpu.memory_space<vmem>>, vector<4x16xbf16>
    %cst = arith.constant dense<0.000000e+00> : vector<512x16xf32>
    %2 = tpu.matmul %0, %1, %cst {dimension_numbers = #tpu.dot_dimension_numbers<[1], [0], [0], [1], [0, 0, 1, 1], [], []>} : vector<512x4xbf16>, vector<4x16xbf16>, vector<512x16xf32> -> vector<512x16xf32>
    %c0_3 = arith.constant 0 : index
    %c0_4 = arith.constant 0 : index
    %3 = vector.load %arg5[%c0_3, %c0_4] : memref<512x4xbf16, #tpu.memory_space<vmem>>, vector<512x4xbf16>
    %c0_5 = arith.constant 0 : index
    %c0_6 = arith.constant 0 : index
    %4 = vector.load %arg6[%c0_5, %c0_6] : memref<4x16xbf16, #tpu.memory_space<vmem>>, vector<4x16xbf16>
    %cst_7 = arith.constant dense<0.000000e+00> : vector<512x16xf32>
    %5 = tpu.matmul %3, %4, %cst_7 {dimension_numbers = #tpu.dot_dimension_numbers<[1], [0], [0], [1], [0, 0, 1, 1], [], []>} : vector<512x4xbf16>, vector<4x16xbf16>, vector<512x16xf32> -> vector<512x16xf32>
    %6 = arith.addf %2, %5 : vector<512x16xf32>
    %c0_8 = arith.constant 0 : index
    %c0_9 = arith.constant 0 : index
    %7 = vector.load %arg4[%c0_8, %c0_9] : memref<1x16xf32, #tpu.memory_space<vmem>>, vector<1x16xf32>
    %8 = vector.broadcast %7 : vector<1x16xf32> to vector<512x16xf32>
    %9 = arith.addf %6, %8 : vector<512x16xf32>
    %cst_10 = arith.constant 0.000000e+00 : f32
    %10 = vector.broadcast %cst_10 : f32 to vector<512x16xf32>
    %11 = arith.maximumf %9, %10 : vector<512x16xf32>
    %c0_11 = arith.constant 0 : index
    %c0_12 = arith.constant 0 : index
    %12 = vector.load %arg7[%c0_11, %c0_12] : memref<512x16xf32, #tpu.memory_space<vmem>>, vector<512x16xf32>
    tpu.vector_store %arg7[%c0_11, %c0_12], %11 {strides = array<i32>} : memref<512x16xf32, #tpu.memory_space<vmem>>, vector<512x16xf32>,
    return
  }
  func.func @transform_0(%arg0: i32, %arg1: i32) -> (i32, i32) {
    %c0_i32 = arith.constant 0 : i32
    %c0_i32_0 = arith.constant 0 : i32
    return %arg0, %c0_i32 : i32, i32
  }
  func.func @transform_1(%arg0: i32, %arg1: i32) -> (i32, i32) {
    %c0_i32 = arith.constant 0 : i32
    %c0_i32_0 = arith.constant 0 : i32
    return %c0_i32, %arg1 : i32, i32
  }
  func.func @transform_2(%arg0: i32, %arg1: i32) -> (i32, i32) {
    %c0_i32 = arith.constant 0 : i32
    %c0_i32_0 = arith.constant 0 : i32
    return %c0_i32, %arg1 : i32, i32
  }
  func.func @transform_3(%arg0: i32, %arg1: i32) -> (i32, i32) {
    %c0_i32 = arith.constant 0 : i32
    %c0_i32_0 = arith.constant 0 : i32
    return %arg0, %c0_i32 : i32, i32
  }
  func.func @transform_4(%arg0: i32, %arg1: i32) -> (i32, i32) {
    %c0_i32 = arith.constant 0 : i32
    %c0_i32_0 = arith.constant 0 : i32
    return %c0_i32, %arg1 : i32, i32
  }
  func.func @transform_5(%arg0: i32, %arg1: i32) -> (i32, i32) {
    %c0_i32 = arith.constant 0 : i32
    return %arg0, %arg1 : i32, i32
  }
}

module attributes {stable_mosaic.version = 11 : i64} {
  func.func @kernel(%arg0: i32, %arg1: memref<1x18x18x4xbf16, #tpu.memory_space<vmem>>, %arg2: memref<9x4x4xbf16, #tpu.memory_space<vmem>>, %arg3: memref<1x4xf32, #tpu.memory_space<vmem>>, %arg4: memref<1x16x16x4xbf16, #tpu.memory_space<vmem>>) attributes {dimension_semantics = [#tpu.dimension_semantics<parallel>], iteration_bounds = array<i64: 2>, scalar_prefetch = 0 : i64, scratch_operands = 0 : i64, tpu.core_type = #tpu.core_type<tc>, window_params = [{transform_indices = @transform_0, window_bounds = array<i64: 1, 18, 18, 4>}, {pipeline_mode = #tpu.pipeline_mode<synchronous>, transform_indices = @transform_1, window_bounds = array<i64: 9, 4, 4>}, {pipeline_mode = #tpu.pipeline_mode<synchronous>, transform_indices = @transform_2, window_bounds = array<i64: 1, 4>}, {transform_indices = @transform_3, window_bounds = array<i64: 1, 16, 16, 4>}]} {
    %c0 = arith.constant 0 : index
    %c0_0 = arith.constant 0 : index
    %c0_1 = arith.constant 0 : index
    %c0_2 = arith.constant 0 : index
    %0 = vector.load %arg1[%c0, %c0_0, %c0_1, %c0_2] : memref<1x18x18x4xbf16, #tpu.memory_space<vmem>>, vector<1x18x18x4xbf16>
    %1 = vector.shape_cast %0 : vector<1x18x18x4xbf16> to vector<18x18x4xbf16>
    %cst = arith.constant 0.000000e+00 : f32
    %2 = vector.broadcast %cst : f32 to vector<256x4xf32>
    %3 = vector.extract_strided_slice %1 {offsets = [0, 0, 0], sizes = [16, 16, 4], strides = [1, 1, 1]} : vector<18x18x4xbf16> to vector<16x16x4xbf16>
    %4 = vector.shape_cast %3 : vector<16x16x4xbf16> to vector<256x4xbf16>
    %c0_3 = arith.constant 0 : index
    %c0_4 = arith.constant 0 : index
    %c0_5 = arith.constant 0 : index
    %5 = vector.load %arg2[%c0_3, %c0_4, %c0_5] : memref<9x4x4xbf16, #tpu.memory_space<vmem>>, vector<1x4x4xbf16>
    %6 = vector.shape_cast %5 : vector<1x4x4xbf16> to vector<4x4xbf16>
    %cst_6 = arith.constant dense<0.000000e+00> : vector<256x4xf32>
    %7 = tpu.matmul %4, %6, %cst_6 {dimension_numbers = #tpu.dot_dimension_numbers<[1], [0], [0], [1], [0, 0, 1, 1], [], []>} : vector<256x4xbf16>, vector<4x4xbf16>, vector<256x4xf32> -> vector<256x4xf32>
    %8 = arith.addf %2, %7 : vector<256x4xf32>
    %9 = vector.extract_strided_slice %1 {offsets = [0, 1, 0], sizes = [16, 16, 4], strides = [1, 1, 1]} : vector<18x18x4xbf16> to vector<16x16x4xbf16>
    %10 = vector.shape_cast %9 : vector<16x16x4xbf16> to vector<256x4xbf16>
    %c1 = arith.constant 1 : index
    %c0_7 = arith.constant 0 : index
    %c0_8 = arith.constant 0 : index
    %11 = vector.load %arg2[%c1, %c0_7, %c0_8] : memref<9x4x4xbf16, #tpu.memory_space<vmem>>, vector<1x4x4xbf16>
    %12 = vector.shape_cast %11 : vector<1x4x4xbf16> to vector<4x4xbf16>
    %cst_9 = arith.constant dense<0.000000e+00> : vector<256x4xf32>
    %13 = tpu.matmul %10, %12, %cst_9 {dimension_numbers = #tpu.dot_dimension_numbers<[1], [0], [0], [1], [0, 0, 1, 1], [], []>} : vector<256x4xbf16>, vector<4x4xbf16>, vector<256x4xf32> -> vector<256x4xf32>
    %14 = arith.addf %8, %13 : vector<256x4xf32>
    %15 = vector.extract_strided_slice %1 {offsets = [0, 2, 0], sizes = [16, 16, 4], strides = [1, 1, 1]} : vector<18x18x4xbf16> to vector<16x16x4xbf16>
    %16 = vector.shape_cast %15 : vector<16x16x4xbf16> to vector<256x4xbf16>
    %c2 = arith.constant 2 : index
    %c0_10 = arith.constant 0 : index
    %c0_11 = arith.constant 0 : index
    %17 = vector.load %arg2[%c2, %c0_10, %c0_11] : memref<9x4x4xbf16, #tpu.memory_space<vmem>>, vector<1x4x4xbf16>
    %18 = vector.shape_cast %17 : vector<1x4x4xbf16> to vector<4x4xbf16>
    %cst_12 = arith.constant dense<0.000000e+00> : vector<256x4xf32>
    %19 = tpu.matmul %16, %18, %cst_12 {dimension_numbers = #tpu.dot_dimension_numbers<[1], [0], [0], [1], [0, 0, 1, 1], [], []>} : vector<256x4xbf16>, vector<4x4xbf16>, vector<256x4xf32> -> vector<256x4xf32>
    %20 = arith.addf %14, %19 : vector<256x4xf32>
    %21 = vector.extract_strided_slice %1 {offsets = [1, 0, 0], sizes = [16, 16, 4], strides = [1, 1, 1]} : vector<18x18x4xbf16> to vector<16x16x4xbf16>
    %22 = vector.shape_cast %21 : vector<16x16x4xbf16> to vector<256x4xbf16>
    %c3 = arith.constant 3 : index
    %c0_13 = arith.constant 0 : index
    %c0_14 = arith.constant 0 : index
    %23 = vector.load %arg2[%c3, %c0_13, %c0_14] : memref<9x4x4xbf16, #tpu.memory_space<vmem>>, vector<1x4x4xbf16>
    %24 = vector.shape_cast %23 : vector<1x4x4xbf16> to vector<4x4xbf16>
    %cst_15 = arith.constant dense<0.000000e+00> : vector<256x4xf32>
    %25 = tpu.matmul %22, %24, %cst_15 {dimension_numbers = #tpu.dot_dimension_numbers<[1], [0], [0], [1], [0, 0, 1, 1], [], []>} : vector<256x4xbf16>, vector<4x4xbf16>, vector<256x4xf32> -> vector<256x4xf32>
    %26 = arith.addf %20, %25 : vector<256x4xf32>
    %27 = vector.extract_strided_slice %1 {offsets = [1, 1, 0], sizes = [16, 16, 4], strides = [1, 1, 1]} : vector<18x18x4xbf16> to vector<16x16x4xbf16>
    %28 = vector.shape_cast %27 : vector<16x16x4xbf16> to vector<256x4xbf16>
    %c4 = arith.constant 4 : index
    %c0_16 = arith.constant 0 : index
    %c0_17 = arith.constant 0 : index
    %29 = vector.load %arg2[%c4, %c0_16, %c0_17] : memref<9x4x4xbf16, #tpu.memory_space<vmem>>, vector<1x4x4xbf16>
    %30 = vector.shape_cast %29 : vector<1x4x4xbf16> to vector<4x4xbf16>
    %cst_18 = arith.constant dense<0.000000e+00> : vector<256x4xf32>
    %31 = tpu.matmul %28, %30, %cst_18 {dimension_numbers = #tpu.dot_dimension_numbers<[1], [0], [0], [1], [0, 0, 1, 1], [], []>} : vector<256x4xbf16>, vector<4x4xbf16>, vector<256x4xf32> -> vector<256x4xf32>
    %32 = arith.addf %26, %31 : vector<256x4xf32>
    %33 = vector.extract_strided_slice %1 {offsets = [1, 2, 0], sizes = [16, 16, 4], strides = [1, 1, 1]} : vector<18x18x4xbf16> to vector<16x16x4xbf16>
    %34 = vector.shape_cast %33 : vector<16x16x4xbf16> to vector<256x4xbf16>
    %c5 = arith.constant 5 : index
    %c0_19 = arith.constant 0 : index
    %c0_20 = arith.constant 0 : index
    %35 = vector.load %arg2[%c5, %c0_19, %c0_20] : memref<9x4x4xbf16, #tpu.memory_space<vmem>>, vector<1x4x4xbf16>
    %36 = vector.shape_cast %35 : vector<1x4x4xbf16> to vector<4x4xbf16>
    %cst_21 = arith.constant dense<0.000000e+00> : vector<256x4xf32>
    %37 = tpu.matmul %34, %36, %cst_21 {dimension_numbers = #tpu.dot_dimension_numbers<[1], [0], [0], [1], [0, 0, 1, 1], [], []>} : vector<256x4xbf16>, vector<4x4xbf16>, vector<256x4xf32> -> vector<256x4xf32>
    %38 = arith.addf %32, %37 : vector<256x4xf32>
    %39 = vector.extract_strided_slice %1 {offsets = [2, 0, 0], sizes = [16, 16, 4], strides = [1, 1, 1]} : vector<18x18x4xbf16> to vector<16x16x4xbf16>
    %40 = vector.shape_cast %39 : vector<16x16x4xbf16> to vector<256x4xbf16>
    %c6 = arith.constant 6 : index
    %c0_22 = arith.constant 0 : index
    %c0_23 = arith.constant 0 : index
    %41 = vector.load %arg2[%c6, %c0_22, %c0_23] : memref<9x4x4xbf16, #tpu.memory_space<vmem>>, vector<1x4x4xbf16>
    %42 = vector.shape_cast %41 : vector<1x4x4xbf16> to vector<4x4xbf16>
    %cst_24 = arith.constant dense<0.000000e+00> : vector<256x4xf32>
    %43 = tpu.matmul %40, %42, %cst_24 {dimension_numbers = #tpu.dot_dimension_numbers<[1], [0], [0], [1], [0, 0, 1, 1], [], []>} : vector<256x4xbf16>, vector<4x4xbf16>, vector<256x4xf32> -> vector<256x4xf32>
    %44 = arith.addf %38, %43 : vector<256x4xf32>
    %45 = vector.extract_strided_slice %1 {offsets = [2, 1, 0], sizes = [16, 16, 4], strides = [1, 1, 1]} : vector<18x18x4xbf16> to vector<16x16x4xbf16>
    %46 = vector.shape_cast %45 : vector<16x16x4xbf16> to vector<256x4xbf16>
    %c7 = arith.constant 7 : index
    %c0_25 = arith.constant 0 : index
    %c0_26 = arith.constant 0 : index
    %47 = vector.load %arg2[%c7, %c0_25, %c0_26] : memref<9x4x4xbf16, #tpu.memory_space<vmem>>, vector<1x4x4xbf16>
    %48 = vector.shape_cast %47 : vector<1x4x4xbf16> to vector<4x4xbf16>
    %cst_27 = arith.constant dense<0.000000e+00> : vector<256x4xf32>
    %49 = tpu.matmul %46, %48, %cst_27 {dimension_numbers = #tpu.dot_dimension_numbers<[1], [0], [0], [1], [0, 0, 1, 1], [], []>} : vector<256x4xbf16>, vector<4x4xbf16>, vector<256x4xf32> -> vector<256x4xf32>
    %50 = arith.addf %44, %49 : vector<256x4xf32>
    %51 = vector.extract_strided_slice %1 {offsets = [2, 2, 0], sizes = [16, 16, 4], strides = [1, 1, 1]} : vector<18x18x4xbf16> to vector<16x16x4xbf16>
    %52 = vector.shape_cast %51 : vector<16x16x4xbf16> to vector<256x4xbf16>
    %c8 = arith.constant 8 : index
    %c0_28 = arith.constant 0 : index
    %c0_29 = arith.constant 0 : index
    %53 = vector.load %arg2[%c8, %c0_28, %c0_29] : memref<9x4x4xbf16, #tpu.memory_space<vmem>>, vector<1x4x4xbf16>
    %54 = vector.shape_cast %53 : vector<1x4x4xbf16> to vector<4x4xbf16>
    %cst_30 = arith.constant dense<0.000000e+00> : vector<256x4xf32>
    %55 = tpu.matmul %52, %54, %cst_30 {dimension_numbers = #tpu.dot_dimension_numbers<[1], [0], [0], [1], [0, 0, 1, 1], [], []>} : vector<256x4xbf16>, vector<4x4xbf16>, vector<256x4xf32> -> vector<256x4xf32>
    %56 = arith.addf %50, %55 : vector<256x4xf32>
    %c0_31 = arith.constant 0 : index
    %c0_32 = arith.constant 0 : index
    %57 = vector.load %arg3[%c0_31, %c0_32] : memref<1x4xf32, #tpu.memory_space<vmem>>, vector<1x4xf32>
    %58 = vector.broadcast %57 : vector<1x4xf32> to vector<256x4xf32>
    %59 = arith.addf %56, %58 : vector<256x4xf32>
    %cst_33 = arith.constant 0.000000e+00 : f32
    %60 = vector.broadcast %cst_33 : f32 to vector<256x4xf32>
    %61 = arith.maximumf %59, %60 : vector<256x4xf32>
    %62 = vector.shape_cast %61 : vector<256x4xf32> to vector<1x16x16x4xf32>
    %63 = arith.truncf %62 : vector<1x16x16x4xf32> to vector<1x16x16x4xbf16>
    %c0_34 = arith.constant 0 : index
    %c0_35 = arith.constant 0 : index
    %c0_36 = arith.constant 0 : index
    %c0_37 = arith.constant 0 : index
    %64 = vector.load %arg4[%c0_34, %c0_35, %c0_36, %c0_37] : memref<1x16x16x4xbf16, #tpu.memory_space<vmem>>, vector<1x16x16x4xbf16>
    tpu.vector_store %arg4[%c0_34, %c0_35, %c0_36, %c0_37], %63 {strides = array<i32>} : memref<1x16x16x4xbf16, #tpu.memory_space<vmem>>, vector<1x16x16x4xbf16>,
    return
  }
  func.func @transform_0(%arg0: i32) -> (i32, i32, i32, i32) {
    %c0_i32 = arith.constant 0 : i32
    %c0_i32_0 = arith.constant 0 : i32
    %c0_i32_1 = arith.constant 0 : i32
    %c0_i32_2 = arith.constant 0 : i32
    return %arg0, %c0_i32, %c0_i32_0, %c0_i32_1 : i32, i32, i32, i32
  }
  func.func @transform_1(%arg0: i32) -> (i32, i32, i32) {
    %c0_i32 = arith.constant 0 : i32
    %c0_i32_0 = arith.constant 0 : i32
    %c0_i32_1 = arith.constant 0 : i32
    %c0_i32_2 = arith.constant 0 : i32
    return %c0_i32, %c0_i32_0, %c0_i32_1 : i32, i32, i32
  }
  func.func @transform_2(%arg0: i32) -> (i32, i32) {
    %c0_i32 = arith.constant 0 : i32
    %c0_i32_0 = arith.constant 0 : i32
    %c0_i32_1 = arith.constant 0 : i32
    return %c0_i32, %c0_i32_0 : i32, i32
  }
  func.func @transform_3(%arg0: i32) -> (i32, i32, i32, i32) {
    %c0_i32 = arith.constant 0 : i32
    %c0_i32_0 = arith.constant 0 : i32
    %c0_i32_1 = arith.constant 0 : i32
    %c0_i32_2 = arith.constant 0 : i32
    return %arg0, %c0_i32, %c0_i32_0, %c0_i32_1 : i32, i32, i32, i32
  }
}

</mosaic_0001>

<bundles_post_ra>
// kernel: bottleneck_forward.3
= control target key start
LH: loop header
LB: loop body
LE: loop exit
PB: predicated region body
PF: predicated region fallthrough
CT: control target
= control target key end

     0   :  { %vm344_vm0 = vcmask 1041408   ;;  %vm247_vm1 = vcmask 31744   ;;  %vm957_vm2 = vcmask 27648   ;;  %s1830_s1 = inlined_call_operand.vmem [shape: bf16[4,4], index: 1, kind: input, shape index: {}]   ;;  %s1831_s0 = inlined_call_operand.vmem [shape: bf16[512,4], index: 0, kind: input, shape index: {}]   ;;  %s1832_s2 = inlined_call_operand.vmem [shape: f32[1,4], index: 2, kind: input, shape index: {}]   ;;  %s1833_s3 = inlined_call_operand.vmem [shape: bf16[512,4], index: 3, kind: output, shape index: {}]  }
   0x1   :  { %v79_v0 = vld [vmem:[%s1830_s1] sm:$0x3]  ;;  %v1324_v4 = vld [vmem:[%s1831_s0 + $0x8] sm:$0xff]   ;;  %v1326_v6 = vld [vmem:[%s1831_s0 + $0x10] sm:$0xff]  }
   0x2   :  { %1320 = vmatprep.subr.msk.bf16.mxu0 %vm344_vm0, %v79_v0  ;;  %1321 = vmatprep.subr.msk.bf16.mxu1 %vm344_vm0, %v79_v0  ;;  %v346_v1 = vsel %vm344_vm0, %v79_v0, 0  ;;  %v1322_v2 = vld [vmem:[%s1831_s0] sm:$0xff]   ;;  %v1325_v5 = vld [vmem:[%s1831_s0 + $0x88] sm:$0xff]   ;;  %v1327_v7 = vld [vmem:[%s1831_s0 + $0x90] sm:$0xff]  }
   0x3   :  { %1253 = vmatpush3.bf16.msra.mxu0 %v346_v1  ;;  %1319 = vmatpush3.bf16.msra.mxu1 %v346_v1  ;;  %v1323_v3 = vld [vmem:[%s1831_s0 + $0x80] sm:$0xff]   ;;  %v1328_v8 = vld [vmem:[%s1831_s0 + $0x18] sm:$0xff]   ;;  %v1332_v12 = vld [vmem:[%s1831_s0 + $0x28] sm:$0xff]  }
   0x4   :  { %1254 = vmatprep.mubr.msk.bf16.mxu0 %vm247_vm1, %v1322_v2  ;;  %1286 = vmatprep.mubr.msk.bf16.mxu1 %vm247_vm1, %v1323_v3  ;;  %v1329_v9 = vld [vmem:[%s1831_s0 + $0x98] sm:$0xff]   ;;  %v1330_v10 = vld [vmem:[%s1831_s0 + $0x20] sm:$0xff]   ;;  %v1333_v13 = vld [vmem:[%s1831_s0 + $0xa8] sm:$0xff]  }
   0x5   :  { %v1331_v11 = vld [vmem:[%s1831_s0 + $0xa0] sm:$0xff]   ;;  %v1334_v14 = vld [vmem:[%s1831_s0 + $0x30] sm:$0xff]   ;;  %v1336_v16 = vld [vmem:[%s1831_s0 + $0x38] sm:$0xff]  }
   0x6   :  { %1255 = vmatmul.mubr.msk.bf16.vlgmr.msra.gmra.mxu0 %vm247_vm1, %v1324_v4  ;;  %1287 = vmatmul.mubr.msk.bf16.vlgmr.msra.gmra.mxu1 %vm247_vm1, %v1325_v5  ;;  %v1335_v15 = vld [vmem:[%s1831_s0 + $0xb0] sm:$0xff]   ;;  %v1337_v17 = vld [vmem:[%s1831_s0 + $0xb8] sm:$0xff]   ;;  %v1338_v18 = vld [vmem:[%s1831_s0 + $0x40] sm:$0xff]  }
   0x7   :  { %1258 = vmatprep.mubr.msk.bf16.mxu0 %vm247_vm1, %v1326_v6  ;;  %1290 = vmatprep.mubr.msk.bf16.mxu1 %vm247_vm1, %v1327_v7  ;;  %v1339_v19 = vld [vmem:[%s1831_s0 + $0xc0] sm:$0xff]   ;;  %v1340_v20 = vld [vmem:[%s1831_s0 + $0x48] sm:$0xff]   ;;  %v1342_v22 = vld [vmem:[%s1831_s0 + $0x50] sm:$0xff]  }
   0x8   :  { %v1341_v21 = vld [vmem:[%s1831_s0 + $0xc8] sm:$0xff]   ;;  %v1343_v23 = vld [vmem:[%s1831_s0 + $0xd0] sm:$0xff]   ;;  %v1344_v24 = vld [vmem:[%s1831_s0 + $0x58] sm:$0xff]  }
   0x9   :  { %v1345_v25 = vld [vmem:[%s1831_s0 + $0xd8] sm:$0xff]   ;;  %v1346_v26 = vld [vmem:[%s1831_s0 + $0x60] sm:$0xff]   ;;  %v1348_v28 = vld [vmem:[%s1831_s0 + $0x68] sm:$0xff]  }
   0xa   :  { %v1347_v27 = vld [vmem:[%s1831_s0 + $0xe0] sm:$0xff]   ;;  %v1349_v29 = vld [vmem:[%s1831_s0 + $0xe8] sm:$0xff]   ;;  %v1350_v30 = vld [vmem:[%s1831_s0 + $0x70] sm:$0xff]  }
   0xb   :  { %v1351_v31 = vld [vmem:[%s1831_s0 + $0xf0] sm:$0xff]   ;;  %v1352_v32 = vld [vmem:[%s1831_s0 + $0x78] sm:$0xff]   ;;  %v1508_v34 = vld [vmem:[%s1832_s2] ss:$0 sm:$0xff] }
   0xc   :  { %v1353_v33 = vld [vmem:[%s1831_s0 + $0xf8] sm:$0xff]  }
   0xe   :  { %1259 = vmatmul.mubr.msk.bf16.gmra.mxu0 %vm247_vm1, %v1328_v8  ;;  %1291 = vmatmul.mubr.msk.bf16.gmra.mxu1 %vm247_vm1, %v1329_v9 }
   0xf   :  { %1262 = vmatprep.mubr.msk.bf16.mxu0 %vm247_vm1, %v1330_v10  ;;  %1294 = vmatprep.mubr.msk.bf16.mxu1 %vm247_vm1, %v1331_v11 }
  0x16   :  { %1263 = vmatmul.mubr.msk.bf16.gmra.mxu0 %vm247_vm1, %v1332_v12  ;;  %1295 = vmatmul.mubr.msk.bf16.gmra.mxu1 %vm247_vm1, %v1333_v13 }
  0x17   :  { %1266 = vmatprep.mubr.msk.bf16.mxu0 %vm247_vm1, %v1334_v14  ;;  %1298 = vmatprep.mubr.msk.bf16.mxu1 %vm247_vm1, %v1335_v15 }
  0x1e   :  { %1267 = vmatmul.mubr.msk.bf16.gmra.mxu0 %vm247_vm1, %v1336_v16  ;;  %1299 = vmatmul.mubr.msk.bf16.gmra.mxu1 %vm247_vm1, %v1337_v17 }
  0x1f   :  { %1270 = vmatprep.mubr.msk.bf16.mxu0 %vm247_vm1, %v1338_v18  ;;  %1302 = vmatprep.mubr.msk.bf16.mxu1 %vm247_vm1, %v1339_v19 }
  0x26   :  { %1271 = vmatmul.mubr.msk.bf16.gmra.mxu0 %vm247_vm1, %v1340_v20  ;;  %1303 = vmatmul.mubr.msk.bf16.gmra.mxu1 %vm247_vm1, %v1341_v21 }
  0x27   :  { %1274 = vmatprep.mubr.msk.bf16.mxu0 %vm247_vm1, %v1342_v22  ;;  %1306 = vmatprep.mubr.msk.bf16.mxu1 %vm247_vm1, %v1343_v23 }
  0x2e   :  { %1275 = vmatmul.mubr.msk.bf16.gmra.mxu0 %vm247_vm1, %v1344_v24  ;;  %1307 = vmatmul.mubr.msk.bf16.gmra.mxu1 %vm247_vm1, %v1345_v25 }
  0x2f   :  { %1278 = vmatprep.mubr.msk.bf16.mxu0 %vm247_vm1, %v1346_v26  ;;  %1310 = vmatprep.mubr.msk.bf16.mxu1 %vm247_vm1, %v1347_v27 }
  0x36   :  { %1279 = vmatmul.mubr.msk.bf16.gmra.mxu0 %vm247_vm1, %v1348_v28  ;;  %1311 = vmatmul.mubr.msk.bf16.gmra.mxu1 %vm247_vm1, %v1349_v29 }
  0x37   :  { %1282 = vmatprep.mubr.msk.bf16.mxu0 %vm247_vm1, %v1350_v30  ;;  %1314 = vmatprep.mubr.msk.bf16.mxu1 %vm247_vm1, %v1351_v31 }
  0x3e   :  { %1283 = vmatmul.mubr.msk.bf16.gmra.mxu0 %vm247_vm1, %v1352_v32  ;;  %1315 = vmatmul.mubr.msk.bf16.gmra.mxu1 %vm247_vm1, %v1353_v33 }
  0xc6   :  { %v1256_v35 = vpop.f32.mrf.mxu0  ;;  %v1288_v37 = vpop.f32.mrf.mxu1 }
  0xc7   :  { %v391_v36 = vadd.f32 %v1256_v35, %v1508_v34  ;;  %v519_v38 = vadd.f32 %v1288_v37, %v1508_v34 }
  0xc8   :  { %v382_v39 = vpop.f32.mrf.mxu0  ;;  %v510_v42 = vpop.f32.mrf.mxu1 }
  0xc9   :  { %v639_v40 = vmax.f32 %v391_v36, 0.0  ;;  %v383_v41 = vadd.f32 %v1508_v34, %v382_v39  ;;  %v671_v43 = vmax.f32 %v519_v38, 0.0  ;;  %v511_v44 = vadd.f32 %v1508_v34, %v510_v42 }
  0xca   :  { %v1257_v45 = vpop.f32.mrf.mxu0  ;;  %v1289_v49 = vpop.f32.mrf.mxu1 }
  0xcb   :  { %v1157_v46 = vpack.c.bf16 %v639_v40, %v639_v40  ;;  %v637_v47 = vmax.f32 %v383_v41, 0.0  ;;  %v394_v48 = vadd.f32 %v1257_v45, %v1508_v34  ;;  %v1189_v50 = vpack.c.bf16 %v671_v43, %v671_v43 }
  0xcc   :  { %v669_v51 = vmax.f32 %v511_v44, 0.0  ;;  %v522_v52 = vadd.f32 %v1289_v49, %v1508_v34  ;;  %v385_v53 = vpop.f32.mrf.mxu0  ;;  %v513_v57 = vpop.f32.mrf.mxu1 }
  0xcd   :  { %960 = vst.msk [vmem:[%s1833_s3 + $0x8] sm:$0xf] %vm957_vm2, %v1157_v46  ;;  %v1155_v54 = vpack.c.bf16 %v637_v47, %v637_v47  ;;  %v640_v55 = vmax.f32 %v394_v48, 0.0  ;;  %v386_v56 = vadd.f32 %v1508_v34, %v385_v53  ;;  %992 = vst.msk [vmem:[%s1833_s3 + $0x88] sm:$0xf] %vm957_vm2, %v1189_v50  ;;  %v514_v60 = vadd.f32 %v1508_v34, %v513_v57 }
  0xce   :  { %v1187_v58 = vpack.c.bf16 %v669_v51, %v669_v51  ;;  %v672_v59 = vmax.f32 %v522_v52, 0.0  ;;  %v1260_v61 = vpop.f32.mrf.mxu0  ;;  %v1292_v1 = vpop.f32.mrf.mxu1 }
  0xcf   :  { %958 = vst.msk [vmem:[%s1833_s3] sm:$0xf] %vm957_vm2, %v1155_v54  ;;  %v1158_v62 = vpack.c.bf16 %v640_v55, %v640_v55  ;;  %v638_v63 = vmax.f32 %v386_v56, 0.0  ;;  %v407_v0 = vadd.f32 %v1260_v61, %v1508_v34  ;;  %v670_v3 = vmax.f32 %v514_v60, 0.0 }
  0xd0   :  { %990 = vst.msk [vmem:[%s1833_s3 + $0x80] sm:$0xf] %vm957_vm2, %v1187_v58  ;;  %v1190_v2 = vpack.c.bf16 %v672_v59, %v672_v59  ;;  %v535_v4 = vadd.f32 %v1292_v1, %v1508_v34  ;;  %v398_v5 = vpop.f32.mrf.mxu0  ;;  %v526_v9 = vpop.f32.mrf.mxu1 }
  0xd1   :  { %961 = vst.msk [vmem:[%s1833_s3 + $0xc] sm:$0xf] %vm957_vm2, %v1158_v62  ;;  %v1156_v6 = vpack.c.bf16 %v638_v63, %v638_v63  ;;  %v643_v7 = vmax.f32 %v407_v0, 0.0  ;;  %v399_v8 = vadd.f32 %v1508_v34, %v398_v5  ;;  %v1188_v10 = vpack.c.bf16 %v670_v3, %v670_v3 }
  0xd2   :  { %993 = vst.msk [vmem:[%s1833_s3 + $0x8c] sm:$0xf] %vm957_vm2, %v1190_v2  ;;  %v675_v11 = vmax.f32 %v535_v4, 0.0  ;;  %v527_v12 = vadd.f32 %v1508_v34, %v526_v9  ;;  %v1261_v13 = vpop.f32.mrf.mxu0  ;;  %v1293_v17 = vpop.f32.mrf.mxu1 }
  0xd3   :  { %959 = vst.msk [vmem:[%s1833_s3 + $0x4] sm:$0xf] %vm957_vm2, %v1156_v6  ;;  %v1161_v14 = vpack.c.bf16 %v643_v7, %v643_v7  ;;  %v641_v15 = vmax.f32 %v399_v8, 0.0  ;;  %v410_v16 = vadd.f32 %v1261_v13, %v1508_v34  ;;  %991 = vst.msk [vmem:[%s1833_s3 + $0x84] sm:$0xf] %vm957_vm2, %v1188_v10  ;;  %v538_v20 = vadd.f32 %v1293_v17, %v1508_v34 }
  0xd4   :  { %v1193_v18 = vpack.c.bf16 %v675_v11, %v675_v11  ;;  %v673_v19 = vmax.f32 %v527_v12, 0.0  ;;  %v401_v21 = vpop.f32.mrf.mxu0  ;;  %v529_v25 = vpop.f32.mrf.mxu1 }
  0xd5   :  { %964 = vst.msk [vmem:[%s1833_s3 + $0x18] sm:$0xf] %vm957_vm2, %v1161_v14  ;;  %v1159_v22 = vpack.c.bf16 %v641_v15, %v641_v15  ;;  %v644_v23 = vmax.f32 %v410_v16, 0.0  ;;  %v402_v24 = vadd.f32 %v1508_v34, %v401_v21  ;;  %v676_v27 = vmax.f32 %v538_v20, 0.0 }
  0xd6   :  { %996 = vst.msk [vmem:[%s1833_s3 + $0x98] sm:$0xf] %vm957_vm2, %v1193_v18  ;;  %v1191_v26 = vpack.c.bf16 %v673_v19, %v673_v19  ;;  %v530_v28 = vadd.f32 %v1508_v34, %v529_v25  ;;  %v1264_v29 = vpop.f32.mrf.mxu0  ;;  %v1296_v33 = vpop.f32.mrf.mxu1 }
  0xd7   :  { %962 = vst.msk [vmem:[%s1833_s3 + $0x10] sm:$0xf] %vm957_vm2, %v1159_v22  ;;  %v1162_v30 = vpack.c.bf16 %v644_v23, %v644_v23  ;;  %v642_v31 = vmax.f32 %v402_v24, 0.0  ;;  %v423_v32 = vadd.f32 %v1264_v29, %v1508_v34  ;;  %v1194_v35 = vpack.c.bf16 %v676_v27, %v676_v27 }
  0xd8   :  { %994 = vst.msk [vmem:[%s1833_s3 + $0x90] sm:$0xf] %vm957_vm2, %v1191_v26  ;;  %v674_v36 = vmax.f32 %v530_v28, 0.0  ;;  %v551_v37 = vadd.f32 %v1296_v33, %v1508_v34  ;;  %v414_v38 = vpop.f32.mrf.mxu0  ;;  %v542_v42 = vpop.f32.mrf.mxu1 }
  0xd9   :  { %965 = vst.msk [vmem:[%s1833_s3 + $0x1c] sm:$0xf] %vm957_vm2, %v1162_v30  ;;  %v1160_v39 = vpack.c.bf16 %v642_v31, %v642_v31  ;;  %v647_v40 = vmax.f32 %v423_v32, 0.0  ;;  %v415_v41 = vadd.f32 %v1508_v34, %v414_v38  ;;  %997 = vst.msk [vmem:[%s1833_s3 + $0x9c] sm:$0xf] %vm957_vm2, %v1194_v35  ;;  %v543_v45 = vadd.f32 %v1508_v34, %v542_v42 }
  0xda   :  { %v1192_v43 = vpack.c.bf16 %v674_v36, %v674_v36  ;;  %v679_v44 = vmax.f32 %v551_v37, 0.0  ;;  %v1265_v46 = vpop.f32.mrf.mxu0  ;;  %v1297_v50 = vpop.f32.mrf.mxu1 }
  0xdb   :  { %963 = vst.msk [vmem:[%s1833_s3 + $0x14] sm:$0xf] %vm957_vm2, %v1160_v39  ;;  %v1165_v47 = vpack.c.bf16 %v647_v40, %v647_v40  ;;  %v645_v48 = vmax.f32 %v415_v41, 0.0  ;;  %v426_v49 = vadd.f32 %v1265_v46, %v1508_v34  ;;  %v677_v52 = vmax.f32 %v543_v45, 0.0 }
  0xdc   :  { %995 = vst.msk [vmem:[%s1833_s3 + $0x94] sm:$0xf] %vm957_vm2, %v1192_v43  ;;  %v1197_v51 = vpack.c.bf16 %v679_v44, %v679_v44  ;;  %v554_v53 = vadd.f32 %v1297_v50, %v1508_v34  ;;  %v417_v54 = vpop.f32.mrf.mxu0  ;;  %v545_v58 = vpop.f32.mrf.mxu1 }
  0xdd   :  { %968 = vst.msk [vmem:[%s1833_s3 + $0x28] sm:$0xf] %vm957_vm2, %v1165_v47  ;;  %v1163_v55 = vpack.c.bf16 %v645_v48, %v645_v48  ;;  %v648_v56 = vmax.f32 %v426_v49, 0.0  ;;  %v418_v57 = vadd.f32 %v1508_v34, %v417_v54  ;;  %v1195_v59 = vpack.c.bf16 %v677_v52, %v677_v52 }
  0xde   :  { %1000 = vst.msk [vmem:[%s1833_s3 + $0xa8] sm:$0xf] %vm957_vm2, %v1197_v51  ;;  %v680_v60 = vmax.f32 %v554_v53, 0.0  ;;  %v546_v61 = vadd.f32 %v1508_v34, %v545_v58  ;;  %v1268_v62 = vpop.f32.mrf.mxu0  ;;  %v1300_v2 = vpop.f32.mrf.mxu1 }
  0xdf   :  { %966 = vst.msk [vmem:[%s1833_s3 + $0x20] sm:$0xf] %vm957_vm2, %v1163_v55  ;;  %v1166_v63 = vpack.c.bf16 %v648_v56, %v648_v56  ;;  %v646_v0 = vmax.f32 %v418_v57, 0.0  ;;  %v439_v1 = vadd.f32 %v1268_v62, %v1508_v34  ;;  %998 = vst.msk [vmem:[%s1833_s3 + $0xa0] sm:$0xf] %vm957_vm2, %v1195_v59  ;;  %v567_v5 = vadd.f32 %v1300_v2, %v1508_v34 }
  0xe0   :  { %v1198_v3 = vpack.c.bf16 %v680_v60, %v680_v60  ;;  %v678_v4 = vmax.f32 %v546_v61, 0.0  ;;  %v430_v6 = vpop.f32.mrf.mxu0  ;;  %v558_v10 = vpop.f32.mrf.mxu1 }
  0xe1   :  { %969 = vst.msk [vmem:[%s1833_s3 + $0x2c] sm:$0xf] %vm957_vm2, %v1166_v63  ;;  %v1164_v7 = vpack.c.bf16 %v646_v0, %v646_v0  ;;  %v651_v8 = vmax.f32 %v439_v1, 0.0  ;;  %v431_v9 = vadd.f32 %v1508_v34, %v430_v6  ;;  %v683_v12 = vmax.f32 %v567_v5, 0.0 }
  0xe2   :  { %1001 = vst.msk [vmem:[%s1833_s3 + $0xac] sm:$0xf] %vm957_vm2, %v1198_v3  ;;  %v1196_v11 = vpack.c.bf16 %v678_v4, %v678_v4  ;;  %v559_v13 = vadd.f32 %v1508_v34, %v558_v10  ;;  %v1269_v14 = vpop.f32.mrf.mxu0  ;;  %v1301_v18 = vpop.f32.mrf.mxu1 }
  0xe3   :  { %967 = vst.msk [vmem:[%s1833_s3 + $0x24] sm:$0xf] %vm957_vm2, %v1164_v7  ;;  %v1169_v15 = vpack.c.bf16 %v651_v8, %v651_v8  ;;  %v649_v16 = vmax.f32 %v431_v9, 0.0  ;;  %v442_v17 = vadd.f32 %v1269_v14, %v1508_v34  ;;  %v1201_v19 = vpack.c.bf16 %v683_v12, %v683_v12 }
  0xe4   :  { %999 = vst.msk [vmem:[%s1833_s3 + $0xa4] sm:$0xf] %vm957_vm2, %v1196_v11  ;;  %v681_v20 = vmax.f32 %v559_v13, 0.0  ;;  %v570_v21 = vadd.f32 %v1301_v18, %v1508_v34  ;;  %v433_v22 = vpop.f32.mrf.mxu0  ;;  %v561_v26 = vpop.f32.mrf.mxu1 }
  0xe5   :  { %972 = vst.msk [vmem:[%s1833_s3 + $0x38] sm:$0xf] %vm957_vm2, %v1169_v15  ;;  %v1167_v23 = vpack.c.bf16 %v649_v16, %v649_v16  ;;  %v652_v24 = vmax.f32 %v442_v17, 0.0  ;;  %v434_v25 = vadd.f32 %v1508_v34, %v433_v22  ;;  %1004 = vst.msk [vmem:[%s1833_s3 + $0xb8] sm:$0xf] %vm957_vm2, %v1201_v19  ;;  %v562_v29 = vadd.f32 %v1508_v34, %v561_v26 }
  0xe6   :  { %v1199_v27 = vpack.c.bf16 %v681_v20, %v681_v20  ;;  %v684_v28 = vmax.f32 %v570_v21, 0.0  ;;  %v1272_v30 = vpop.f32.mrf.mxu0  ;;  %v1304_v35 = vpop.f32.mrf.mxu1 }
  0xe7   :  { %970 = vst.msk [vmem:[%s1833_s3 + $0x30] sm:$0xf] %vm957_vm2, %v1167_v23  ;;  %v1170_v31 = vpack.c.bf16 %v652_v24, %v652_v24  ;;  %v650_v32 = vmax.f32 %v434_v25, 0.0  ;;  %v455_v33 = vadd.f32 %v1272_v30, %v1508_v34  ;;  %v682_v37 = vmax.f32 %v562_v29, 0.0 }
  0xe8   :  { %1002 = vst.msk [vmem:[%s1833_s3 + $0xb0] sm:$0xf] %vm957_vm2, %v1199_v27  ;;  %v1202_v36 = vpack.c.bf16 %v684_v28, %v684_v28  ;;  %v583_v38 = vadd.f32 %v1304_v35, %v1508_v34  ;;  %v446_v39 = vpop.f32.mrf.mxu0  ;;  %v574_v43 = vpop.f32.mrf.mxu1 }
  0xe9   :  { %973 = vst.msk [vmem:[%s1833_s3 + $0x3c] sm:$0xf] %vm957_vm2, %v1170_v31  ;;  %v1168_v40 = vpack.c.bf16 %v650_v32, %v650_v32  ;;  %v655_v41 = vmax.f32 %v455_v33, 0.0  ;;  %v447_v42 = vadd.f32 %v1508_v34, %v446_v39  ;;  %v1200_v44 = vpack.c.bf16 %v682_v37, %v682_v37 }
  0xea   :  { %1005 = vst.msk [vmem:[%s1833_s3 + $0xbc] sm:$0xf] %vm957_vm2, %v1202_v36  ;;  %v687_v45 = vmax.f32 %v583_v38, 0.0  ;;  %v575_v46 = vadd.f32 %v1508_v34, %v574_v43  ;;  %v1273_v47 = vpop.f32.mrf.mxu0  ;;  %v1305_v51 = vpop.f32.mrf.mxu1 }
  0xeb   :  { %971 = vst.msk [vmem:[%s1833_s3 + $0x34] sm:$0xf] %vm957_vm2, %v1168_v40  ;;  %v1173_v48 = vpack.c.bf16 %v655_v41, %v655_v41  ;;  %v653_v49 = vmax.f32 %v447_v42, 0.0  ;;  %v458_v50 = vadd.f32 %v1273_v47, %v1508_v34  ;;  %1003 = vst.msk [vmem:[%s1833_s3 + $0xb4] sm:$0xf] %vm957_vm2, %v1200_v44  ;;  %v586_v54 = vadd.f32 %v1305_v51, %v1508_v34 }
  0xec   :  { %v1205_v52 = vpack.c.bf16 %v687_v45, %v687_v45  ;;  %v685_v53 = vmax.f32 %v575_v46, 0.0  ;;  %v449_v55 = vpop.f32.mrf.mxu0  ;;  %v577_v59 = vpop.f32.mrf.mxu1 }
  0xed   :  { %976 = vst.msk [vmem:[%s1833_s3 + $0x48] sm:$0xf] %vm957_vm2, %v1173_v48  ;;  %v1171_v56 = vpack.c.bf16 %v653_v49, %v653_v49  ;;  %v656_v57 = vmax.f32 %v458_v50, 0.0  ;;  %v450_v58 = vadd.f32 %v1508_v34, %v449_v55  ;;  %v688_v61 = vmax.f32 %v586_v54, 0.0 }
  0xee   :  { %1008 = vst.msk [vmem:[%s1833_s3 + $0xc8] sm:$0xf] %vm957_vm2, %v1205_v52  ;;  %v1203_v60 = vpack.c.bf16 %v685_v53, %v685_v53  ;;  %v578_v62 = vadd.f32 %v1508_v34, %v577_v59  ;;  %v1276_v63 = vpop.f32.mrf.mxu0  ;;  %v1308_v3 = vpop.f32.mrf.mxu1 }
  0xef   :  { %974 = vst.msk [vmem:[%s1833_s3 + $0x40] sm:$0xf] %vm957_vm2, %v1171_v56  ;;  %v1174_v0 = vpack.c.bf16 %v656_v57, %v656_v57  ;;  %v654_v1 = vmax.f32 %v450_v58, 0.0  ;;  %v471_v2 = vadd.f32 %v1276_v63, %v1508_v34  ;;  %v1206_v4 = vpack.c.bf16 %v688_v61, %v688_v61 }
  0xf0   :  { %1006 = vst.msk [vmem:[%s1833_s3 + $0xc0] sm:$0xf] %vm957_vm2, %v1203_v60  ;;  %v686_v5 = vmax.f32 %v578_v62, 0.0  ;;  %v599_v6 = vadd.f32 %v1308_v3, %v1508_v34  ;;  %v462_v7 = vpop.f32.mrf.mxu0  ;;  %v590_v11 = vpop.f32.mrf.mxu1 }
  0xf1   :  { %977 = vst.msk [vmem:[%s1833_s3 + $0x4c] sm:$0xf] %vm957_vm2, %v1174_v0  ;;  %v1172_v8 = vpack.c.bf16 %v654_v1, %v654_v1  ;;  %v659_v9 = vmax.f32 %v471_v2, 0.0  ;;  %v463_v10 = vadd.f32 %v1508_v34, %v462_v7  ;;  %1009 = vst.msk [vmem:[%s1833_s3 + $0xcc] sm:$0xf] %vm957_vm2, %v1206_v4  ;;  %v591_v14 = vadd.f32 %v1508_v34, %v590_v11 }
  0xf2   :  { %v1204_v12 = vpack.c.bf16 %v686_v5, %v686_v5  ;;  %v691_v13 = vmax.f32 %v599_v6, 0.0  ;;  %v1277_v15 = vpop.f32.mrf.mxu0  ;;  %v1309_v19 = vpop.f32.mrf.mxu1 }
  0xf3   :  { %975 = vst.msk [vmem:[%s1833_s3 + $0x44] sm:$0xf] %vm957_vm2, %v1172_v8  ;;  %v1177_v16 = vpack.c.bf16 %v659_v9, %v659_v9  ;;  %v657_v17 = vmax.f32 %v463_v10, 0.0  ;;  %v474_v18 = vadd.f32 %v1277_v15, %v1508_v34  ;;  %v689_v21 = vmax.f32 %v591_v14, 0.0 }
  0xf4   :  { %1007 = vst.msk [vmem:[%s1833_s3 + $0xc4] sm:$0xf] %vm957_vm2, %v1204_v12  ;;  %v1209_v20 = vpack.c.bf16 %v691_v13, %v691_v13  ;;  %v602_v22 = vadd.f32 %v1309_v19, %v1508_v34  ;;  %v465_v23 = vpop.f32.mrf.mxu0  ;;  %v593_v27 = vpop.f32.mrf.mxu1 }
  0xf5   :  { %980 = vst.msk [vmem:[%s1833_s3 + $0x58] sm:$0xf] %vm957_vm2, %v1177_v16  ;;  %v1175_v24 = vpack.c.bf16 %v657_v17, %v657_v17  ;;  %v660_v25 = vmax.f32 %v474_v18, 0.0  ;;  %v466_v26 = vadd.f32 %v1508_v34, %v465_v23  ;;  %v1207_v28 = vpack.c.bf16 %v689_v21, %v689_v21 }
  0xf6   :  { %1012 = vst.msk [vmem:[%s1833_s3 + $0xd8] sm:$0xf] %vm957_vm2, %v1209_v20  ;;  %v692_v29 = vmax.f32 %v602_v22, 0.0  ;;  %v594_v30 = vadd.f32 %v1508_v34, %v593_v27  ;;  %v1280_v31 = vpop.f32.mrf.mxu0  ;;  %v1312_v36 = vpop.f32.mrf.mxu1 }
  0xf7   :  { %978 = vst.msk [vmem:[%s1833_s3 + $0x50] sm:$0xf] %vm957_vm2, %v1175_v24  ;;  %v1178_v32 = vpack.c.bf16 %v660_v25, %v660_v25  ;;  %v658_v33 = vmax.f32 %v466_v26, 0.0  ;;  %v487_v35 = vadd.f32 %v1280_v31, %v1508_v34  ;;  %1010 = vst.msk [vmem:[%s1833_s3 + $0xd0] sm:$0xf] %vm957_vm2, %v1207_v28  ;;  %v615_v39 = vadd.f32 %v1312_v36, %v1508_v34 }
  0xf8   :  { %v1210_v37 = vpack.c.bf16 %v692_v29, %v692_v29  ;;  %v690_v38 = vmax.f32 %v594_v30, 0.0  ;;  %v478_v40 = vpop.f32.mrf.mxu0  ;;  %v606_v44 = vpop.f32.mrf.mxu1 }
  0xf9   :  { %981 = vst.msk [vmem:[%s1833_s3 + $0x5c] sm:$0xf] %vm957_vm2, %v1178_v32  ;;  %v1176_v41 = vpack.c.bf16 %v658_v33, %v658_v33  ;;  %v663_v42 = vmax.f32 %v487_v35, 0.0  ;;  %v479_v43 = vadd.f32 %v1508_v34, %v478_v40  ;;  %v695_v46 = vmax.f32 %v615_v39, 0.0 }
  0xfa   :  { %1013 = vst.msk [vmem:[%s1833_s3 + $0xdc] sm:$0xf] %vm957_vm2, %v1210_v37  ;;  %v1208_v45 = vpack.c.bf16 %v690_v38, %v690_v38  ;;  %v607_v47 = vadd.f32 %v1508_v34, %v606_v44  ;;  %v1281_v48 = vpop.f32.mrf.mxu0  ;;  %v1313_v52 = vpop.f32.mrf.mxu1 }
  0xfb   :  { %979 = vst.msk [vmem:[%s1833_s3 + $0x54] sm:$0xf] %vm957_vm2, %v1176_v41  ;;  %v1181_v49 = vpack.c.bf16 %v663_v42, %v663_v42  ;;  %v661_v50 = vmax.f32 %v479_v43, 0.0  ;;  %v490_v51 = vadd.f32 %v1281_v48, %v1508_v34  ;;  %v1213_v53 = vpack.c.bf16 %v695_v46, %v695_v46 }
  0xfc   :  { %1011 = vst.msk [vmem:[%s1833_s3 + $0xd4] sm:$0xf] %vm957_vm2, %v1208_v45  ;;  %v693_v54 = vmax.f32 %v607_v47, 0.0  ;;  %v618_v55 = vadd.f32 %v1313_v52, %v1508_v34  ;;  %v481_v56 = vpop.f32.mrf.mxu0  ;;  %v609_v60 = vpop.f32.mrf.mxu1 }
  0xfd   :  { %984 = vst.msk [vmem:[%s1833_s3 + $0x68] sm:$0xf] %vm957_vm2, %v1181_v49  ;;  %v1179_v57 = vpack.c.bf16 %v661_v50, %v661_v50  ;;  %v664_v58 = vmax.f32 %v490_v51, 0.0  ;;  %v482_v59 = vadd.f32 %v1508_v34, %v481_v56  ;;  %1016 = vst.msk [vmem:[%s1833_s3 + $0xe8] sm:$0xf] %vm957_vm2, %v1213_v53  ;;  %v610_v63 = vadd.f32 %v1508_v34, %v609_v60 }
  0xfe   :  { %v1211_v61 = vpack.c.bf16 %v693_v54, %v693_v54  ;;  %v696_v62 = vmax.f32 %v618_v55, 0.0  ;;  %v1284_v0 = vpop.f32.mrf.mxu0  ;;  %v1316_v4 = vpop.f32.mrf.mxu1 }
  0xff   :  { %982 = vst.msk [vmem:[%s1833_s3 + $0x60] sm:$0xf] %vm957_vm2, %v1179_v57  ;;  %v1182_v1 = vpack.c.bf16 %v664_v58, %v664_v58  ;;  %v662_v2 = vmax.f32 %v482_v59, 0.0  ;;  %v503_v3 = vadd.f32 %v1284_v0, %v1508_v34  ;;  %v694_v6 = vmax.f32 %v610_v63, 0.0 }
 0x100   :  { %1014 = vst.msk [vmem:[%s1833_s3 + $0xe0] sm:$0xf] %vm957_vm2, %v1211_v61  ;;  %v1214_v5 = vpack.c.bf16 %v696_v62, %v696_v62  ;;  %v631_v7 = vadd.f32 %v1316_v4, %v1508_v34  ;;  %v494_v8 = vpop.f32.mrf.mxu0  ;;  %v622_v12 = vpop.f32.mrf.mxu1 }
 0x101   :  { %985 = vst.msk [vmem:[%s1833_s3 + $0x6c] sm:$0xf] %vm957_vm2, %v1182_v1  ;;  %v1180_v9 = vpack.c.bf16 %v662_v2, %v662_v2  ;;  %v667_v10 = vmax.f32 %v503_v3, 0.0  ;;  %v495_v11 = vadd.f32 %v1508_v34, %v494_v8  ;;  %v1212_v13 = vpack.c.bf16 %v694_v6, %v694_v6 }
 0x102   :  { %1017 = vst.msk [vmem:[%s1833_s3 + $0xec] sm:$0xf] %vm957_vm2, %v1214_v5  ;;  %v699_v14 = vmax.f32 %v631_v7, 0.0  ;;  %v623_v15 = vadd.f32 %v1508_v34, %v622_v12  ;;  %v1285_v16 = vpop.f32.mrf.mxu0  ;;  %v1317_v20 = vpop.f32.mrf.mxu1 }
 0x103   :  { %983 = vst.msk [vmem:[%s1833_s3 + $0x64] sm:$0xf] %vm957_vm2, %v1180_v9  ;;  %v1185_v17 = vpack.c.bf16 %v667_v10, %v667_v10  ;;  %v665_v18 = vmax.f32 %v495_v11, 0.0  ;;  %v506_v19 = vadd.f32 %v1285_v16, %v1508_v34  ;;  %1015 = vst.msk [vmem:[%s1833_s3 + $0xe4] sm:$0xf] %vm957_vm2, %v1212_v13  ;;  %v634_v23 = vadd.f32 %v1317_v20, %v1508_v34 }
 0x104   :  { %v1217_v21 = vpack.c.bf16 %v699_v14, %v699_v14  ;;  %v697_v22 = vmax.f32 %v623_v15, 0.0  ;;  %v497_v24 = vpop.f32.mrf.mxu0  ;;  %v625_v28 = vpop.f32.mrf.mxu1 }
 0x105   :  { %988 = vst.msk [vmem:[%s1833_s3 + $0x78] sm:$0xf] %vm957_vm2, %v1185_v17  ;;  %v1183_v25 = vpack.c.bf16 %v665_v18, %v665_v18  ;;  %v668_v26 = vmax.f32 %v506_v19, 0.0  ;;  %v498_v27 = vadd.f32 %v1508_v34, %v497_v24  ;;  %v700_v30 = vmax.f32 %v634_v23, 0.0 }
 0x106   :  { %1020 = vst.msk [vmem:[%s1833_s3 + $0xf8] sm:$0xf] %vm957_vm2, %v1217_v21  ;;  %v1215_v29 = vpack.c.bf16 %v697_v22, %v697_v22  ;;  %v626_v31 = vadd.f32 %v1508_v34, %v625_v28 }
 0x107   :  { %986 = vst.msk [vmem:[%s1833_s3 + $0x70] sm:$0xf] %vm957_vm2, %v1183_v25  ;;  %v1186_v32 = vpack.c.bf16 %v668_v26, %v668_v26  ;;  %v666_v33 = vmax.f32 %v498_v27, 0.0  ;;  %v1218_v35 = vpack.c.bf16 %v700_v30, %v700_v30 }
 0x108   :  { %1018 = vst.msk [vmem:[%s1833_s3 + $0xf0] sm:$0xf] %vm957_vm2, %v1215_v29  ;;  %v698_v36 = vmax.f32 %v626_v31, 0.0 }
 0x109   :  { %989 = vst.msk [vmem:[%s1833_s3 + $0x7c] sm:$0xf] %vm957_vm2, %v1186_v32  ;;  %v1184_v34 = vpack.c.bf16 %v666_v33, %v666_v33  ;;  %1021 = vst.msk [vmem:[%s1833_s3 + $0xfc] sm:$0xf] %vm957_vm2, %v1218_v35 }
 0x10a   :  { %v1216_v37 = vpack.c.bf16 %v698_v36, %v698_v36 }
 0x10b   :  { %987 = vst.msk [vmem:[%s1833_s3 + $0x74] sm:$0xf] %vm957_vm2, %v1184_v34 }
 0x10c   :  { %1019 = vst.msk [vmem:[%s1833_s3 + $0xf4] sm:$0xf] %vm957_vm2, %v1216_v37 }

// kernel: bottleneck_forward.5
= control target key start
LH: loop header
LB: loop body
LE: loop exit
PB: predicated region body
PF: predicated region fallthrough
CT: control target
= control target key end

     0   :  { %vm409_vm0 = vcmask 1041408   ;;  %vm312_vm1 = vcmask 31744   ;;  %s2315_s0 = inlined_call_operand.vmem [shape: bf16[512,4], index: 0, kind: input, shape index: {}]   ;;  %s2316_s1 = inlined_call_operand.vmem [shape: bf16[4,16], index: 1, kind: input, shape index: {}]   ;;  %s2317_s2 = inlined_call_operand.vmem [shape: f32[1,16], index: 2, kind: input, shape index: {}]   ;;  %s2318_s3 = inlined_call_operand.vmem [shape: bf16[512,4], index: 3, kind: input, shape index: {}]   ;;  %s2319_s4 = inlined_call_operand.vmem [shape: bf16[4,16], index: 4, kind: input, shape index: {}]   ;;  %s2320_s5 = inlined_call_operand.hbm [shape: f32[512,16], index: 5, kind: output, shape index: {}]  }
   0x1   :  { %v151_v0 = vld [vmem:[%s2319_s4] sm:$0x3]  ;;  %v1800_v6 = vld [vmem:[%s2318_s3 + $0x8] sm:$0xff]   ;;  %v1802_v8 = vld [vmem:[%s2318_s3 + $0x10] sm:$0xff]  }
   0x2   :  { %v86_v1 = vld [vmem:[%s2316_s1] sm:$0x3]  ;;  %1793 = vmatprep.subr.msk.bf16.mxu0 %vm409_vm0, %v151_v0  ;;  %v411_v3 = vsel %vm409_vm0, %v151_v0, 0  ;;  %v1801_v7 = vld [vmem:[%s2315_s0 + $0x8] sm:$0xff]   ;;  %v1803_v9 = vld [vmem:[%s2315_s0 + $0x10] sm:$0xff]  }
   0x3   :  { %v1798_v2 = vld [vmem:[%s2318_s3] sm:$0xff]   ;;  %1794 = vmatprep.subr.msk.bf16.mxu1 %vm409_vm0, %v86_v1  ;;  %v959_v4 = vsel %vm409_vm0, %v86_v1, 0  ;;  %1662 = vmatpush3.bf16.msra.mxu0 %v411_v3  ;;  %v1804_v10 = vld [vmem:[%s2318_s3 + $0x18] sm:$0xff]   ;;  %v1808_v14 = vld [vmem:[%s2318_s3 + $0x28] sm:$0xff]  }
   0x4   :  { %1728 = vmatpush3.bf16.msra.mxu1 %v959_v4  ;;  %v1799_v5 = vld [vmem:[%s2315_s0] sm:$0xff]   ;;  %1663 = vmatprep.mubr.msk.bf16.mxu0 %vm312_vm1, %v1798_v2  ;;  %v1805_v11 = vld [vmem:[%s2315_s0 + $0x18] sm:$0xff]   ;;  %v1809_v15 = vld [vmem:[%s2315_s0 + $0x28] sm:$0xff]  }
   0x5   :  { %1729 = vmatprep.mubr.msk.bf16.mxu1 %vm312_vm1, %v1799_v5  ;;  %v1806_v12 = vld [vmem:[%s2318_s3 + $0x20] sm:$0xff]   ;;  %v1810_v16 = vld [vmem:[%s2318_s3 + $0x30] sm:$0xff]   ;;  %v1812_v18 = vld [vmem:[%s2318_s3 + $0x38] sm:$0xff]  }
   0x6   :  { %1664 = vmatmul.mubr.msk.bf16.vlgmr.msra.gmra.mxu0 %vm312_vm1, %v1800_v6  ;;  %v1807_v13 = vld [vmem:[%s2315_s0 + $0x20] sm:$0xff]   ;;  %v1811_v17 = vld [vmem:[%s2315_s0 + $0x30] sm:$0xff]   ;;  %v1813_v19 = vld [vmem:[%s2315_s0 + $0x38] sm:$0xff]  }
   0x7   :  { %1730 = vmatmul.mubr.msk.bf16.vlgmr.msra.gmra.mxu1 %vm312_vm1, %v1801_v7  ;;  %1667 = vmatprep.mubr.msk.bf16.mxu0 %vm312_vm1, %v1802_v8  ;;  %v1814_v20 = vld [vmem:[%s2318_s3 + $0x40] sm:$0xff]   ;;  %v1816_v22 = vld [vmem:[%s2318_s3 + $0x48] sm:$0xff]   ;;  %v1818_v24 = vld [vmem:[%s2318_s3 + $0x50] sm:$0xff]  }
   0x8   :  { %1733 = vmatprep.mubr.msk.bf16.mxu1 %vm312_vm1, %v1803_v9  ;;  %v1815_v21 = vld [vmem:[%s2315_s0 + $0x40] sm:$0xff]   ;;  %v1817_v23 = vld [vmem:[%s2315_s0 + $0x48] sm:$0xff]   ;;  %v1819_v25 = vld [vmem:[%s2315_s0 + $0x50] sm:$0xff]  }
   0x9   :  { %v1820_v26 = vld [vmem:[%s2318_s3 + $0x58] sm:$0xff]   ;;  %v1822_v28 = vld [vmem:[%s2318_s3 + $0x60] sm:$0xff]   ;;  %v1824_v30 = vld [vmem:[%s2318_s3 + $0x68] sm:$0xff]  }
   0xa   :  { %v1821_v27 = vld [vmem:[%s2315_s0 + $0x58] sm:$0xff]   ;;  %v1823_v29 = vld [vmem:[%s2315_s0 + $0x60] sm:$0xff]   ;;  %v1825_v31 = vld [vmem:[%s2315_s0 + $0x68] sm:$0xff]  }
   0xb   :  { %v1826_v32 = vld [vmem:[%s2318_s3 + $0x70] sm:$0xff]   ;;  %v1828_v34 = vld [vmem:[%s2318_s3 + $0x78] sm:$0xff]   ;;  %v1830_v36 = vld [vmem:[%s2318_s3 + $0x80] sm:$0xff]  }
   0xc   :  { %v1827_v33 = vld [vmem:[%s2315_s0 + $0x70] sm:$0xff]   ;;  %v1829_v35 = vld [vmem:[%s2315_s0 + $0x78] sm:$0xff]   ;;  %v1831_v37 = vld [vmem:[%s2315_s0 + $0x80] sm:$0xff]  }
   0xd   :  { %v1832_v38 = vld [vmem:[%s2318_s3 + $0x88] sm:$0xff]  }
   0xe   :  { %1668 = vmatmul.mubr.msk.bf16.gmra.mxu0 %vm312_vm1, %v1804_v10 }
   0xf   :  { %1734 = vmatmul.mubr.msk.bf16.gmra.mxu1 %vm312_vm1, %v1805_v11  ;;  %1671 = vmatprep.mubr.msk.bf16.mxu0 %vm312_vm1, %v1806_v12 }
  0x10   :  { %1737 = vmatprep.mubr.msk.bf16.mxu1 %vm312_vm1, %v1807_v13 }
  0x16   :  { %1672 = vmatmul.mubr.msk.bf16.gmra.mxu0 %vm312_vm1, %v1808_v14 }
  0x17   :  { %1738 = vmatmul.mubr.msk.bf16.gmra.mxu1 %vm312_vm1, %v1809_v15  ;;  %1675 = vmatprep.mubr.msk.bf16.mxu0 %vm312_vm1, %v1810_v16 }
  0x18   :  { %1741 = vmatprep.mubr.msk.bf16.mxu1 %vm312_vm1, %v1811_v17 }
  0x1e   :  { %1676 = vmatmul.mubr.msk.bf16.gmra.mxu0 %vm312_vm1, %v1812_v18 }
  0x1f   :  { %1742 = vmatmul.mubr.msk.bf16.gmra.mxu1 %vm312_vm1, %v1813_v19  ;;  %1679 = vmatprep.mubr.msk.bf16.mxu0 %vm312_vm1, %v1814_v20 }
  0x20   :  { %1745 = vmatprep.mubr.msk.bf16.mxu1 %vm312_vm1, %v1815_v21 }
  0x26   :  { %1680 = vmatmul.mubr.msk.bf16.gmra.mxu0 %vm312_vm1, %v1816_v22 }
  0x27   :  { %1746 = vmatmul.mubr.msk.bf16.gmra.mxu1 %vm312_vm1, %v1817_v23  ;;  %1683 = vmatprep.mubr.msk.bf16.mxu0 %vm312_vm1, %v1818_v24 }
  0x28   :  { %1749 = vmatprep.mubr.msk.bf16.mxu1 %vm312_vm1, %v1819_v25 }
  0x2e   :  { %1684 = vmatmul.mubr.msk.bf16.gmra.mxu0 %vm312_vm1, %v1820_v26 }
  0x2f   :  { %1750 = vmatmul.mubr.msk.bf16.gmra.mxu1 %vm312_vm1, %v1821_v27  ;;  %1687 = vmatprep.mubr.msk.bf16.mxu0 %vm312_vm1, %v1822_v28 }
  0x30   :  { %1753 = vmatprep.mubr.msk.bf16.mxu1 %vm312_vm1, %v1823_v29 }
  0x36   :  { %1688 = vmatmul.mubr.msk.bf16.gmra.mxu0 %vm312_vm1, %v1824_v30 }
  0x37   :  { %1754 = vmatmul.mubr.msk.bf16.gmra.mxu1 %vm312_vm1, %v1825_v31  ;;  %1691 = vmatprep.mubr.msk.bf16.mxu0 %vm312_vm1, %v1826_v32 }
  0x38   :  { %1757 = vmatprep.mubr.msk.bf16.mxu1 %vm312_vm1, %v1827_v33 }
  0x3e   :  { %1692 = vmatmul.mubr.msk.bf16.gmra.mxu0 %vm312_vm1, %v1828_v34 }
  0x3f   :  { %1758 = vmatmul.mubr.msk.bf16.gmra.mxu1 %vm312_vm1, %v1829_v35  ;;  %1695 = vmatprep.mubr.msk.bf16.mxu0 %vm312_vm1, %v1830_v36 }
  0x40   :  { %1761 = vmatprep.mubr.msk.bf16.mxu1 %vm312_vm1, %v1831_v37 }
  0x41   :  { %10 = vsyncpa [#allocation3], 0  ;;  %v1833_v39 = vld [vmem:[%s2315_s0 + $0x88] sm:$0xff]   ;;  %v1834_v40 = vld [vmem:[%s2318_s3 + $0x90] sm:$0xff]   ;;  %vm1385_vm2 = vcmask 130048  }
  0x42   :  { %v1835_v41 = vld [vmem:[%s2315_s0 + $0x90] sm:$0xff]   ;;  %v1836_v42 = vld [vmem:[%s2318_s3 + $0x98] sm:$0xff]   ;;  %v1838_v44 = vld [vmem:[%s2318_s3 + $0xa0] sm:$0xff]  }
  0x43   :  { %v1837_v43 = vld [vmem:[%s2315_s0 + $0x98] sm:$0xff]   ;;  %v1839_v45 = vld [vmem:[%s2315_s0 + $0xa0] sm:$0xff]   ;;  %v1840_v46 = vld [vmem:[%s2318_s3 + $0xa8] sm:$0xff]  }
  0x44   :  { %v1841_v47 = vld [vmem:[%s2315_s0 + $0xa8] sm:$0xff]   ;;  %v1842_v48 = vld [vmem:[%s2318_s3 + $0xb0] sm:$0xff]   ;;  %v1844_v50 = vld [vmem:[%s2318_s3 + $0xb8] sm:$0xff]  }
  0x45   :  { %v1843_v49 = vld [vmem:[%s2315_s0 + $0xb0] sm:$0xff]   ;;  %v1845_v51 = vld [vmem:[%s2315_s0 + $0xb8] sm:$0xff]   ;;  %v1846_v52 = vld [vmem:[%s2318_s3 + $0xc0] sm:$0xff]  }
  0x46   :  { %1696 = vmatmul.mubr.msk.bf16.gmra.mxu0 %vm312_vm1, %v1832_v38  ;;  %v1847_v53 = vld [vmem:[%s2315_s0 + $0xc0] sm:$0xff]   ;;  %v1848_v54 = vld [vmem:[%s2318_s3 + $0xc8] sm:$0xff]   ;;  %v1850_v56 = vld [vmem:[%s2318_s3 + $0xd0] sm:$0xff]  }
  0x47   :  { %1762 = vmatmul.mubr.msk.bf16.gmra.mxu1 %vm312_vm1, %v1833_v39  ;;  %1699 = vmatprep.mubr.msk.bf16.mxu0 %vm312_vm1, %v1834_v40  ;;  %v1849_v55 = vld [vmem:[%s2315_s0 + $0xc8] sm:$0xff]   ;;  %v1851_v57 = vld [vmem:[%s2315_s0 + $0xd0] sm:$0xff]   ;;  %v1852_v58 = vld [vmem:[%s2318_s3 + $0xd8] sm:$0xff]  }
  0x48   :  { %1765 = vmatprep.mubr.msk.bf16.mxu1 %vm312_vm1, %v1835_v41  ;;  %v1853_v59 = vld [vmem:[%s2315_s0 + $0xd8] sm:$0xff]   ;;  %v1854_v60 = vld [vmem:[%s2318_s3 + $0xe0] sm:$0xff]   ;;  %v1856_v62 = vld [vmem:[%s2318_s3 + $0xe8] sm:$0xff]  }
  0x49   :  { %v1855_v61 = vld [vmem:[%s2315_s0 + $0xe0] sm:$0xff]   ;;  %v1857_v63 = vld [vmem:[%s2315_s0 + $0xe8] sm:$0xff]   ;;  %v1858_v0 = vld [vmem:[%s2318_s3 + $0xf0] sm:$0xff]  }
  0x4a   :  { %v1859_v1 = vld [vmem:[%s2315_s0 + $0xf0] sm:$0xff]   ;;  %v1860_v2 = vld [vmem:[%s2318_s3 + $0xf8] sm:$0xff]   ;;  %v2182_v6 = vld [vmem:[%s2317_s2] ss:$0 sm:$0xff] }
  0x4b   :  { %v1861_v3 = vld [vmem:[%s2315_s0 + $0xf8] sm:$0xff]   ;;  %s1884_s0 = smov [#allocation2]  }
  0x4c   :  { %s1455_s2 = sshll.u32 %s1884_s0, 4  ;;  %s1456_s2 = int_to_ptr.vmem [resolvable:$true] %s1455_s2 }
  0x4d   :  { %s1862_s3 = scalar_lea.vmem %s1456_s2, 8192  ;;  %p1867_p1 = scmp.lt.s32.totalorder %s1456_s2, %s1456_s2 }
  0x4e   :  { %1700 = vmatmul.mubr.msk.bf16.gmra.mxu0 %vm312_vm1, %v1836_v42  ;;  %p1863_p0 = scmp.ne.s32.totalorder %s1456_s2, %s1862_s3  ;;  %p1868_p2 = scmp.lt.s32.totalorder %s1862_s3, %s1862_s3 }
  0x4f   :  { %1766 = vmatmul.mubr.msk.bf16.gmra.mxu1 %vm312_vm1, %v1837_v43  ;;  %1703 = vmatprep.mubr.msk.bf16.mxu0 %vm312_vm1, %v1838_v44 }
  0x50   :  { %1769 = vmatprep.mubr.msk.bf16.mxu1 %vm312_vm1, %v1839_v45  ;;  %p1869_p3 = por %p1868_p2, %p1867_p1 }
  0x52   :  { %p1870_p4 = pnand %p1869_p3, %p1863_p0 }
  0x56   :  { %1704 = vmatmul.mubr.msk.bf16.gmra.mxu0 %vm312_vm1, %v1840_v46 }
  0x57   :  { %1770 = vmatmul.mubr.msk.bf16.gmra.mxu1 %vm312_vm1, %v1841_v47  ;;  %1707 = vmatprep.mubr.msk.bf16.mxu0 %vm312_vm1, %v1842_v48 }
  0x58   :  { %1773 = vmatprep.mubr.msk.bf16.mxu1 %vm312_vm1, %v1843_v49 }
  0x5e   :  { %1708 = vmatmul.mubr.msk.bf16.gmra.mxu0 %vm312_vm1, %v1844_v50 }
  0x5f   :  { %1774 = vmatmul.mubr.msk.bf16.gmra.mxu1 %vm312_vm1, %v1845_v51  ;;  %1711 = vmatprep.mubr.msk.bf16.mxu0 %vm312_vm1, %v1846_v52 }
  0x60   :  { %1777 = vmatprep.mubr.msk.bf16.mxu1 %vm312_vm1, %v1847_v53 }
  0x66   :  { %1712 = vmatmul.mubr.msk.bf16.gmra.mxu0 %vm312_vm1, %v1848_v54 }
  0x67   :  { %1778 = vmatmul.mubr.msk.bf16.gmra.mxu1 %vm312_vm1, %v1849_v55  ;;  %1715 = vmatprep.mubr.msk.bf16.mxu0 %vm312_vm1, %v1850_v56 }
  0x68   :  { %1781 = vmatprep.mubr.msk.bf16.mxu1 %vm312_vm1, %v1851_v57 }
  0x6e   :  { %1716 = vmatmul.mubr.msk.bf16.gmra.mxu0 %vm312_vm1, %v1852_v58 }
  0x6f   :  { %1782 = vmatmul.mubr.msk.bf16.gmra.mxu1 %vm312_vm1, %v1853_v59  ;;  %1719 = vmatprep.mubr.msk.bf16.mxu0 %vm312_vm1, %v1854_v60 }
  0x70   :  { %1785 = vmatprep.mubr.msk.bf16.mxu1 %vm312_vm1, %v1855_v61 }
  0x76   :  { %1720 = vmatmul.mubr.msk.bf16.gmra.mxu0 %vm312_vm1, %v1856_v62 }
  0x77   :  { %1786 = vmatmul.mubr.msk.bf16.gmra.mxu1 %vm312_vm1, %v1857_v63  ;;  %1723 = vmatprep.mubr.msk.bf16.mxu0 %vm312_vm1, %v1858_v0 }
  0x78   :  { %1789 = vmatprep.mubr.msk.bf16.mxu1 %vm312_vm1, %v1859_v1 }
  0x7e   :  { %1724 = vmatmul.mubr.msk.bf16.gmra.mxu0 %vm312_vm1, %v1860_v2 }
  0x7f   :  { %1790 = vmatmul.mubr.msk.bf16.gmra.mxu1 %vm312_vm1, %v1861_v3 }
  0xc6   :  { %v1665_v4 = vpop.f32.mrf.mxu0 }
  0xc7   :  { %v1731_v5 = vpop.f32.mrf.mxu1 }
  0xc8   :  { %v1004_v7 = vadd.f32 %v1731_v5, %v1665_v4  ;;  %v447_v8 = vpop.f32.mrf.mxu0 }
  0xc9   :  { %v995_v9 = vpop.f32.mrf.mxu1 }
  0xca   :  { %v1259_v10 = vadd.f32 %v2182_v6, %v1004_v7  ;;  %v996_v11 = vadd.f32 %v995_v9, %v447_v8  ;;  %v1666_v12 = vpop.f32.mrf.mxu0 }
  0xcb   :  { %v1732_v13 = vpop.f32.mrf.mxu1 }
  0xcc   :  { %v1323_v14 = vmax.f32 %v1259_v10, 0.0  ;;  %v1257_v15 = vadd.f32 %v2182_v6, %v996_v11  ;;  %v1007_v16 = vadd.f32 %v1732_v13, %v1666_v12  ;;  %v450_v17 = vpop.f32.mrf.mxu0 }
  0xcd   :  { %v998_v18 = vpop.f32.mrf.mxu1 }
  0xce   :  { %1388 = vst.msk [vmem:[#allocation2 + $0x10] sm:$0xff] %vm1385_vm2, %v1323_v14  ;;  %v1321_v19 = vmax.f32 %v1257_v15, 0.0  ;;  %v1260_v20 = vadd.f32 %v2182_v6, %v1007_v16  ;;  %v999_v21 = vadd.f32 %v998_v18, %v450_v17  ;;  %v1669_v22 = vpop.f32.mrf.mxu0 }
  0xcf   :  { %v1735_v23 = vpop.f32.mrf.mxu1 }
  0xd0   :  { %1386 = vst.msk [vmem:[#allocation2] sm:$0xff] %vm1385_vm2, %v1321_v19  ;;  %v1324_v24 = vmax.f32 %v1260_v20, 0.0  ;;  %v1258_v25 = vadd.f32 %v2182_v6, %v999_v21  ;;  %v1020_v26 = vadd.f32 %v1735_v23, %v1669_v22  ;;  %v463_v27 = vpop.f32.mrf.mxu0 }
  0xd1   :  { %v1011_v28 = vpop.f32.mrf.mxu1 }
  0xd2   :  { %1389 = vst.msk [vmem:[#allocation2 + $0x18] sm:$0xff] %vm1385_vm2, %v1324_v24  ;;  %v1322_v29 = vmax.f32 %v1258_v25, 0.0  ;;  %v1263_v30 = vadd.f32 %v2182_v6, %v1020_v26  ;;  %v1012_v31 = vadd.f32 %v1011_v28, %v463_v27  ;;  %v1670_v32 = vpop.f32.mrf.mxu0 }
  0xd3   :  { %v1736_v33 = vpop.f32.mrf.mxu1 }
  0xd4   :  { %1387 = vst.msk [vmem:[#allocation2 + $0x8] sm:$0xff] %vm1385_vm2, %v1322_v29  ;;  %v1327_v34 = vmax.f32 %v1263_v30, 0.0  ;;  %v1261_v35 = vadd.f32 %v2182_v6, %v1012_v31  ;;  %v1023_v36 = vadd.f32 %v1736_v33, %v1670_v32  ;;  %v466_v37 = vpop.f32.mrf.mxu0 }
  0xd5   :  { %v1014_v38 = vpop.f32.mrf.mxu1 }
  0xd6   :  { %1392 = vst.msk [vmem:[#allocation2 + $0x30] sm:$0xff] %vm1385_vm2, %v1327_v34  ;;  %v1325_v39 = vmax.f32 %v1261_v35, 0.0  ;;  %v1264_v40 = vadd.f32 %v2182_v6, %v1023_v36  ;;  %v1015_v41 = vadd.f32 %v1014_v38, %v466_v37  ;;  %v1673_v42 = vpop.f32.mrf.mxu0 }
  0xd7   :  { %v1739_v43 = vpop.f32.mrf.mxu1 }
  0xd8   :  { %1390 = vst.msk [vmem:[#allocation2 + $0x20] sm:$0xff] %vm1385_vm2, %v1325_v39  ;;  %v1328_v44 = vmax.f32 %v1264_v40, 0.0  ;;  %v1262_v45 = vadd.f32 %v2182_v6, %v1015_v41  ;;  %v1036_v46 = vadd.f32 %v1739_v43, %v1673_v42  ;;  %v479_v47 = vpop.f32.mrf.mxu0 }
  0xd9   :  { %v1027_v48 = vpop.f32.mrf.mxu1 }
  0xda   :  { %1393 = vst.msk [vmem:[#allocation2 + $0x38] sm:$0xff] %vm1385_vm2, %v1328_v44  ;;  %v1326_v49 = vmax.f32 %v1262_v45, 0.0  ;;  %v1267_v50 = vadd.f32 %v2182_v6, %v1036_v46  ;;  %v1028_v51 = vadd.f32 %v1027_v48, %v479_v47  ;;  %v1674_v52 = vpop.f32.mrf.mxu0 }
  0xdb   :  { %v1740_v53 = vpop.f32.mrf.mxu1 }
  0xdc   :  { %1391 = vst.msk [vmem:[#allocation2 + $0x28] sm:$0xff] %vm1385_vm2, %v1326_v49  ;;  %v1331_v54 = vmax.f32 %v1267_v50, 0.0  ;;  %v1265_v55 = vadd.f32 %v2182_v6, %v1028_v51  ;;  %v1039_v56 = vadd.f32 %v1740_v53, %v1674_v52  ;;  %v482_v57 = vpop.f32.mrf.mxu0 }
  0xdd   :  { %v1030_v58 = vpop.f32.mrf.mxu1 }
  0xde   :  { %1396 = vst.msk [vmem:[#allocation2 + $0x50] sm:$0xff] %vm1385_vm2, %v1331_v54  ;;  %v1329_v59 = vmax.f32 %v1265_v55, 0.0  ;;  %v1268_v60 = vadd.f32 %v2182_v6, %v1039_v56  ;;  %v1031_v61 = vadd.f32 %v1030_v58, %v482_v57  ;;  %v1677_v62 = vpop.f32.mrf.mxu0 }
  0xdf   :  { %v1743_v63 = vpop.f32.mrf.mxu1 }
  0xe0   :  { %1394 = vst.msk [vmem:[#allocation2 + $0x40] sm:$0xff] %vm1385_vm2, %v1329_v59  ;;  %v1332_v0 = vmax.f32 %v1268_v60, 0.0  ;;  %v1266_v1 = vadd.f32 %v2182_v6, %v1031_v61  ;;  %v1052_v2 = vadd.f32 %v1743_v63, %v1677_v62  ;;  %v495_v3 = vpop.f32.mrf.mxu0 }
  0xe1   :  { %v1043_v4 = vpop.f32.mrf.mxu1 }
  0xe2   :  { %1397 = vst.msk [vmem:[#allocation2 + $0x58] sm:$0xff] %vm1385_vm2, %v1332_v0  ;;  %v1330_v5 = vmax.f32 %v1266_v1, 0.0  ;;  %v1271_v7 = vadd.f32 %v2182_v6, %v1052_v2  ;;  %v1044_v8 = vadd.f32 %v1043_v4, %v495_v3  ;;  %v1678_v9 = vpop.f32.mrf.mxu0 }
  0xe3   :  { %v1744_v10 = vpop.f32.mrf.mxu1 }
  0xe4   :  { %1395 = vst.msk [vmem:[#allocation2 + $0x48] sm:$0xff] %vm1385_vm2, %v1330_v5  ;;  %v1335_v11 = vmax.f32 %v1271_v7, 0.0  ;;  %v1269_v12 = vadd.f32 %v2182_v6, %v1044_v8  ;;  %v1055_v13 = vadd.f32 %v1744_v10, %v1678_v9  ;;  %v498_v14 = vpop.f32.mrf.mxu0 }
  0xe5   :  { %v1046_v15 = vpop.f32.mrf.mxu1 }
  0xe6   :  { %1400 = vst.msk [vmem:[#allocation2 + $0x70] sm:$0xff] %vm1385_vm2, %v1335_v11  ;;  %v1333_v16 = vmax.f32 %v1269_v12, 0.0  ;;  %v1272_v17 = vadd.f32 %v2182_v6, %v1055_v13  ;;  %v1047_v18 = vadd.f32 %v1046_v15, %v498_v14  ;;  %v1681_v19 = vpop.f32.mrf.mxu0 }
  0xe7   :  { %v1747_v20 = vpop.f32.mrf.mxu1 }
  0xe8   :  { %1398 = vst.msk [vmem:[#allocation2 + $0x60] sm:$0xff] %vm1385_vm2, %v1333_v16  ;;  %v1336_v21 = vmax.f32 %v1272_v17, 0.0  ;;  %v1270_v22 = vadd.f32 %v2182_v6, %v1047_v18  ;;  %v1068_v23 = vadd.f32 %v1747_v20, %v1681_v19  ;;  %v511_v24 = vpop.f32.mrf.mxu0 }
  0xe9   :  { %v1059_v25 = vpop.f32.mrf.mxu1 }
  0xea   :  { %1401 = vst.msk [vmem:[#allocation2 + $0x78] sm:$0xff] %vm1385_vm2, %v1336_v21  ;;  %v1334_v26 = vmax.f32 %v1270_v22, 0.0  ;;  %v1275_v27 = vadd.f32 %v2182_v6, %v1068_v23  ;;  %v1060_v28 = vadd.f32 %v1059_v25, %v511_v24  ;;  %v1682_v29 = vpop.f32.mrf.mxu0 }
  0xeb   :  { %v1748_v30 = vpop.f32.mrf.mxu1 }
  0xec   :  { %1399 = vst.msk [vmem:[#allocation2 + $0x68] sm:$0xff] %vm1385_vm2, %v1334_v26  ;;  %v1339_v31 = vmax.f32 %v1275_v27, 0.0  ;;  %v1273_v32 = vadd.f32 %v2182_v6, %v1060_v28  ;;  %v1071_v33 = vadd.f32 %v1748_v30, %v1682_v29  ;;  %v514_v34 = vpop.f32.mrf.mxu0 }
  0xed   :  { %v1062_v35 = vpop.f32.mrf.mxu1 }
  0xee   :  { %1404 = vst.msk [vmem:[#allocation2 + $0x90] sm:$0xff] %vm1385_vm2, %v1339_v31  ;;  %v1337_v36 = vmax.f32 %v1273_v32, 0.0  ;;  %v1276_v37 = vadd.f32 %v2182_v6, %v1071_v33  ;;  %v1063_v38 = vadd.f32 %v1062_v35, %v514_v34  ;;  %v1685_v39 = vpop.f32.mrf.mxu0 }
  0xef   :  { %v1751_v40 = vpop.f32.mrf.mxu1 }
  0xf0   :  { %1402 = vst.msk [vmem:[#allocation2 + $0x80] sm:$0xff] %vm1385_vm2, %v1337_v36  ;;  %v1340_v41 = vmax.f32 %v1276_v37, 0.0  ;;  %v1274_v42 = vadd.f32 %v2182_v6, %v1063_v38  ;;  %v1084_v43 = vadd.f32 %v1751_v40, %v1685_v39  ;;  %v527_v44 = vpop.f32.mrf.mxu0 }
  0xf1   :  { %v1075_v45 = vpop.f32.mrf.mxu1 }
  0xf2   :  { %1405 = vst.msk [vmem:[#allocation2 + $0x98] sm:$0xff] %vm1385_vm2, %v1340_v41  ;;  %v1338_v46 = vmax.f32 %v1274_v42, 0.0  ;;  %v1279_v47 = vadd.f32 %v2182_v6, %v1084_v43  ;;  %v1076_v48 = vadd.f32 %v1075_v45, %v527_v44  ;;  %v1686_v49 = vpop.f32.mrf.mxu0 }
  0xf3   :  { %v1752_v50 = vpop.f32.mrf.mxu1 }
  0xf4   :  { %1403 = vst.msk [vmem:[#allocation2 + $0x88] sm:$0xff] %vm1385_vm2, %v1338_v46  ;;  %v1343_v51 = vmax.f32 %v1279_v47, 0.0  ;;  %v1277_v52 = vadd.f32 %v2182_v6, %v1076_v48  ;;  %v1087_v53 = vadd.f32 %v1752_v50, %v1686_v49  ;;  %v530_v54 = vpop.f32.mrf.mxu0 }
  0xf5   :  { %v1078_v55 = vpop.f32.mrf.mxu1 }
  0xf6   :  { %1408 = vst.msk [vmem:[#allocation2 + $0xb0] sm:$0xff] %vm1385_vm2, %v1343_v51  ;;  %v1341_v56 = vmax.f32 %v1277_v52, 0.0  ;;  %v1280_v57 = vadd.f32 %v2182_v6, %v1087_v53  ;;  %v1079_v58 = vadd.f32 %v1078_v55, %v530_v54  ;;  %v1689_v59 = vpop.f32.mrf.mxu0 }
  0xf7   :  { %v1755_v60 = vpop.f32.mrf.mxu1 }
  0xf8   :  { %1406 = vst.msk [vmem:[#allocation2 + $0xa0] sm:$0xff] %vm1385_vm2, %v1341_v56  ;;  %v1344_v61 = vmax.f32 %v1280_v57, 0.0  ;;  %v1278_v62 = vadd.f32 %v2182_v6, %v1079_v58  ;;  %v1100_v63 = vadd.f32 %v1755_v60, %v1689_v59  ;;  %v543_v0 = vpop.f32.mrf.mxu0 }
  0xf9   :  { %v1091_v1 = vpop.f32.mrf.mxu1 }
  0xfa   :  { %1409 = vst.msk [vmem:[#allocation2 + $0xb8] sm:$0xff] %vm1385_vm2, %v1344_v61  ;;  %v1342_v2 = vmax.f32 %v1278_v62, 0.0  ;;  %v1283_v3 = vadd.f32 %v2182_v6, %v1100_v63  ;;  %v1092_v4 = vadd.f32 %v1091_v1, %v543_v0  ;;  %v1690_v5 = vpop.f32.mrf.mxu0 }
  0xfb   :  { %v1756_v7 = vpop.f32.mrf.mxu1 }
  0xfc   :  { %1407 = vst.msk [vmem:[#allocation2 + $0xa8] sm:$0xff] %vm1385_vm2, %v1342_v2  ;;  %v1347_v8 = vmax.f32 %v1283_v3, 0.0  ;;  %v1281_v9 = vadd.f32 %v2182_v6, %v1092_v4  ;;  %v1103_v10 = vadd.f32 %v1756_v7, %v1690_v5  ;;  %v546_v11 = vpop.f32.mrf.mxu0 }
  0xfd   :  { %v1094_v12 = vpop.f32.mrf.mxu1 }
  0xfe   :  { %1412 = vst.msk [vmem:[#allocation2 + $0xd0] sm:$0xff] %vm1385_vm2, %v1347_v8  ;;  %v1345_v13 = vmax.f32 %v1281_v9, 0.0  ;;  %v1284_v14 = vadd.f32 %v2182_v6, %v1103_v10  ;;  %v1095_v15 = vadd.f32 %v1094_v12, %v546_v11  ;;  %v1693_v16 = vpop.f32.mrf.mxu0 }
  0xff   :  { %v1759_v17 = vpop.f32.mrf.mxu1 }
 0x100   :  { %1410 = vst.msk [vmem:[#allocation2 + $0xc0] sm:$0xff] %vm1385_vm2, %v1345_v13  ;;  %v1348_v18 = vmax.f32 %v1284_v14, 0.0  ;;  %v1282_v19 = vadd.f32 %v2182_v6, %v1095_v15  ;;  %v1116_v20 = vadd.f32 %v1759_v17, %v1693_v16  ;;  %v559_v21 = vpop.f32.mrf.mxu0 }
 0x101   :  { %v1107_v22 = vpop.f32.mrf.mxu1 }
 0x102   :  { %1413 = vst.msk [vmem:[#allocation2 + $0xd8] sm:$0xff] %vm1385_vm2, %v1348_v18  ;;  %v1346_v23 = vmax.f32 %v1282_v19, 0.0  ;;  %v1287_v24 = vadd.f32 %v2182_v6, %v1116_v20  ;;  %v1108_v25 = vadd.f32 %v1107_v22, %v559_v21  ;;  %v1694_v26 = vpop.f32.mrf.mxu0 }
 0x103   :  { %v1760_v27 = vpop.f32.mrf.mxu1 }
 0x104   :  { %1411 = vst.msk [vmem:[#allocation2 + $0xc8] sm:$0xff] %vm1385_vm2, %v1346_v23  ;;  %v1351_v28 = vmax.f32 %v1287_v24, 0.0  ;;  %v1285_v29 = vadd.f32 %v2182_v6, %v1108_v25  ;;  %v1119_v30 = vadd.f32 %v1760_v27, %v1694_v26  ;;  %v562_v31 = vpop.f32.mrf.mxu0 }
 0x105   :  { %v1110_v32 = vpop.f32.mrf.mxu1 }
 0x106   :  { %1416 = vst.msk [vmem:[#allocation2 + $0xf0] sm:$0xff] %vm1385_vm2, %v1351_v28  ;;  %v1349_v33 = vmax.f32 %v1285_v29, 0.0  ;;  %v1288_v34 = vadd.f32 %v2182_v6, %v1119_v30  ;;  %v1111_v35 = vadd.f32 %v1110_v32, %v562_v31  ;;  %v1697_v36 = vpop.f32.mrf.mxu0 }
 0x107   :  { %v1763_v37 = vpop.f32.mrf.mxu1 }
 0x108   :  { %1414 = vst.msk [vmem:[#allocation2 + $0xe0] sm:$0xff] %vm1385_vm2, %v1349_v33  ;;  %v1352_v38 = vmax.f32 %v1288_v34, 0.0  ;;  %v1286_v39 = vadd.f32 %v2182_v6, %v1111_v35  ;;  %v1132_v40 = vadd.f32 %v1763_v37, %v1697_v36  ;;  %v575_v41 = vpop.f32.mrf.mxu0 }
 0x109   :  { %v1123_v42 = vpop.f32.mrf.mxu1 }
 0x10a   :  { %1417 = vst.msk [vmem:[#allocation2 + $0xf8] sm:$0xff] %vm1385_vm2, %v1352_v38  ;;  %v1350_v43 = vmax.f32 %v1286_v39, 0.0  ;;  %v1291_v44 = vadd.f32 %v2182_v6, %v1132_v40  ;;  %v1124_v45 = vadd.f32 %v1123_v42, %v575_v41  ;;  %v1698_v46 = vpop.f32.mrf.mxu0 }
 0x10b   :  { %v1764_v47 = vpop.f32.mrf.mxu1 }
 0x10c   :  { %1415 = vst.msk [vmem:[#allocation2 + $0xe8] sm:$0xff] %vm1385_vm2, %v1350_v43  ;;  %v1355_v48 = vmax.f32 %v1291_v44, 0.0  ;;  %v1289_v49 = vadd.f32 %v2182_v6, %v1124_v45  ;;  %v1135_v50 = vadd.f32 %v1764_v47, %v1698_v46  ;;  %v578_v51 = vpop.f32.mrf.mxu0 }
 0x10d   :  { %v1126_v52 = vpop.f32.mrf.mxu1 }
 0x10e   :  { %1420 = vst.msk [vmem:[#allocation2 + $0x110] sm:$0xff] %vm1385_vm2, %v1355_v48  ;;  %v1353_v53 = vmax.f32 %v1289_v49, 0.0  ;;  %v1292_v54 = vadd.f32 %v2182_v6, %v1135_v50  ;;  %v1127_v55 = vadd.f32 %v1126_v52, %v578_v51  ;;  %v1701_v56 = vpop.f32.mrf.mxu0 }
 0x10f   :  { %v1767_v57 = vpop.f32.mrf.mxu1 }
 0x110   :  { %1418 = vst.msk [vmem:[#allocation2 + $0x100] sm:$0xff] %vm1385_vm2, %v1353_v53  ;;  %v1356_v58 = vmax.f32 %v1292_v54, 0.0  ;;  %v1290_v59 = vadd.f32 %v2182_v6, %v1127_v55  ;;  %v1148_v60 = vadd.f32 %v1767_v57, %v1701_v56  ;;  %v591_v61 = vpop.f32.mrf.mxu0 }
 0x111   :  { %v1139_v62 = vpop.f32.mrf.mxu1 }
 0x112   :  { %1421 = vst.msk [vmem:[#allocation2 + $0x118] sm:$0xff] %vm1385_vm2, %v1356_v58  ;;  %v1354_v63 = vmax.f32 %v1290_v59, 0.0  ;;  %v1295_v0 = vadd.f32 %v2182_v6, %v1148_v60  ;;  %v1140_v1 = vadd.f32 %v1139_v62, %v591_v61  ;;  %v1702_v2 = vpop.f32.mrf.mxu0 }
 0x113   :  { %v1768_v3 = vpop.f32.mrf.mxu1 }
 0x114   :  { %1419 = vst.msk [vmem:[#allocation2 + $0x108] sm:$0xff] %vm1385_vm2, %v1354_v63  ;;  %v1359_v4 = vmax.f32 %v1295_v0, 0.0  ;;  %v1293_v5 = vadd.f32 %v2182_v6, %v1140_v1  ;;  %v1151_v7 = vadd.f32 %v1768_v3, %v1702_v2  ;;  %v594_v8 = vpop.f32.mrf.mxu0 }
 0x115   :  { %v1142_v9 = vpop.f32.mrf.mxu1 }
 0x116   :  { %1424 = vst.msk [vmem:[#allocation2 + $0x130] sm:$0xff] %vm1385_vm2, %v1359_v4  ;;  %v1357_v10 = vmax.f32 %v1293_v5, 0.0  ;;  %v1296_v11 = vadd.f32 %v2182_v6, %v1151_v7  ;;  %v1143_v12 = vadd.f32 %v1142_v9, %v594_v8  ;;  %v1705_v13 = vpop.f32.mrf.mxu0 }
 0x117   :  { %v1771_v14 = vpop.f32.mrf.mxu1 }
 0x118   :  { %1422 = vst.msk [vmem:[#allocation2 + $0x120] sm:$0xff] %vm1385_vm2, %v1357_v10  ;;  %v1360_v15 = vmax.f32 %v1296_v11, 0.0  ;;  %v1294_v16 = vadd.f32 %v2182_v6, %v1143_v12  ;;  %v1164_v17 = vadd.f32 %v1771_v14, %v1705_v13  ;;  %v607_v18 = vpop.f32.mrf.mxu0 }
 0x119   :  { %v1155_v19 = vpop.f32.mrf.mxu1 }
 0x11a   :  { %1425 = vst.msk [vmem:[#allocation2 + $0x138] sm:$0xff] %vm1385_vm2, %v1360_v15  ;;  %v1358_v20 = vmax.f32 %v1294_v16, 0.0  ;;  %v1299_v21 = vadd.f32 %v2182_v6, %v1164_v17  ;;  %v1156_v22 = vadd.f32 %v1155_v19, %v607_v18  ;;  %v1706_v23 = vpop.f32.mrf.mxu0 }
 0x11b   :  { %v1772_v24 = vpop.f32.mrf.mxu1 }
 0x11c   :  { %1423 = vst.msk [vmem:[#allocation2 + $0x128] sm:$0xff] %vm1385_vm2, %v1358_v20  ;;  %v1363_v25 = vmax.f32 %v1299_v21, 0.0  ;;  %v1297_v26 = vadd.f32 %v2182_v6, %v1156_v22  ;;  %v1167_v27 = vadd.f32 %v1772_v24, %v1706_v23  ;;  %v610_v28 = vpop.f32.mrf.mxu0 }
 0x11d   :  { %v1158_v29 = vpop.f32.mrf.mxu1 }
 0x11e   :  { %1428 = vst.msk [vmem:[#allocation2 + $0x150] sm:$0xff] %vm1385_vm2, %v1363_v25  ;;  %v1361_v30 = vmax.f32 %v1297_v26, 0.0  ;;  %v1300_v31 = vadd.f32 %v2182_v6, %v1167_v27  ;;  %v1159_v32 = vadd.f32 %v1158_v29, %v610_v28  ;;  %v1709_v33 = vpop.f32.mrf.mxu0 }
 0x11f   :  { %v1775_v34 = vpop.f32.mrf.mxu1 }
 0x120   :  { %1426 = vst.msk [vmem:[#allocation2 + $0x140] sm:$0xff] %vm1385_vm2, %v1361_v30  ;;  %v1364_v35 = vmax.f32 %v1300_v31, 0.0  ;;  %v1298_v36 = vadd.f32 %v2182_v6, %v1159_v32  ;;  %v1180_v37 = vadd.f32 %v1775_v34, %v1709_v33  ;;  %v623_v38 = vpop.f32.mrf.mxu0 }
 0x121   :  { %v1171_v39 = vpop.f32.mrf.mxu1 }
 0x122   :  { %1429 = vst.msk [vmem:[#allocation2 + $0x158] sm:$0xff] %vm1385_vm2, %v1364_v35  ;;  %v1362_v40 = vmax.f32 %v1298_v36, 0.0  ;;  %v1303_v41 = vadd.f32 %v2182_v6, %v1180_v37  ;;  %v1172_v42 = vadd.f32 %v1171_v39, %v623_v38  ;;  %v1710_v43 = vpop.f32.mrf.mxu0 }
 0x123   :  { %v1776_v44 = vpop.f32.mrf.mxu1 }
 0x124   :  { %1427 = vst.msk [vmem:[#allocation2 + $0x148] sm:$0xff] %vm1385_vm2, %v1362_v40  ;;  %v1367_v45 = vmax.f32 %v1303_v41, 0.0  ;;  %v1301_v46 = vadd.f32 %v2182_v6, %v1172_v42  ;;  %v1183_v47 = vadd.f32 %v1776_v44, %v1710_v43  ;;  %v626_v48 = vpop.f32.mrf.mxu0 }
 0x125   :  { %v1174_v49 = vpop.f32.mrf.mxu1 }
 0x126   :  { %1432 = vst.msk [vmem:[#allocation2 + $0x170] sm:$0xff] %vm1385_vm2, %v1367_v45  ;;  %v1365_v50 = vmax.f32 %v1301_v46, 0.0  ;;  %v1304_v51 = vadd.f32 %v2182_v6, %v1183_v47  ;;  %v1175_v52 = vadd.f32 %v1174_v49, %v626_v48  ;;  %v1713_v53 = vpop.f32.mrf.mxu0 }
 0x127   :  { %v1779_v54 = vpop.f32.mrf.mxu1 }
 0x128   :  { %1430 = vst.msk [vmem:[#allocation2 + $0x160] sm:$0xff] %vm1385_vm2, %v1365_v50  ;;  %v1368_v55 = vmax.f32 %v1304_v51, 0.0  ;;  %v1302_v56 = vadd.f32 %v2182_v6, %v1175_v52  ;;  %v1196_v57 = vadd.f32 %v1779_v54, %v1713_v53  ;;  %v639_v58 = vpop.f32.mrf.mxu0 }
 0x129   :  { %v1187_v59 = vpop.f32.mrf.mxu1 }
 0x12a   :  { %1433 = vst.msk [vmem:[#allocation2 + $0x178] sm:$0xff] %vm1385_vm2, %v1368_v55  ;;  %v1366_v60 = vmax.f32 %v1302_v56, 0.0  ;;  %v1307_v61 = vadd.f32 %v2182_v6, %v1196_v57  ;;  %v1188_v62 = vadd.f32 %v1187_v59, %v639_v58  ;;  %v1714_v63 = vpop.f32.mrf.mxu0 }
 0x12b   :  { %v1780_v0 = vpop.f32.mrf.mxu1 }
 0x12c   :  { %1431 = vst.msk [vmem:[#allocation2 + $0x168] sm:$0xff] %vm1385_vm2, %v1366_v60  ;;  %v1371_v1 = vmax.f32 %v1307_v61, 0.0  ;;  %v1305_v2 = vadd.f32 %v2182_v6, %v1188_v62  ;;  %v1199_v3 = vadd.f32 %v1780_v0, %v1714_v63  ;;  %v642_v4 = vpop.f32.mrf.mxu0 }
 0x12d   :  { %v1190_v5 = vpop.f32.mrf.mxu1 }
 0x12e   :  { %1436 = vst.msk [vmem:[#allocation2 + $0x190] sm:$0xff] %vm1385_vm2, %v1371_v1  ;;  %v1369_v7 = vmax.f32 %v1305_v2, 0.0  ;;  %v1308_v8 = vadd.f32 %v2182_v6, %v1199_v3  ;;  %v1191_v9 = vadd.f32 %v1190_v5, %v642_v4  ;;  %v1717_v10 = vpop.f32.mrf.mxu0 }
 0x12f   :  { %v1783_v11 = vpop.f32.mrf.mxu1 }
 0x130   :  { %1434 = vst.msk [vmem:[#allocation2 + $0x180] sm:$0xff] %vm1385_vm2, %v1369_v7  ;;  %v1372_v12 = vmax.f32 %v1308_v8, 0.0  ;;  %v1306_v13 = vadd.f32 %v2182_v6, %v1191_v9  ;;  %v1212_v14 = vadd.f32 %v1783_v11, %v1717_v10  ;;  %v655_v15 = vpop.f32.mrf.mxu0 }
 0x131   :  { %v1203_v16 = vpop.f32.mrf.mxu1 }
 0x132   :  { %1437 = vst.msk [vmem:[#allocation2 + $0x198] sm:$0xff] %vm1385_vm2, %v1372_v12  ;;  %v1370_v17 = vmax.f32 %v1306_v13, 0.0  ;;  %v1311_v18 = vadd.f32 %v2182_v6, %v1212_v14  ;;  %v1204_v19 = vadd.f32 %v1203_v16, %v655_v15  ;;  %v1718_v20 = vpop.f32.mrf.mxu0 }
 0x133   :  { %v1784_v21 = vpop.f32.mrf.mxu1 }
 0x134   :  { %1435 = vst.msk [vmem:[#allocation2 + $0x188] sm:$0xff] %vm1385_vm2, %v1370_v17  ;;  %v1375_v22 = vmax.f32 %v1311_v18, 0.0  ;;  %v1309_v23 = vadd.f32 %v2182_v6, %v1204_v19  ;;  %v1215_v24 = vadd.f32 %v1784_v21, %v1718_v20  ;;  %v658_v25 = vpop.f32.mrf.mxu0 }
 0x135   :  { %v1206_v26 = vpop.f32.mrf.mxu1 }
 0x136   :  { %1440 = vst.msk [vmem:[#allocation2 + $0x1b0] sm:$0xff] %vm1385_vm2, %v1375_v22  ;;  %v1373_v27 = vmax.f32 %v1309_v23, 0.0  ;;  %v1312_v28 = vadd.f32 %v2182_v6, %v1215_v24  ;;  %v1207_v29 = vadd.f32 %v1206_v26, %v658_v25  ;;  %v1721_v30 = vpop.f32.mrf.mxu0 }
 0x137   :  { %v1787_v31 = vpop.f32.mrf.mxu1 }
 0x138   :  { %1438 = vst.msk [vmem:[#allocation2 + $0x1a0] sm:$0xff] %vm1385_vm2, %v1373_v27  ;;  %v1376_v32 = vmax.f32 %v1312_v28, 0.0  ;;  %v1310_v33 = vadd.f32 %v2182_v6, %v1207_v29  ;;  %v1228_v34 = vadd.f32 %v1787_v31, %v1721_v30  ;;  %v671_v35 = vpop.f32.mrf.mxu0 }
 0x139   :  { %v1219_v36 = vpop.f32.mrf.mxu1 }
 0x13a   :  { %1441 = vst.msk [vmem:[#allocation2 + $0x1b8] sm:$0xff] %vm1385_vm2, %v1376_v32  ;;  %v1374_v37 = vmax.f32 %v1310_v33, 0.0  ;;  %v1315_v38 = vadd.f32 %v2182_v6, %v1228_v34  ;;  %v1220_v39 = vadd.f32 %v1219_v36, %v671_v35  ;;  %v1722_v40 = vpop.f32.mrf.mxu0 }
 0x13b   :  { %v1788_v41 = vpop.f32.mrf.mxu1 }
 0x13c   :  { %1439 = vst.msk [vmem:[#allocation2 + $0x1a8] sm:$0xff] %vm1385_vm2, %v1374_v37  ;;  %v1379_v42 = vmax.f32 %v1315_v38, 0.0  ;;  %v1313_v43 = vadd.f32 %v2182_v6, %v1220_v39  ;;  %v1231_v44 = vadd.f32 %v1788_v41, %v1722_v40  ;;  %v674_v45 = vpop.f32.mrf.mxu0 }
 0x13d   :  { %v1222_v46 = vpop.f32.mrf.mxu1 }
 0x13e   :  { %1444 = vst.msk [vmem:[#allocation2 + $0x1d0] sm:$0xff] %vm1385_vm2, %v1379_v42  ;;  %v1377_v47 = vmax.f32 %v1313_v43, 0.0  ;;  %v1316_v48 = vadd.f32 %v2182_v6, %v1231_v44  ;;  %v1223_v49 = vadd.f32 %v1222_v46, %v674_v45  ;;  %v1725_v50 = vpop.f32.mrf.mxu0 }
 0x13f   :  { %v1791_v51 = vpop.f32.mrf.mxu1 }
 0x140   :  { %1442 = vst.msk [vmem:[#allocation2 + $0x1c0] sm:$0xff] %vm1385_vm2, %v1377_v47  ;;  %v1380_v52 = vmax.f32 %v1316_v48, 0.0  ;;  %v1314_v53 = vadd.f32 %v2182_v6, %v1223_v49  ;;  %v1244_v54 = vadd.f32 %v1791_v51, %v1725_v50  ;;  %v687_v55 = vpop.f32.mrf.mxu0 }
 0x141   :  { %v1235_v56 = vpop.f32.mrf.mxu1 }
 0x142   :  { %1445 = vst.msk [vmem:[#allocation2 + $0x1d8] sm:$0xff] %vm1385_vm2, %v1380_v52  ;;  %v1378_v57 = vmax.f32 %v1314_v53, 0.0  ;;  %v1319_v58 = vadd.f32 %v2182_v6, %v1244_v54  ;;  %v1236_v59 = vadd.f32 %v1235_v56, %v687_v55  ;;  %v1726_v60 = vpop.f32.mrf.mxu0 }
 0x143   :  { %v1792_v61 = vpop.f32.mrf.mxu1 }
 0x144   :  { %1443 = vst.msk [vmem:[#allocation2 + $0x1c8] sm:$0xff] %vm1385_vm2, %v1378_v57  ;;  %v1383_v62 = vmax.f32 %v1319_v58, 0.0  ;;  %v1317_v63 = vadd.f32 %v2182_v6, %v1236_v59  ;;  %v1247_v0 = vadd.f32 %v1792_v61, %v1726_v60  ;;  %v690_v1 = vpop.f32.mrf.mxu0 }
 0x145   :  { %v1238_v2 = vpop.f32.mrf.mxu1 }
 0x146   :  { %1448 = vst.msk [vmem:[#allocation2 + $0x1f0] sm:$0xff] %vm1385_vm2, %v1383_v62  ;;  %v1381_v3 = vmax.f32 %v1317_v63, 0.0  ;;  %v1320_v4 = vadd.f32 %v2182_v6, %v1247_v0  ;;  %v1239_v5 = vadd.f32 %v1238_v2, %v690_v1 }
 0x148   :  { %1446 = vst.msk [vmem:[#allocation2 + $0x1e0] sm:$0xff] %vm1385_vm2, %v1381_v3  ;;  %v1384_v7 = vmax.f32 %v1320_v4, 0.0  ;;  %v1318_v8 = vadd.f32 %v2182_v6, %v1239_v5 }
 0x14a   :  { %1449 = vst.msk [vmem:[#allocation2 + $0x1f8] sm:$0xff] %vm1385_vm2, %v1384_v7  ;;  %v1382_v9 = vmax.f32 %v1318_v8, 0.0 }
 0x14c   :  { %1447 = vst.msk [vmem:[#allocation2 + $0x1e8] sm:$0xff] %vm1385_vm2, %v1382_v9 }
 0x14d   :  { %1873 = shalt.err (!%p1870_p4)
}
 0x14e   :  { %s1885_s17 = smov 128   ;;  %s1886_s18 = smov 8  }
 0x14f   :  { %1461 = dma.vmem_to_hbm [thread:$0]  %s1456_s2, 8192, %s2320_s5, [#allocation3], %s1885_s17, %s1885_s17, %s1886_s18  }
 0x150   :  { %1882 = dma.done.wait [#allocation3], 8192  }
 0x151   :  { %1883 = vsyncadd [#allocation3], 4294959104 }
 0x152   :  { %1465 = vsyncpa [#allocation3], 1 }

// kernel: bottleneck_forward.4
= control target key start
LH: loop header
LB: loop body
LE: loop exit
PB: predicated region body
PF: predicated region fallthrough
CT: control target
= control target key end

     0   :  { %s4000_s12 = smov 0   ;;  %s5540_s0 = inlined_call_operand.vmem [shape: bf16[2,18,18,4], index: 0, kind: input, shape index: {}]   ;;  %s5541_s1 = inlined_call_operand.vmem [shape: bf16[9,4,4], index: 1, kind: input, shape index: {}]   ;;  %s5542_s2 = inlined_call_operand.vmem [shape: f32[1,4], index: 2, kind: input, shape index: {}]   ;;  %s5543_s3 = inlined_call_operand.vmem [shape: bf16[2,16,16,4], index: 3, kind: output, shape index: {}]  }
   0x1 LB: > { %s3174_s13 = sadd.s32 4294967295, %s3978_s12   ;;  %p3178_p0 = scmp.ge.s32.totalorder %s3978_s12, 1  ;;  %s3978_s12 = sphi %s4000_s12, %s13_s12  }
   0x2   : > { %p137_p1 = scmp.lt.s32.totalorder %s3978_s12, 3 }
   0x4   : > { %p138_p2 = pnand %p3178_p0, %p137_p1 }
   0x6   : > { %141 = sbr.rel (%p138_p2) target bundleno = 558 (0x22e), region = 32 }
   0xb   : > { %v3182_v0 = vld [vmem:[%s5541_s1 + $0x2] sm:$0x3]  ;;  %vm713_vm0 = vcmask 1041408   ;;  %p161_p3 = scmp.lt.s32.totalorder %s3174_s13, 1  ;;  %v226_v2 = vld [vmem:[%s5541_s1] sm:$0x3] }
   0xc   : > { %3936 = vmatprep.subr.msk.bf16.mxu1 %vm713_vm0, %v3182_v0  ;;  %3935 = vmatprep.subr.msk.bf16.mxu0 %vm713_vm0, %v3182_v0  ;;  %v715_v1 = vsel %vm713_vm0, %v3182_v0, 0  ;;  %v3263_v3 = vld [vmem:[%s5541_s1 + $0x4] sm:$0x3]  ;;  %vm227_vm1 = vsmask.f32 3328  ;;  %v4031_v4 = vsel %vm713_vm0, %v226_v2, 0 }
   0xd   : > { %3934 = vmatpush3.bf16.msra.mxu1 %v715_v1  ;;  %3628 = vmatpush3.bf16.msra.mxu0 %v715_v1  ;;  %s5749_s13 = smov (!%p161_p3, %s3174_s13), 1  ;;  %vm228_vm2 = vsmask.f32 7440  ;;  %v4034_v5 = vsel %vm713_vm0, %v3263_v3, 0  ;;  %vm664_vm3 = vcmask 31744   ;;  %v5587_v32 = vmov 0 }
   0xe   : > { %3937 = vmatprep.subr.msk.bf16.mxu1 %vm713_vm0, %v226_v2  ;;  %3938 = vmatprep.subr.msk.bf16.mxu0 %vm713_vm0, %v3263_v3  ;;  %s3945_s20 = smul.u32 216, %s5749_s13  ;;  %vm4073_vm4 = vmor %vm227_vm1, %vm228_vm2  ;;  %vm1186_vm5 = vcmask 1042432   ;;  %vm1187_vm6 = vcmask 1046532   ;;  %s3441_s11 = sshll.u32 %s5749_s13, 7  ;;  %vm3086_vm8 = vcmask 27648  }
   0xf   : > { %v5588_v32 = vsel %vm4073_vm4, 4294967295, %v5587_v32  ;;  %vm4396_vm7 = vmor %vm1186_vm5, %vm1187_vm6  ;;  %s5367_s15 = scalar_lea.vmem %s5543_s3, %s3441_s11 }
  0x10   : > { %s4028_s23 = scalar_lea.vmem %s5540_s0, %s3945_s20  ;;  %5589 = vst [vmem:[#allocation2_spill] sm:$0xff] %v5588_v32 }
  0x11   : > { %v4037_v6 = vld [vmem:[%s4028_s23] sm:$0xf]  ;;  %v4040_v7 = vld [vmem:[%s4028_s23 + $0x4] sm:$0xf]  ;;  %v4043_v8 = vld [vmem:[%s4028_s23 + $0x8] sm:$0x1] }
  0x12   : > { %v231_v9 = vshrl.u32 %v4037_v6, 16  ;;  %v234_v10 = vshll.u32 %v4037_v6, 16  ;;  %v240_v11 = vshll.u32 %v4040_v7, 16  ;;  %v244_v12 = vshrl.u32 %v4040_v7, 16  ;;  %v4050_v13 = vld [vmem:[%s4028_s23 + $0x60] sm:$0xf] }
  0x13   : > { %v250_v14 = vshll.u32 %v4043_v8, 16  ;;  %v4055_v16 = vld [vmem:[%s4028_s23 + $0x64] sm:$0xf]  ;;  %v4058_v17 = vld [vmem:[%s4028_s23 + $0x68] sm:$0x1]  ;;  %v423_v23 = vshrl.u32 %v4050_v13, 16 }
  0x14   : > { %v233_v18 = vrot.slane %v231_v9, 4  ;;  %v236_v19 = vrot.slane %v234_v10, 5  ;;  %v242_v20 = vrot.slane %v240_v11, 5  ;;  %v246_v21 = vrot.slane %v244_v12, 4  ;;  %v4066_v30 = vld [vmem:[%s4028_s23 + $0xc] sm:$0xf] }
  0x15   : > { %v252_v22 = vrot.slane %v250_v14, 5  ;;  %v426_v24 = vshll.u32 %v4050_v13, 16  ;;  %v432_v25 = vshll.u32 %v4055_v16, 16  ;;  %v436_v28 = vshrl.u32 %v4055_v16, 16  ;;  %v4069_v31 = vld [vmem:[%s4028_s23 + $0x10] sm:$0xf] }
  0x16   : > { %v237_v26 = vor.u32 %v236_v19, %v233_v18  ;;  %v247_v27 = vor.u32 %v246_v21, %v242_v20  ;;  %v442_v29 = vshll.u32 %v4058_v17, 16  ;;  %v425_v33 = vrot.slane %v423_v23, 4  ;;  %v4080_v42 = vld [vmem:[%s4028_s23 + $0x14] sm:$0x1]  ;;  %v4091_v54 = vld [vmem:[%s4028_s23 + $0x6c] sm:$0xf] }
  0x17   : > { %v428_v34 = vrot.slane %v426_v24, 5  ;;  %v434_v35 = vrot.slane %v432_v25, 5  ;;  %v438_v39 = vrot.slane %v436_v28, 4  ;;  %v255_v43 = vshrl.u32 %v4066_v30, 16  ;;  %5590 = vst [vmem:[#allocation3_spill] sm:$0xff] %v4091_v54 }
  0x18   : > { %v238_v37 = vrot.slane %v237_v26, 4  ;;  %v248_v38 = vrot.slane %v247_v27, 4  ;;  %v444_v40 = vrot.slane %v442_v29, 5  ;;  %v258_v44 = vshll.u32 %v4066_v30, 16  ;;  %v4095_v59 = vld [vmem:[%s4028_s23 + $0x70] sm:$0xf] }
  0x19   : > { %v429_v41 = vor.u32 %v428_v34, %v425_v33  ;;  %v264_v45 = vshll.u32 %v4069_v31, 16  ;;  %v439_v48 = vor.u32 %v438_v39, %v434_v35  ;;  %v268_v49 = vshrl.u32 %v4069_v31, 16  ;;  %v4103_v0 = vld [vmem:[%s4028_s23 + $0x74] sm:$0x1]  ;;  %v4109_v10 = vld [vmem:[%s4028_s23 + $0x18] sm:$0xf] }
  0x1a   : > { %v243_v46 = vsel %vm4073_vm4, %v238_v37, %v242_v20  ;;  %v253_v47 = vsel %vm4073_vm4, %v248_v38, %v252_v22  ;;  %v257_v52 = vrot.slane %v255_v43, 4  ;;  %v260_v53 = vrot.slane %v258_v44, 5  ;;  %5591 = vst [vmem:[#allocation4_spill] sm:$0xff] %v4103_v0  ;;  %v4118_v23 = vld [vmem:[%s4028_s23 + $0x1c] sm:$0xf] }
  0x1b   : > { %v3183_v50 = vcombine.low %v243_v46, %v253_v47  ;;  %v430_v51 = vrot.slane %v429_v41, 4  ;;  %v440_v55 = vrot.slane %v439_v48, 4  ;;  %v266_v56 = vrot.slane %v264_v45, 5  ;;  %v4125_v27 = vld [vmem:[%s4028_s23 + $0x20] sm:$0x1] }
  0x1c   : > { %v270_v57 = vrot.slane %v268_v49, 4  ;;  %v274_v58 = vshll.u32 %v4080_v42, 16  ;;  %v261_v61 = vor.u32 %v260_v53, %v257_v52  ;;  %v447_v9 = vshrl.u32 %v4091_v54, 16  ;;  %v4132_v37 = vld [vmem:[%s4028_s23 + $0x78] sm:$0xf] }
  0x1d   : > { %3629 = vmatprep.mubr.msk.bf16.mxu0 %vm664_vm3, %v3183_v50  ;;  %v435_v60 = vsel %vm4073_vm4, %v430_v51, %v434_v35  ;;  %v445_v1 = vsel %vm4073_vm4, %v440_v55, %v444_v40  ;;  %v450_v14 = vshll.u32 %v4091_v54, 16  ;;  %v456_v18 = vshll.u32 %v4095_v59, 16  ;;  %5593 = vst [vmem:[#allocation6_spill] sm:$0xff] %v4132_v37  ;;  %v4140_v43 = vld [vmem:[%s5541_s1 + $0x8] sm:$0x3] }
  0x1e   : > { %v271_v2 = vor.u32 %v270_v57, %v266_v56  ;;  %v276_v3 = vrot.slane %v274_v58, 5  ;;  %v4111_v11 = vcombine.low %v435_v60, %v445_v1  ;;  %v262_v12 = vrot.slane %v261_v61, 4  ;;  %v4145_v48 = vld [vmem:[%s4028_s23 + $0x7c] sm:$0xf]  ;;  %v4153_v58 = vld [vmem:[%s4028_s23 + $0x80] sm:$0x1] }
  0x1f   : > { %v449_v20 = vrot.slane %v447_v9, 4  ;;  %v460_v21 = vshrl.u32 %v4095_v59, 16  ;;  %v466_v22 = vshll.u32 %v4103_v0, 16  ;;  %v452_v25 = vrot.slane %v450_v14, 5  ;;  %5595 = vst [vmem:[#allocation8_spill] sm:$0xff] %v4145_v48  ;;  %5596 = vst [vmem:[#allocation9_spill] sm:$0xff] %v4153_v58 }
  0x20   : > { %5592 = vst [vmem:[#allocation5_spill] sm:$0xff] %v4111_v11  ;;  %v272_v19 = vrot.slane %v271_v2, 4  ;;  %3645 = vmatprep.mubr.msk.bf16.mxu1 %vm664_vm3, %v4111_v11  ;;  %v267_v24 = vsel %vm4073_vm4, %v262_v12, %v266_v56  ;;  %v458_v26 = vrot.slane %v456_v18, 5  ;;  %v279_v28 = vshrl.u32 %v4109_v10, 16  ;;  %v4167_v18 = vld [vmem:[%s4028_s23 + $0x28] sm:$0xf] }
  0x21   : > { %v462_v33 = vrot.slane %v460_v21, 4  ;;  %v468_v34 = vrot.slane %v466_v22, 5  ;;  %v282_v35 = vshll.u32 %v4109_v10, 16  ;;  %v453_v39 = vor.u32 %v452_v25, %v449_v20 }
  0x22   : > { %v277_v29 = vsel %vm4073_vm4, %v272_v19, %v276_v3  ;;  %v281_v40 = vrot.slane %v279_v28, 4  ;;  %v288_v41 = vshll.u32 %v4118_v23, 16  ;;  %v292_v46 = vshrl.u32 %v4118_v23, 16  ;;  %v4159_v3 = vld [vmem:[%s4028_s23 + $0x24] sm:$0xf] }
  0x23   : > { %v4134_v38 = vcombine.low %v267_v24, %v277_v29  ;;  %v463_v44 = vor.u32 %v462_v33, %v458_v26  ;;  %v284_v45 = vrot.slane %v282_v35, 5  ;;  %v298_v47 = vshll.u32 %v4125_v27, 16  ;;  %v4175_v24 = vld [vmem:[%s5541_s1 + $0x6] sm:$0x3]  ;;  %v4180_v29 = vld [vmem:[%s4028_s23 + $0x2c] sm:$0x1] }
  0x24   : > { %v454_v49 = vrot.slane %v453_v39, 4  ;;  %v290_v50 = vrot.slane %v288_v41, 5  ;;  %v471_v51 = vshrl.u32 %v4132_v37, 16  ;;  %v474_v52 = vshll.u32 %v4132_v37, 16  ;;  %v4188_v41 = vld [vmem:[%s4028_s23 + $0x84] sm:$0xf] }
  0x25   : > { %5594 = vst [vmem:[#allocation7_spill] sm:$0xff] %v4134_v38  ;;  %3630 = vmatmul.mubr.msk.bf16.vlgmr.msra.gmra.mxu0 %vm664_vm3, %v4134_v38  ;;  %v464_v53 = vrot.slane %v463_v44, 4  ;;  %v285_v55 = vor.u32 %v284_v45, %v281_v40  ;;  %v294_v56 = vrot.slane %v292_v46, 4  ;;  %v300_v57 = vrot.slane %v298_v47, 5  ;;  %v4335_v38 = vld [vmem:[%s4028_s23 + $0xb0] sm:$0x1] }
  0x26   : > { %3696 = vmatpush3.bf16.msra.mxu0 %v4034_v5  ;;  %v459_v60 = vsel %vm4073_vm4, %v454_v49, %v458_v26  ;;  %v473_v61 = vrot.slane %v471_v51, 4  ;;  %v476_v1 = vrot.slane %v474_v52, 5  ;;  %v480_v2 = vshll.u32 %v4145_v48, 16  ;;  %v4195_v49 = vld [vmem:[%s4028_s23 + $0x88] sm:$0xf]  ;;  %5608 = vst [vmem:[#allocation21_spill] sm:$0xff] %v4335_v38 }
  0x27   : > { %3940 = vmatprep.subr.msk.bf16.mxu0 %vm713_vm0, %v4140_v43  ;;  %v469_v5 = vsel %vm4073_vm4, %v464_v53, %v468_v34  ;;  %v286_v9 = vrot.slane %v285_v55, 4  ;;  %v295_v12 = vor.u32 %v294_v56, %v290_v50  ;;  %v484_v14 = vshrl.u32 %v4145_v48, 16  ;;  %v4357_v48 = vld [vmem:[%s4028_s23 + $0x5c] sm:$0x1] }
  0x28   : > { %v4169_v19 = vcombine.low %v459_v60, %v469_v5  ;;  %v477_v20 = vor.u32 %v476_v1, %v473_v61  ;;  %v482_v21 = vrot.slane %v480_v2, 5  ;;  %v490_v22 = vshll.u32 %v4153_v58, 16 }
  0x29   : > { %v291_v25 = vsel %vm4073_vm4, %v286_v9, %v290_v50  ;;  %v296_v26 = vrot.slane %v295_v12, 4  ;;  %v486_v28 = vrot.slane %v484_v14, 4  ;;  %v303_v33 = vshrl.u32 %v4159_v3, 16  ;;  %v4214_v9 = vld [vmem:[%s4028_s23 + $0x30] sm:$0xf] }
  0x2a   : > { %5597 = vst [vmem:[#allocation10_spill] sm:$0xff] %v4169_v19  ;;  %3646 = vmatmul.mubr.msk.bf16.vlgmr.msra.gmra.mxu1 %vm664_vm3, %v4169_v19  ;;  %v478_v34 = vrot.slane %v477_v20, 4  ;;  %v492_v35 = vrot.slane %v490_v22, 5  ;;  %v306_v39 = vshll.u32 %v4159_v3, 16  ;;  %v312_v40 = vshll.u32 %v4167_v18, 16 }
  0x2b   : > { %3662 = vmatpush3.bf16.msra.mxu1 %v4031_v4  ;;  %v301_v44 = vsel %vm4073_vm4, %v296_v26, %v300_v57  ;;  %v487_v45 = vor.u32 %v486_v28, %v482_v21  ;;  %v305_v46 = vrot.slane %v303_v33, 4  ;;  %v316_v47 = vshrl.u32 %v4167_v18, 16  ;;  %v4205_v57 = vld [vmem:[%s4028_s23 + $0x8c] sm:$0x1]  ;;  %v4219_v22 = vld [vmem:[%s4028_s23 + $0x34] sm:$0xf] }
  0x2c   : > { %v4197_v50 = vcombine.low %v291_v25, %v301_v44  ;;  %v483_v51 = vsel %vm4073_vm4, %v478_v34, %v482_v21  ;;  %v308_v52 = vrot.slane %v306_v39, 5  ;;  %v314_v53 = vrot.slane %v312_v40, 5  ;;  %3939 = vmatprep.subr.msk.bf16.mxu1 %vm713_vm0, %v4175_v24 }
  0x2d   : > { %v488_v4 = vrot.slane %v487_v45, 4  ;;  %v318_v55 = vrot.slane %v316_v47, 4  ;;  %v322_v56 = vshll.u32 %v4180_v29, 16  ;;  %v495_v60 = vshrl.u32 %v4188_v41, 16 }
  0x2e   : > { %5598 = vst [vmem:[#allocation11_spill] sm:$0xff] %v4197_v50  ;;  %3633 = vmatprep.mubr.msk.bf16.mxu0 %vm664_vm3, %v4197_v50  ;;  %v309_v61 = vor.u32 %v308_v52, %v305_v46  ;;  %v498_v1 = vshll.u32 %v4188_v41, 16  ;;  %v504_v2 = vshll.u32 %v4195_v49, 16  ;;  %v508_v5 = vshrl.u32 %v4195_v49, 16  ;;  %v4230_v46 = vld [vmem:[%s4028_s23 + $0x38] sm:$0x1] }
  0x2f   : > { %v493_v12 = vsel %vm4073_vm4, %v488_v4, %v492_v35  ;;  %v319_v14 = vor.u32 %v318_v55, %v314_v53  ;;  %v324_v20 = vrot.slane %v322_v56, 5  ;;  %v497_v21 = vrot.slane %v495_v60, 4  ;;  %v4235_v52 = vld [vmem:[%s4028_s23 + $0x90] sm:$0xf] }
  0x30   : > { %v4221_v25 = vcombine.low %v483_v51, %v493_v12  ;;  %v310_v26 = vrot.slane %v309_v61, 4  ;;  %v500_v28 = vrot.slane %v498_v1, 5  ;;  %v506_v33 = vrot.slane %v504_v2, 5  ;;  %v4240_v61 = vld [vmem:[%s4028_s23 + $0x94] sm:$0xf] }
  0x31   : > { %v320_v34 = vrot.slane %v319_v14, 4  ;;  %v510_v39 = vrot.slane %v508_v5, 4  ;;  %v514_v40 = vshll.u32 %v4205_v57, 16  ;;  %v327_v44 = vshrl.u32 %v4214_v9, 16 }
  0x32   : > { %5599 = vst [vmem:[#allocation12_spill] sm:$0xff] %v4221_v25  ;;  %3649 = vmatprep.mubr.msk.bf16.mxu1 %vm664_vm3, %v4221_v25  ;;  %v315_v35 = vsel %vm4073_vm4, %v310_v26, %v314_v53  ;;  %v501_v45 = vor.u32 %v500_v28, %v497_v21  ;;  %v330_v47 = vshll.u32 %v4214_v9, 16  ;;  %v336_v51 = vshll.u32 %v4219_v22, 16  ;;  %v4286_v25 = vld [vmem:[%s4028_s23 + $0xa0] sm:$0xf] }
  0x33   : > { %v325_v4 = vsel %vm4073_vm4, %v320_v34, %v324_v20  ;;  %v511_v55 = vor.u32 %v510_v39, %v506_v33  ;;  %v516_v56 = vrot.slane %v514_v40, 5  ;;  %v329_v60 = vrot.slane %v327_v44, 4  ;;  %v4252_v34 = vld [vmem:[%s4028_s23 + $0x98] sm:$0x1]  ;;  %v4257_v44 = vld [vmem:[%s4028_s23 + $0x3c] sm:$0xf] }
  0x34   : > { %v4242_v53 = vcombine.low %v315_v35, %v325_v4  ;;  %v502_v1 = vrot.slane %v501_v45, 4  ;;  %v332_v2 = vrot.slane %v330_v47, 5  ;;  %v338_v5 = vrot.slane %v336_v51, 5  ;;  %v4262_v4 = vld [vmem:[%s4028_s23 + $0x40] sm:$0xf] }
  0x35   : > { %v512_v12 = vrot.slane %v511_v55, 4  ;;  %v340_v14 = vshrl.u32 %v4219_v22, 16  ;;  %v346_v21 = vshll.u32 %v4230_v46, 16  ;;  %v519_v20 = vshrl.u32 %v4235_v52, 16 }
  0x36   : > { %5600 = vst [vmem:[#allocation13_spill] sm:$0xff] %v4242_v53  ;;  %3634 = vmatmul.mubr.msk.bf16.gmra.mxu0 %vm664_vm3, %v4242_v53  ;;  %v507_v26 = vsel %vm4073_vm4, %v502_v1, %v506_v33  ;;  %v333_v28 = vor.u32 %v332_v2, %v329_v60  ;;  %v522_v39 = vshll.u32 %v4235_v52, 16  ;;  %v528_v40 = vshll.u32 %v4240_v61, 16 }
  0x37   : > { %v517_v35 = vsel %vm4073_vm4, %v512_v12, %v516_v56  ;;  %v342_v45 = vrot.slane %v340_v14, 4  ;;  %v348_v47 = vrot.slane %v346_v21, 5  ;;  %v521_v51 = vrot.slane %v519_v20, 4  ;;  %v4274_v14 = vld [vmem:[%s4028_s23 + $0x44] sm:$0x1] }
  0x38   : > { %v4264_v33 = vcombine.low %v507_v26, %v517_v35  ;;  %v334_v55 = vrot.slane %v333_v28, 4  ;;  %v524_v60 = vrot.slane %v522_v39, 5  ;;  %v530_v1 = vrot.slane %v528_v40, 5  ;;  %v4279_v26 = vld [vmem:[%s4028_s23 + $0x9c] sm:$0xf] }
  0x39   : > { %v343_v2 = vor.u32 %v342_v45, %v338_v5  ;;  %v532_v36 = vshrl.u32 %v4240_v61, 16  ;;  %v538_v63 = vshll.u32 %v4252_v34, 16  ;;  %v351_v15 = vshrl.u32 %v4257_v44, 16 }
  0x3a   : > { %5601 = vst [vmem:[#allocation14_spill] sm:$0xff] %v4264_v33  ;;  %3650 = vmatmul.mubr.msk.bf16.gmra.mxu1 %vm664_vm3, %v4264_v33  ;;  %v339_v56 = vsel %vm4073_vm4, %v334_v55, %v338_v5  ;;  %v525_v12 = vor.u32 %v524_v60, %v521_v51  ;;  %v354_v21 = vshll.u32 %v4257_v44, 16  ;;  %v360_v20 = vshll.u32 %v4262_v4, 16 }
  0x3b   : > { %v344_v28 = vrot.slane %v343_v2, 4  ;;  %v534_v39 = vrot.slane %v532_v36, 4  ;;  %v540_v40 = vrot.slane %v538_v63, 5  ;;  %v353_v35 = vrot.slane %v351_v15, 4 }
  0x3c   : > { %v526_v45 = vrot.slane %v525_v12, 4  ;;  %v356_v62 = vrot.slane %v354_v21, 5  ;;  %v362_v33 = vrot.slane %v360_v20, 5  ;;  %v364_v5 = vshrl.u32 %v4262_v4, 16  ;;  %v4294_v21 = vld [vmem:[%s4028_s23 + $0xa4] sm:$0x1] }
  0x3d   : > { %v349_v51 = vsel %vm4073_vm4, %v344_v28, %v348_v47  ;;  %v535_v55 = vor.u32 %v534_v39, %v530_v1  ;;  %v370_v60 = vshll.u32 %v4274_v14, 16  ;;  %v543_v2 = vshrl.u32 %v4279_v26, 16  ;;  %5603 = vst [vmem:[#allocation16_spill] sm:$0xff] %v4294_v21  ;;  %v4297_v20 = vld [vmem:[%s4028_s23 + $0x48] sm:$0xf] }
  0x3e   : > { %v4289_v36 = vcombine.low %v339_v56, %v349_v51  ;;  %v531_v15 = vsel %vm4073_vm4, %v526_v45, %v530_v1  ;;  %v357_v63 = vor.u32 %v356_v62, %v353_v35  ;;  %v366_v12 = vrot.slane %v364_v5, 4 }
  0x3f   : > { %v536_v47 = vrot.slane %v535_v55, 4  ;;  %v372_v28 = vrot.slane %v370_v60, 5  ;;  %v545_v39 = vrot.slane %v543_v2, 4  ;;  %v546_v19 = vshll.u32 %v4279_v26, 16  ;;  %v4308_v55 = vld [vmem:[%s4028_s23 + $0x4c] sm:$0xf] }
  0x40   : > { %5602 = vst [vmem:[#allocation15_spill] sm:$0xff] %v4289_v36  ;;  %3637 = vmatprep.mubr.msk.bf16.mxu0 %vm664_vm3, %v4289_v36  ;;  %v358_v56 = vrot.slane %v357_v63, 4  ;;  %v367_v51 = vor.u32 %v366_v12, %v362_v33  ;;  %v552_v1 = vshll.u32 %v4286_v25, 16  ;;  %v556_v62 = vshrl.u32 %v4286_v25, 16  ;;  %v4316_v36 = vld [vmem:[%s4028_s23 + $0x50] sm:$0x1] }
  0x41   : > { %v541_v35 = vsel %vm4073_vm4, %v536_v47, %v540_v40  ;;  %v548_v45 = vrot.slane %v546_v19, 5  ;;  %v562_v5 = vshll.u32 %v4294_v21, 16  ;;  %v375_v60 = vshrl.u32 %v4297_v20, 16  ;;  %v4319_v47 = vld [vmem:[%s4028_s23 + $0xa8] sm:$0xf] }
  0x42   : > { %v4311_v2 = vcombine.low %v531_v15, %v541_v35  ;;  %v363_v63 = vsel %vm4073_vm4, %v358_v56, %v362_v33  ;;  %v368_v12 = vrot.slane %v367_v51, 4  ;;  %v554_v11 = vrot.slane %v552_v1, 5  ;;  %5605 = vst [vmem:[#allocation18_spill] sm:$0xff] %v4319_v47 }
  0x43   : > { %v549_v53 = vor.u32 %v548_v45, %v545_v39  ;;  %v558_v50 = vrot.slane %v556_v62, 4  ;;  %v564_v40 = vrot.slane %v562_v5, 5  ;;  %v377_v19 = vrot.slane %v375_v60, 4  ;;  %v4332_v45 = vld [vmem:[%s4028_s23 + $0xac] sm:$0xf] }
  0x44   : > { %5604 = vst [vmem:[#allocation17_spill] sm:$0xff] %v4311_v2  ;;  %3653 = vmatprep.mubr.msk.bf16.mxu1 %vm664_vm3, %v4311_v2  ;;  %v373_v15 = vsel %vm4073_vm4, %v368_v12, %v372_v28  ;;  %v378_v33 = vshll.u32 %v4297_v20, 16  ;;  %v384_v56 = vshll.u32 %v4308_v55, 16  ;;  %v388_v51 = vshrl.u32 %v4308_v55, 16  ;;  %5607 = vst [vmem:[#allocation20_spill] sm:$0xff] %v4332_v45 }
  0x45   : > { %v4328_v1 = vcombine.low %v363_v63, %v373_v15  ;;  %v550_v39 = vrot.slane %v549_v53, 4  ;;  %v559_v62 = vor.u32 %v558_v50, %v554_v11  ;;  %v394_v35 = vshll.u32 %v4316_v36, 16 }
  0x46   : > { %v380_v5 = vrot.slane %v378_v33, 5  ;;  %v386_v60 = vrot.slane %v384_v56, 5  ;;  %v390_v2 = vrot.slane %v388_v51, 4  ;;  %v567_v28 = vshrl.u32 %v4319_v47, 16  ;;  %v4345_v51 = vld [vmem:[%s4028_s23 + $0x54] sm:$0xf] }
  0x47   : > { %5606 = vst [vmem:[#allocation19_spill] sm:$0xff] %v4328_v1  ;;  %3638 = vmatmul.mubr.msk.bf16.gmra.mxu0 %vm664_vm3, %v4328_v1  ;;  %v555_v53 = vsel %vm4073_vm4, %v550_v39, %v554_v11  ;;  %v560_v50 = vrot.slane %v559_v62, 4  ;;  %v396_v63 = vrot.slane %v394_v35, 5  ;;  %v570_v12 = vshll.u32 %v4319_v47, 16  ;;  %v4352_v62 = vld [vmem:[%s4028_s23 + $0x58] sm:$0xf] }
  0x48   : > { %v381_v15 = vor.u32 %v380_v5, %v377_v19  ;;  %v391_v58 = vor.u32 %v390_v2, %v386_v60  ;;  %v569_v33 = vrot.slane %v567_v28, 4  ;;  %v576_v56 = vshll.u32 %v4332_v45, 16 }
  0x49   : > { %v565_v1 = vsel %vm4073_vm4, %v560_v50, %v564_v40  ;;  %v572_v37 = vrot.slane %v570_v12, 5  ;;  %v580_v11 = vshrl.u32 %v4332_v45, 16  ;;  %v586_v39 = vshll.u32 %v4335_v38, 16 }
  0x4a   : > { %v4354_v2 = vcombine.low %v555_v53, %v565_v1  ;;  %v382_v19 = vrot.slane %v381_v15, 4  ;;  %v392_v35 = vrot.slane %v391_v58, 4  ;;  %v578_v5 = vrot.slane %v576_v56, 5 }
  0x4b   : > { %v573_v28 = vor.u32 %v572_v37, %v569_v33  ;;  %v582_v0 = vrot.slane %v580_v11, 4  ;;  %v588_v54 = vrot.slane %v586_v39, 5  ;;  %v399_v40 = vshrl.u32 %v4345_v51, 16  ;;  %v4369_v37 = vld [vmem:[%s4028_s23 + $0xb4] sm:$0xf] }
  0x4c   : > { %5609 = vst [vmem:[#allocation22_spill] sm:$0xff] %v4354_v2  ;;  %3654 = vmatmul.mubr.msk.bf16.gmra.mxu1 %vm664_vm3, %v4354_v2  ;;  %v387_v50 = vsel %vm4073_vm4, %v382_v19, %v386_v60  ;;  %v397_v1 = vsel %vm4073_vm4, %v392_v35, %v396_v63  ;;  %v402_v58 = vshll.u32 %v4345_v51, 16  ;;  %v408_v53 = vshll.u32 %v4352_v62, 16  ;;  %5610 = vst [vmem:[#allocation23_spill] sm:$0xff] %v4369_v37  ;;  %v4374_v11 = vld [vmem:[%s4028_s23 + $0xb8] sm:$0xf] }
  0x4d   : > { %v4371_v12 = vcombine.low %v387_v50, %v397_v1  ;;  %v574_v15 = vrot.slane %v573_v28, 4  ;;  %v583_v33 = vor.u32 %v582_v0, %v578_v5  ;;  %v401_v56 = vrot.slane %v399_v40, 4 }
  0x4e   : > { %v404_v39 = vrot.slane %v402_v58, 5  ;;  %v410_v2 = vrot.slane %v408_v53, 5  ;;  %v412_v60 = vshrl.u32 %v4352_v62, 16  ;;  %v418_v63 = vshll.u32 %v4357_v48, 16  ;;  %v4385_v58 = vld [vmem:[%s4028_s23 + $0xbc] sm:$0x1] }
  0x4f   : > { %5611 = vst [vmem:[#allocation24_spill] sm:$0xff] %v4371_v12  ;;  %3641 = vmatprep.mubr.msk.bf16.mxu0 %vm664_vm3, %v4371_v12  ;;  %v579_v19 = vsel %vm4073_vm4, %v574_v15, %v578_v5  ;;  %v584_v35 = vrot.slane %v583_v33, 4  ;;  %v591_v28 = vshrl.u32 %v4369_v37, 16  ;;  %v594_v0 = vshll.u32 %v4369_v37, 16 }
  0x50   : > { %v405_v40 = vor.u32 %v404_v39, %v401_v56  ;;  %v414_v50 = vrot.slane %v412_v60, 4  ;;  %v420_v1 = vrot.slane %v418_v63, 5  ;;  %v600_v53 = vshll.u32 %v4374_v11, 16 }
  0x51   : > { %v589_v38 = vsel %vm4073_vm4, %v584_v35, %v588_v54  ;;  %v593_v47 = vrot.slane %v591_v28, 4  ;;  %v596_v12 = vrot.slane %v594_v0, 5  ;;  %v604_v45 = vshrl.u32 %v4374_v11, 16 }
  0x52   : > { %v4391_v5 = vcombine.low %v579_v19, %v589_v38  ;;  %v406_v15 = vrot.slane %v405_v40, 4  ;;  %v415_v33 = vor.u32 %v414_v50, %v410_v2  ;;  %v602_v21 = vrot.slane %v600_v53, 5 }
  0x53   : > { %v597_v37 = vor.u32 %v596_v12, %v593_v47  ;;  %v606_v56 = vrot.slane %v604_v45, 4  ;;  %v610_v39 = vshll.u32 %v4385_v58, 16  ;;  %v3247_v54 = vrot.slane %v4037_v6, 9 }
  0x54   : > { %3657 = vmatprep.mubr.msk.bf16.mxu1 %vm664_vm3, %v4391_v5  ;;  %v411_v38 = vsel %vm4073_vm4, %v406_v15, %v410_v2  ;;  %v416_v63 = vrot.slane %v415_v33, 4  ;;  %v1191_v47 = vrot.slane %v4040_v7, 5  ;;  %v4408_v45 = vcombine.low %v4066_v30, %v4069_v31 }
  0x55   : > { %v598_v12 = vrot.slane %v597_v37, 4  ;;  %v607_v19 = vor.u32 %v606_v56, %v602_v21  ;;  %v612_v35 = vrot.slane %v610_v39, 5  ;;  %v3248_v28 = vrot.slane %v4066_v30, 9 }
  0x56   : > { %v421_v0 = vsel %vm4073_vm4, %v416_v63, %v420_v1  ;;  %v1192_v40 = vsel %vm4396_vm7, %v3247_v54, %v1191_v47  ;;  %v1193_v50 = vrot.slane %v1191_v47, 4  ;;  %v5614_v2 = vrot.slane %v4069_v31, 5 }
  0x57   : > { %v4417_v15 = vcombine.low %v411_v38, %v421_v0  ;;  %v603_v33 = vsel %vm4073_vm4, %v598_v12, %v602_v21  ;;  %v608_v37 = vrot.slane %v607_v19, 4  ;;  %v5616_v1 = vrot.slane %v4043_v8, 5 }
  0x58   : > { %v1200_v53 = vrot.slane %v5614_v2, 4  ;;  %v5615_v56 = vmov %v5614_v2  ;;  %v5617_v54 = vrot.slane %v4080_v42, 5  ;;  %v4435_v63 = vcombine.low %v4109_v10, %v4118_v23 }
  0x59   : > { %v1199_v30 = vsel %vm4396_vm7, %v3248_v28, %v5615_v56  ;;  %v1195_v39 = vsel %vm4396_vm7, %v1193_v50, %v5616_v1  ;;  %v3249_v21 = vrot.slane %v4109_v10, 9  ;;  %3642 = vmatmul.mubr.msk.bf16.gmra.mxu0 %vm664_vm3, %v4417_v15  ;;  %v613_v8 = vsel %vm4073_vm4, %v608_v37, %v612_v35 }
  0x5a   : > { %v1202_v38 = vsel %vm4396_vm7, %v1200_v53, %v5617_v54  ;;  %v3264_v31 = vcombine.low %v1192_v40, %v1195_v39  ;;  %v1205_v42 = vrot.slane %v4118_v23, 5  ;;  %v4445_v12 = vcombine.low %v603_v33, %v613_v8 }
  0x5b   : > { %v4442_v47 = vcombine.low %v1199_v30, %v1202_v38  ;;  %v1208_v19 = vrot.slane %v4125_v27, 5  ;;  %v1212_v0 = vrot.slane %v4167_v18, 5  ;;  %v3250_v35 = vrot.slane %v4159_v3, 9 }
  0x5c   : > { %5618 = vst [vmem:[#allocation25_spill] sm:$0xff] %v4445_v12  ;;  %3697 = vmatprep.mubr.msk.bf16.mxu0 %vm664_vm3, %v3264_v31  ;;  %v1206_v10 = vsel %vm4396_vm7, %v3249_v21, %v1205_v42  ;;  %v1207_v28 = vrot.slane %v1205_v42, 4  ;;  %3658 = vmatmul.mubr.msk.bf16.gmra.mxu1 %vm664_vm3, %v4445_v12  ;;  %v3251_v40 = vrot.slane %v4214_v9, 9  ;;  %v1219_v23 = vrot.slane %v4219_v22, 5 }
  0x5d   : > { %v5619_v27 = vcombine.low %v4037_v6, %v4040_v7  ;;  %v1214_v2 = vrot.slane %v1212_v0, 4  ;;  %v1215_v53 = vrot.slane %v4180_v29, 5  ;;  %v1222_v33 = vrot.slane %v4230_v46, 5  ;;  %v4480_v46 = vld [vmem:[%s5541_s1 + $0xc] sm:$0x3] }
  0x5e   : > { %v1209_v50 = vsel %vm4396_vm7, %v1207_v28, %v1208_v19  ;;  %v1221_v56 = vrot.slane %v1219_v23, 4  ;;  %v1834_v30 = vsel %vm713_vm0, %v4140_v43, 0  ;;  %v1226_v1 = vrot.slane %v4262_v4, 5  ;;  %v4497_v19 = vld [vmem:[%s5541_s1 + $0xa] sm:$0x3] }
  0x5f   : > { %3663 = vmatprep.mubr.msk.bf16.mxu1 %vm664_vm3, %v5619_v27  ;;  %v4465_v37 = vcombine.low %v1206_v10, %v1209_v50  ;;  %v1606_v6 = vsel %vm713_vm0, %v4175_v24, 0  ;;  %v1213_v7 = vsel %vm4396_vm7, %v3250_v35, %v1212_v0  ;;  %v1220_v39 = vsel %vm4396_vm7, %v3251_v40, %v1219_v23 }
  0x60   : > { %v1233_v29 = vrot.slane %v4308_v55, 5  ;;  %v1216_v43 = vsel %vm4396_vm7, %v1214_v2, %v1215_v53  ;;  %v1223_v24 = vsel %vm4396_vm7, %v1221_v56, %v1222_v33  ;;  %v3252_v54 = vrot.slane %v4257_v44, 9 }
  0x61   : > { %3698 = vmatmul.mubr.msk.bf16.vlgmr.msra.gmra.mxu0 %vm664_vm3, %v4442_v47  ;;  %v1229_v38 = vrot.slane %v4274_v14, 5  ;;  %v1228_v21 = vrot.slane %v1226_v1, 4  ;;  %v3253_v8 = vrot.slane %v4297_v20, 9  ;;  %v1236_v42 = vrot.slane %v4316_v36, 5 }
  0x62   : > { %3764 = vmatpush3.bf16.msra.mxu0 %v1834_v30  ;;  %3701 = vmatprep.mubr.msk.bf16.mxu0 %vm664_vm3, %v4465_v37  ;;  %v1235_v31 = vrot.slane %v1233_v29, 4  ;;  %v4505_v14 = vcombine.low %v1213_v7, %v1216_v43  ;;  %v4507_v10 = vcombine.low %v1220_v39, %v1223_v24  ;;  %v1227_v36 = vsel %vm4396_vm7, %v3252_v54, %v1226_v1 }
  0x63   : > { %3942 = vmatprep.subr.msk.bf16.mxu0 %vm713_vm0, %v4480_v46  ;;  %v1230_v28 = vsel %vm4396_vm7, %v1228_v21, %v1229_v38  ;;  %v1234_v0 = vsel %vm4396_vm7, %v3253_v8, %v1233_v29  ;;  %v1240_v40 = vrot.slane %v4352_v62, 5  ;;  %v1250_v23 = vrot.slane %v4058_v17, 5  ;;  %v5620_v8 = vld [vmem:[#allocation16_spill] sm:$0xff] }
  0x64   : > { %3664 = vmatmul.mubr.msk.bf16.vlgmr.msra.gmra.mxu1 %vm664_vm3, %v4408_v45  ;;  %v1237_v35 = vsel %vm4396_vm7, %v1235_v31, %v1236_v42  ;;  %v3254_v27 = vrot.slane %v4345_v51, 9  ;;  %v3255_v50 = vrot.slane %v4050_v13, 9  ;;  %v1247_v2 = vrot.slane %v4055_v16, 5  ;;  %v5621_v42 = vld [vmem:[#allocation20_spill] sm:$0xff] }
  0x65   : > { %3730 = vmatpush3.bf16.msra.mxu1 %v1606_v6  ;;  %3667 = vmatprep.mubr.msk.bf16.mxu1 %vm664_vm3, %v4435_v63  ;;  %v4526_v53 = vcombine.low %v4159_v3, %v4167_v18  ;;  %v4530_v33 = vcombine.low %v4214_v9, %v4219_v22  ;;  %v4534_v56 = vcombine.low %v4257_v44, %v4262_v4  ;;  %v1243_v3 = vrot.slane %v4357_v48, 5 }
  0x66   : > { %3941 = vmatprep.subr.msk.bf16.mxu1 %vm713_vm0, %v4497_v19  ;;  %v4538_v17 = vcombine.low %v4297_v20, %v4308_v55  ;;  %v4542_v30 = vcombine.low %v1227_v36, %v1230_v28  ;;  %v4544_v1 = vcombine.low %v1234_v0, %v1237_v35  ;;  %v4549_v18 = vcombine.low %v4188_v41, %v4195_v49  ;;  %v5622_v36 = vld [vmem:[#allocation18_spill] sm:$0xff] }
  0x67   : > { %v1242_v9 = vrot.slane %v1240_v40, 4  ;;  %v3258_v22 = vrot.slane %v4188_v41, 9  ;;  %v1268_v44 = vrot.slane %v4195_v49, 5  ;;  %v1271_v4 = vrot.slane %v4205_v57, 5 }
  0x68   : > { %v1241_v20 = vsel %vm4396_vm7, %v3254_v27, %v1240_v40  ;;  %v1248_v48 = vsel %vm4396_vm7, %v3255_v50, %v1247_v2  ;;  %v1249_v55 = vrot.slane %v1247_v2, 4  ;;  %v4562_v6 = vcombine.low %v4235_v52, %v4240_v61  ;;  %v5623_v40 = vld [vmem:[#allocation21_spill] sm:$0xff] }
  0x69   : > { %3702 = vmatmul.mubr.msk.bf16.gmra.mxu0 %vm664_vm3, %v4505_v14  ;;  %v1269_v41 = vsel %vm4396_vm7, %v3258_v22, %v1268_v44  ;;  %v1270_v49 = vrot.slane %v1268_v44, 4  ;;  %v3259_v57 = vrot.slane %v4235_v52, 9  ;;  %v1275_v7 = vrot.slane %v4240_v61, 5 }
  0x6a   : > { %3705 = vmatprep.mubr.msk.bf16.mxu0 %vm664_vm3, %v4507_v10  ;;  %v1254_v39 = vrot.slane %v4095_v59, 5  ;;  %v1278_v29 = vrot.slane %v4252_v34, 5  ;;  %v4576_v43 = vcombine.low %v4279_v26, %v4286_v25  ;;  %v3260_v24 = vrot.slane %v4279_v26, 9 }
  0x6b   : > { %v1244_v54 = vsel %vm4396_vm7, %v1242_v9, %v1243_v3  ;;  %v1272_v52 = vsel %vm4396_vm7, %v1270_v49, %v1271_v4  ;;  %v1276_v61 = vsel %vm4396_vm7, %v3259_v57, %v1275_v7  ;;  %v1277_v38 = vrot.slane %v1275_v7, 4  ;;  %v5624_v3 = vld [vmem:[#allocation23_spill] sm:$0xff]  ;;  %v5625_v57 = vld [vmem:[#allocation8_spill] sm:$0xff] }
  0x6c   : > { %3668 = vmatmul.mubr.msk.bf16.gmra.mxu1 %vm664_vm3, %v4526_v53  ;;  %v4585_v21 = vcombine.low %v1269_v41, %v1272_v52  ;;  %v1282_v34 = vrot.slane %v4286_v25, 5  ;;  %v1285_v31 = vrot.slane %v5620_v8, 5  ;;  %v4591_v28 = vcombine.low %v5622_v36, %v5621_v42 }
  0x6d   : > { %3671 = vmatprep.mubr.msk.bf16.mxu1 %vm664_vm3, %v4530_v33  ;;  %v1279_v26 = vsel %vm4396_vm7, %v1277_v38, %v1278_v29  ;;  %v3261_v0 = vrot.slane %v5622_v36, 9  ;;  %v1289_v35 = vrot.slane %v5621_v42, 5  ;;  %v1292_v27 = vrot.slane %v5623_v40, 5  ;;  %v5627_v42 = vld [vmem:[#allocation4_spill] sm:$0xff] }
  0x6e   : > { %v4600_v50 = vcombine.low %v1276_v61, %v1279_v26  ;;  %v1283_v25 = vsel %vm4396_vm7, %v3260_v24, %v1282_v34  ;;  %v1284_v2 = vrot.slane %v1282_v34, 4  ;;  %v4606_v9 = vcombine.low %v5624_v3, %v4374_v11 }
  0x6f   : > { %v1290_v22 = vsel %vm4396_vm7, %v3261_v0, %v1289_v35  ;;  %v1291_v44 = vrot.slane %v1289_v35, 4  ;;  %v3262_v4 = vrot.slane %v5624_v3, 9  ;;  %v1296_v41 = vrot.slane %v4374_v11, 5  ;;  %v5628_v0 = vld [vmem:[#allocation6_spill] sm:$0xff] }
  0x70   : > { %v1251_v49 = vsel %vm4396_vm7, %v1249_v55, %v1250_v23  ;;  %v1261_v7 = vrot.slane %v5625_v57, 5  ;;  %v1286_v29 = vsel %vm4396_vm7, %v1284_v2, %v1285_v31  ;;  %v1299_v24 = vrot.slane %v4385_v58, 5  ;;  %v5626_v55 = vld [vmem:[#allocation3_spill] sm:$0xff] }
  0x71   : > { %3706 = vmatmul.mubr.msk.bf16.gmra.mxu0 %vm664_vm3, %v4542_v30  ;;  %v4622_v52 = vcombine.low %v1283_v25, %v1286_v29  ;;  %v1293_v61 = vsel %vm4396_vm7, %v1291_v44, %v1292_v27  ;;  %v1297_v11 = vsel %vm4396_vm7, %v3262_v4, %v1296_v41  ;;  %v1298_v38 = vrot.slane %v1296_v41, 4  ;;  %v5629_v27 = vld [vmem:[#allocation9_spill] sm:$0xff]  ;;  %v4709_v4 = vld [vmem:[%s4028_s23 + $0xc0] sm:$0xf]  ;;  %v222_v41 = vld [vmem:[%s4028_s23 + $0xc8] sm:$0x1] }
  0x72   : > { %3709 = vmatprep.mubr.msk.bf16.mxu0 %vm664_vm3, %v4544_v1  ;;  %v4630_v23 = vcombine.low %v1241_v20, %v1244_v54  ;;  %v3256_v34 = vrot.slane %v5626_v55, 9  ;;  %v4633_v58 = vcombine.low %v1290_v22, %v1293_v61  ;;  %v4635_v8 = vcombine.low %v1248_v48, %v1251_v49  ;;  %v5630_v61 = vld [vmem:[#allocation7_spill] sm:$0xff] }
  0x73   : > { %v1256_v31 = vrot.slane %v1254_v39, 4  ;;  %v1257_v36 = vrot.slane %v5627_v42, 5  ;;  %v1300_v26 = vsel %vm4396_vm7, %v1298_v38, %v1299_v24  ;;  %v3257_v35 = vrot.slane %v5628_v0, 9  ;;  %v5632_v42 = vld [vmem:[#allocation13_spill] sm:$0xff] }
  0x74   : > { %3672 = vmatmul.mubr.msk.bf16.gmra.mxu1 %vm664_vm3, %v4534_v56  ;;  %v1263_v40 = vrot.slane %v1261_v7, 4  ;;  %v1264_v25 = vrot.slane %v5629_v27, 5  ;;  %v4642_v2 = vcombine.low %v1297_v11, %v1300_v26  ;;  %v4646_v20 = vcombine.low %v4345_v51, %v4352_v62  ;;  %v5636_v26 = vld [vmem:[#allocation5_spill] sm:$0xff] }
  0x75   : > { %3675 = vmatprep.mubr.msk.bf16.mxu1 %vm664_vm3, %v4538_v17  ;;  %v4652_v48 = vcombine.low %v4050_v13, %v4055_v16  ;;  %v1255_v54 = vsel %vm4396_vm7, %v3256_v34, %v1254_v39  ;;  %v1258_v3 = vsel %vm4396_vm7, %v1256_v31, %v1257_v36  ;;  %v1262_v51 = vsel %vm4396_vm7, %v3257_v35, %v1261_v7  ;;  %v5631_v34 = vld [vmem:[#allocation11_spill] sm:$0xff]  ;;  %v5635_v36 = vld [vmem:[#allocation24_spill] sm:$0xff] }
  0x76   : > { %v1265_v62 = vsel %vm4396_vm7, %v1263_v40, %v1264_v25  ;;  %v4668_v13 = vcombine.low %v1255_v54, %v1258_v3  ;;  %v4674_v39 = vcombine.low %v5626_v55, %v4095_v59  ;;  %v4680_v22 = vcombine.low %v5628_v0, %v5625_v57  ;;  %v4703_v59 = vld [vmem:[%s4028_s23 + $0xc4] sm:$0xf]  ;;  %v3388_v55 = vld [vmem:[%s5541_s1 + $0x10] sm:$0x3] }
  0x77   : > { %v4670_v16 = vcombine.low %v1262_v51, %v1265_v62  ;;  %v2032_v44 = vrot.slane %v4703_v59, 5  ;;  %v3332_v49 = vrot.slane %v4709_v4, 9  ;;  %v2035_v7 = vrot.slane %v222_v41, 5  ;;  %v5637_v0 = vld [vmem:[#allocation10_spill] sm:$0xff]  ;;  %v5638_v35 = vld [vmem:[#allocation12_spill] sm:$0xff] }
  0x78   : > { %v2252_v38 = vsel %vm713_vm0, %v4480_v46, 0  ;;  %v2046_v31 = vsel %vm713_vm0, %v4497_v19, 0  ;;  %v5633_v46 = vld [vmem:[#allocation15_spill] sm:$0xff]  ;;  %v5639_v40 = vld [vmem:[#allocation14_spill] sm:$0xff]  ;;  %v1802_v27 = vshrl.u32 %v4709_v4, 16  ;;  %v1805_v25 = vshll.u32 %v4709_v4, 16 }
  0x79   : > { %3710 = vmatmul.mubr.msk.bf16.gmra.mxu0 %vm664_vm3, %v4630_v23  ;;  %v2034_v57 = vrot.slane %v2032_v44, 4  ;;  %v2033_v29 = vsel %vm4396_vm7, %v3332_v49, %v2032_v44  ;;  %v5634_v19 = vld [vmem:[#allocation19_spill] sm:$0xff]  ;;  %v1815_v54 = vshrl.u32 %v4703_v59, 16  ;;  %v1811_v3 = vshll.u32 %v4703_v59, 16 }
  0x7a   : > { %3713 = vmatprep.mubr.msk.bf16.mxu0 %vm664_vm3, %v4635_v8  ;;  %v1804_v51 = vrot.slane %v1802_v27, 4  ;;  %v1807_v62 = vrot.slane %v1805_v25, 5 }
  0x7b   : > { %v2036_v24 = vsel %vm4396_vm7, %v2034_v57, %v2035_v7  ;;  %v1813_v44 = vrot.slane %v1811_v3, 5  ;;  %v1817_v49 = vrot.slane %v1815_v54, 4  ;;  %v5640_v57 = vld [vmem:[#allocation17_spill] sm:$0xff]  ;;  %v5641_v7 = vld [vmem:[#allocation22_spill] sm:$0xff]  ;;  %v3297_v3 = vcombine.low %v4709_v4, %v4703_v59 }
  0x7c   : > { %3676 = vmatmul.mubr.msk.bf16.gmra.mxu1 %vm664_vm3, %v4646_v20  ;;  %v4721_v11 = vcombine.low %v2033_v29, %v2036_v24  ;;  %v1808_v29 = vor.u32 %v1807_v62, %v1804_v51  ;;  %v2692_v51 = vsel %vm713_vm0, %v3388_v55, 0 }
  0x7d   : > { %3679 = vmatprep.mubr.msk.bf16.mxu1 %vm664_vm3, %v4652_v48  ;;  %v1818_v24 = vor.u32 %v1817_v49, %v1813_v44 }
  0x81   : > { %3714 = vmatmul.mubr.msk.bf16.gmra.mxu0 %vm664_vm3, %v4668_v13 }
  0x82   : > { %3717 = vmatprep.mubr.msk.bf16.mxu0 %vm664_vm3, %v4670_v16 }
  0x84   : > { %3680 = vmatmul.mubr.msk.bf16.gmra.mxu1 %vm664_vm3, %v4674_v39 }
  0x85   : > { %3683 = vmatprep.mubr.msk.bf16.mxu1 %vm664_vm3, %v4680_v22 }
  0x89   : > { %3718 = vmatmul.mubr.msk.bf16.gmra.mxu0 %vm664_vm3, %v4585_v21 }
  0x8a   : > { %3721 = vmatprep.mubr.msk.bf16.mxu0 %vm664_vm3, %v4600_v50 }
  0x8c   : > { %3684 = vmatmul.mubr.msk.bf16.gmra.mxu1 %vm664_vm3, %v4549_v18 }
  0x8d   : > { %3687 = vmatprep.mubr.msk.bf16.mxu1 %vm664_vm3, %v4562_v6 }
  0x91   : > { %3722 = vmatmul.mubr.msk.bf16.gmra.mxu0 %vm664_vm3, %v4622_v52 }
  0x92   : > { %3725 = vmatprep.mubr.msk.bf16.mxu0 %vm664_vm3, %v4633_v58 }
  0x94   : > { %3688 = vmatmul.mubr.msk.bf16.gmra.mxu1 %vm664_vm3, %v4576_v43 }
  0x95   : > { %3691 = vmatprep.mubr.msk.bf16.mxu1 %vm664_vm3, %v4591_v28 }
  0x99   : > { %3726 = vmatmul.mubr.msk.bf16.gmra.mxu0 %vm664_vm3, %v4642_v2 }
  0x9a   : > { %3765 = vmatprep.mubr.msk.bf16.mxu0 %vm664_vm3, %v5630_v61  ;;  %v1821_v61 = vshll.u32 %v222_v41, 16 }
  0x9c   : > { %3692 = vmatmul.mubr.msk.bf16.gmra.mxu1 %vm664_vm3, %v4606_v9  ;;  %v1823_v27 = vrot.slane %v1821_v61, 5  ;;  %v4913_v61 = vld [vmem:[%s4028_s23 + $0xd0] sm:$0xf] }
  0x9d   : > { %3731 = vmatprep.mubr.msk.bf16.mxu1 %vm664_vm3, %v4408_v45  ;;  %v3369_v45 = vld [vmem:[%s5541_s1 + $0xe] sm:$0x3] }
  0x9e   : > { %v2480_v62 = vsel %vm713_vm0, %v3369_v45, 0 }
  0xa1   : > { %3766 = vmatmul.mubr.msk.bf16.vlgmr.msra.gmra.mxu0 %vm664_vm3, %v5631_v34 }
  0xa2   : > { %3832 = vmatpush3.bf16.msra.mxu0 %v2252_v38  ;;  %3769 = vmatprep.mubr.msk.bf16.mxu0 %vm664_vm3, %v5632_v42  ;;  %v1809_v38 = vrot.slane %v1808_v29, 4 }
  0xa3   : > { %3944 = vmatprep.subr.msk.bf16.mxu0 %vm713_vm0, %v3388_v55 }
  0xa4   : > { %3732 = vmatmul.mubr.msk.bf16.vlgmr.msra.gmra.mxu1 %vm664_vm3, %v4435_v63  ;;  %v1814_v25 = vsel %vm4073_vm4, %v1809_v38, %v1813_v44 }
  0xa5   : > { %3798 = vmatpush3.bf16.msra.mxu1 %v2046_v31  ;;  %3735 = vmatprep.mubr.msk.bf16.mxu1 %vm664_vm3, %v4526_v53  ;;  %v1819_v31 = vrot.slane %v1818_v24, 4 }
  0xa6   : > { %3943 = vmatprep.subr.msk.bf16.mxu1 %vm713_vm0, %v3369_v45 }
  0xa7   : > { %v1824_v41 = vsel %vm4073_vm4, %v1819_v31, %v1823_v27 }
  0xa8   : > { %v4803_v54 = vcombine.low %v1814_v25, %v1824_v41 }
  0xa9   : > { %3770 = vmatmul.mubr.msk.bf16.gmra.mxu0 %vm664_vm3, %v5633_v46 }
  0xaa   : > { %3773 = vmatprep.mubr.msk.bf16.mxu0 %vm664_vm3, %v5634_v19  ;;  %5642 = vst [vmem:[#allocation16_spill] sm:$0xff] %v4803_v54 }
  0xac   : > { %3736 = vmatmul.mubr.msk.bf16.gmra.mxu1 %vm664_vm3, %v4530_v33 }
  0xad   : > { %3739 = vmatprep.mubr.msk.bf16.mxu1 %vm664_vm3, %v4534_v56 }
  0xb1   : > { %3774 = vmatmul.mubr.msk.bf16.gmra.mxu0 %vm664_vm3, %v5635_v36 }
  0xb2   : > { %3777 = vmatprep.mubr.msk.bf16.mxu0 %vm664_vm3, %v4417_v15 }
  0xb4   : > { %3740 = vmatmul.mubr.msk.bf16.gmra.mxu1 %vm664_vm3, %v4538_v17 }
  0xb5   : > { %3743 = vmatprep.mubr.msk.bf16.mxu1 %vm664_vm3, %v4646_v20 }
  0xb9   : > { %3778 = vmatmul.mubr.msk.bf16.gmra.mxu0 %vm664_vm3, %v5636_v26 }
  0xba   : > { %3781 = vmatprep.mubr.msk.bf16.mxu0 %vm664_vm3, %v5637_v0 }
  0xbc   : > { %3744 = vmatmul.mubr.msk.bf16.gmra.mxu1 %vm664_vm3, %v4652_v48 }
  0xbd   : > { %3747 = vmatprep.mubr.msk.bf16.mxu1 %vm664_vm3, %v4674_v39 }
  0xc1   : > { %3782 = vmatmul.mubr.msk.bf16.gmra.mxu0 %vm664_vm3, %v5638_v35 }
  0xc2   : > { %3785 = vmatprep.mubr.msk.bf16.mxu0 %vm664_vm3, %v5639_v40 }
  0xc4   : > { %3748 = vmatmul.mubr.msk.bf16.gmra.mxu1 %vm664_vm3, %v4680_v22 }
  0xc5   : > { %3751 = vmatprep.mubr.msk.bf16.mxu1 %vm664_vm3, %v4549_v18 }
  0xc9   : > { %3786 = vmatmul.mubr.msk.bf16.gmra.mxu0 %vm664_vm3, %v5640_v57 }
  0xca   : > { %3789 = vmatprep.mubr.msk.bf16.mxu0 %vm664_vm3, %v5641_v7 }
  0xcc   : > { %3752 = vmatmul.mubr.msk.bf16.gmra.mxu1 %vm664_vm3, %v4562_v6 }
  0xcd   : > { %3755 = vmatprep.mubr.msk.bf16.mxu1 %vm664_vm3, %v4576_v43 }
  0xd1   : > { %3790 = vmatmul.mubr.msk.bf16.gmra.mxu0 %vm664_vm3, %v4391_v5 }
  0xd2   : > { %3793 = vmatprep.mubr.msk.bf16.mxu0 %vm664_vm3, %v4445_v12 }
  0xd4   : > { %3756 = vmatmul.mubr.msk.bf16.gmra.mxu1 %vm664_vm3, %v4591_v28 }
  0xd5   : > { %3759 = vmatprep.mubr.msk.bf16.mxu1 %vm664_vm3, %v4606_v9 }
  0xd9   : > { %3794 = vmatmul.mubr.msk.bf16.gmra.mxu0 %vm664_vm3, %v4803_v54 }
  0xda   : > { %3833 = vmatprep.mubr.msk.bf16.mxu0 %vm664_vm3, %v4435_v63 }
  0xdc   : > { %3760 = vmatmul.mubr.msk.bf16.gmra.mxu1 %vm664_vm3, %v3297_v3 }
  0xdd   : > { %3799 = vmatprep.mubr.msk.bf16.mxu1 %vm664_vm3, %v4442_v47 }
  0xe1   : > { %3834 = vmatmul.mubr.msk.bf16.vlgmr.msra.gmra.mxu0 %vm664_vm3, %v4526_v53 }
  0xe2   : > { %3900 = vmatpush3.bf16.msra.mxu0 %v2692_v51  ;;  %3837 = vmatprep.mubr.msk.bf16.mxu0 %vm664_vm3, %v4530_v33 }
  0xe4   : > { %3800 = vmatmul.mubr.msk.bf16.vlgmr.msra.gmra.mxu1 %vm664_vm3, %v4465_v37 }
  0xe5   : > { %3866 = vmatpush3.bf16.msra.mxu1 %v2480_v62  ;;  %3803 = vmatprep.mubr.msk.bf16.mxu1 %vm664_vm3, %v4505_v14  ;;  %v4826_v63 = vpop.f32.mrf.mxu0 }
  0xe7   : > { %v4836_v53 = vpop.f32.mrf.mxu0 }
  0xe9   : > { %3838 = vmatmul.mubr.msk.bf16.gmra.mxu0 %vm664_vm3, %v4534_v56  ;;  %v4842_v56 = vpop.f32.mrf.mxu0 }
  0xea   : > { %3841 = vmatprep.mubr.msk.bf16.mxu0 %vm664_vm3, %v4538_v17  ;;  %v4832_v47 = vpop.f32.mrf.mxu1 }
  0xeb   : > { %v4852_v59 = vpop.f32.mrf.mxu0 }
  0xec   : > { %3804 = vmatmul.mubr.msk.bf16.gmra.mxu1 %vm664_vm3, %v4507_v10  ;;  %v4838_v33 = vpop.f32.mrf.mxu1 }
  0xed   : > { %3807 = vmatprep.mubr.msk.bf16.mxu1 %vm664_vm3, %v4542_v30 }
  0xee   : > { %v4848_v17 = vpop.f32.mrf.mxu1 }
  0xf0   : > { %v4854_v4 = vpop.f32.mrf.mxu1 }
  0xf1   : > { %3842 = vmatmul.mubr.msk.bf16.gmra.mxu0 %vm664_vm3, %v4646_v20 }
  0xf2   : > { %3845 = vmatprep.mubr.msk.bf16.mxu0 %vm664_vm3, %v4652_v48 }
  0xf4   : > { %3808 = vmatmul.mubr.msk.bf16.gmra.mxu1 %vm664_vm3, %v4544_v1 }
  0xf5   : > { %3811 = vmatprep.mubr.msk.bf16.mxu1 %vm664_vm3, %v4630_v23 }
  0xf6   : > { %v4858_v20 = vpop.f32.mrf.mxu0 }
  0xf8   : > { %v4868_v55 = vpop.f32.mrf.mxu0 }
  0xf9   : > { %3846 = vmatmul.mubr.msk.bf16.gmra.mxu0 %vm664_vm3, %v4674_v39 }
  0xfa   : > { %3849 = vmatprep.mubr.msk.bf16.mxu0 %vm664_vm3, %v4680_v22  ;;  %v4864_v48 = vpop.f32.mrf.mxu1  ;;  %v4874_v39 = vpop.f32.mrf.mxu0 }
  0xfc   : > { %3812 = vmatmul.mubr.msk.bf16.gmra.mxu1 %vm664_vm3, %v4635_v8  ;;  %v4870_v45 = vpop.f32.mrf.mxu1  ;;  %v4884_v44 = vpop.f32.mrf.mxu0 }
  0xfd   : > { %3815 = vmatprep.mubr.msk.bf16.mxu1 %vm664_vm3, %v4668_v13 }
  0xfe   : > { %v4880_v22 = vpop.f32.mrf.mxu1 }
 0x100   : > { %v4886_v49 = vpop.f32.mrf.mxu1 }
 0x101   : > { %3850 = vmatmul.mubr.msk.bf16.gmra.mxu0 %vm664_vm3, %v4549_v18 }
 0x102   : > { %3853 = vmatprep.mubr.msk.bf16.mxu0 %vm664_vm3, %v4562_v6 }
 0x104   : > { %3816 = vmatmul.mubr.msk.bf16.gmra.mxu1 %vm664_vm3, %v4670_v16 }
 0x105   : > { %3819 = vmatprep.mubr.msk.bf16.mxu1 %vm664_vm3, %v4585_v21 }
 0x107   : > { %v4890_v18 = vpop.f32.mrf.mxu0 }
 0x109   : > { %3854 = vmatmul.mubr.msk.bf16.gmra.mxu0 %vm664_vm3, %v4576_v43  ;;  %v4900_v29 = vpop.f32.mrf.mxu0 }
 0x10a   : > { %3857 = vmatprep.mubr.msk.bf16.mxu0 %vm664_vm3, %v4591_v28  ;;  %v4910_v28 = vld [vmem:[%s4028_s23 + $0xcc] sm:$0xf] }
 0x10b   : > { %v4906_v43 = vpop.f32.mrf.mxu0 }
 0x10c   : > { %3820 = vmatmul.mubr.msk.bf16.gmra.mxu1 %vm664_vm3, %v4600_v50  ;;  %v4896_v6 = vpop.f32.mrf.mxu1 }
 0x10d   : > { %5643 = vst [vmem:[#allocation20_spill] sm:$0xff] %v4896_v6  ;;  %3823 = vmatprep.mubr.msk.bf16.mxu1 %vm664_vm3, %v4622_v52  ;;  %v4919_v31 = vpop.f32.mrf.mxu0 }
 0x10e   : > { %v4902_v24 = vpop.f32.mrf.mxu1 }
 0x10f   : > { %5644 = vst [vmem:[#allocation18_spill] sm:$0xff] %v4902_v24 }
 0x110   : > { %v4917_v38 = vpop.f32.mrf.mxu1 }
 0x111   : > { %3858 = vmatmul.mubr.msk.bf16.gmra.mxu0 %vm664_vm3, %v4606_v9  ;;  %5645 = vst [vmem:[#allocation21_spill] sm:$0xff] %v4917_v38  ;;  %v3352_v9 = vcombine.low %v4910_v28, %v4913_v61 }
 0x112   : > { %3861 = vmatprep.mubr.msk.bf16.mxu0 %vm664_vm3, %v3297_v3  ;;  %v4925_v27 = vpop.f32.mrf.mxu1 }
 0x113   : > { %5646 = vst [vmem:[#allocation23_spill] sm:$0xff] %v4925_v27 }
 0x114   : > { %3824 = vmatmul.mubr.msk.bf16.gmra.mxu1 %vm664_vm3, %v4633_v58 }
 0x115   : > { %3827 = vmatprep.mubr.msk.bf16.mxu1 %vm664_vm3, %v4642_v2 }
 0x119   : > { %v4927_v25 = vpop.f32.mrf.mxu0  ;;  %3862 = vmatmul.mubr.msk.bf16.gmra.mxu0 %vm664_vm3, %v3352_v9 }
 0x11a   : > { %3901 = vmatprep.mubr.msk.bf16.mxu0 %vm664_vm3, %v4465_v37 }
 0x11b   : > { %v4932_v41 = vpop.f32.mrf.mxu0 }
 0x11c   : > { %v4934_v3 = vpop.f32.mrf.mxu1  ;;  %3828 = vmatmul.mubr.msk.bf16.gmra.mxu1 %vm664_vm3, %v4721_v11 }
 0x11d   : > { %5647 = vst [vmem:[#allocation8_spill] sm:$0xff] %v4934_v3  ;;  %v4938_v51 = vpop.f32.mrf.mxu0  ;;  %3867 = vmatprep.mubr.msk.bf16.mxu1 %vm664_vm3, %v5631_v34 }
 0x11e   : > { %v4942_v62 = vpop.f32.mrf.mxu1 }
 0x11f   : > { %5648 = vst [vmem:[#allocation3_spill] sm:$0xff] %v4942_v62  ;;  %v4944_v27 = vpop.f32.mrf.mxu0 }
 0x120   : > { %v4946_v9 = vpop.f32.mrf.mxu1 }
 0x121   : > { %5649 = vst [vmem:[#allocation4_spill] sm:$0xff] %v4946_v9  ;;  %v3699_v38 = vpop.f32.mrf.mxu0  ;;  %3902 = vmatmul.mubr.msk.bf16.vlgmr.msra.gmra.mxu0 %vm664_vm3, %v4505_v14 }
 0x122   : > { %v4950_v37 = vpop.f32.mrf.mxu1  ;;  %3905 = vmatprep.mubr.msk.bf16.mxu0 %vm664_vm3, %v4507_v10 }
 0x123   : > { %5650 = vst [vmem:[#allocation6_spill] sm:$0xff] %v4950_v37  ;;  %v1436_v3 = vpop.f32.mrf.mxu0 }
 0x124   : > { %v3665_v24 = vpop.f32.mrf.mxu1  ;;  %3868 = vmatmul.mubr.msk.bf16.vlgmr.msra.gmra.mxu1 %vm664_vm3, %v5632_v42 }
 0x125   : > { %v1052_v34 = vadd.f32 %v3665_v24, %v4826_v63  ;;  %v3700_v62 = vpop.f32.mrf.mxu0  ;;  %3871 = vmatprep.mubr.msk.bf16.mxu1 %vm664_vm3, %v5633_v46 }
 0x126   : > { %v1043_v9 = vpop.f32.mrf.mxu1 }
 0x127   : > { %v4959_v54 = vadd.f32 %v3699_v38, %v1052_v34  ;;  %v1044_v14 = vadd.f32 %v1043_v9, %v4836_v53  ;;  %v1439_v37 = vpop.f32.mrf.mxu0 }
 0x128   : > { %v3666_v6 = vpop.f32.mrf.mxu1 }
 0x129   : > { %v4962_v32 = vadd.f32 %v1436_v3, %v1044_v14  ;;  %v1055_v10 = vadd.f32 %v3666_v6, %v4842_v56  ;;  %v3703_v12 = vpop.f32.mrf.mxu0  ;;  %3906 = vmatmul.mubr.msk.bf16.gmra.mxu0 %vm664_vm3, %v4542_v30 }
 0x12a   : > { %v1046_v42 = vpop.f32.mrf.mxu1  ;;  %3909 = vmatprep.mubr.msk.bf16.mxu0 %vm664_vm3, %v4544_v1 }
 0x12b   : > { %v4969_v46 = vadd.f32 %v3700_v62, %v1055_v10  ;;  %v1047_v63 = vadd.f32 %v1046_v42, %v4852_v59  ;;  %v1452_v24 = vpop.f32.mrf.mxu0 }
 0x12c   : > { %v3669_v53 = vpop.f32.mrf.mxu1  ;;  %3872 = vmatmul.mubr.msk.bf16.gmra.mxu1 %vm664_vm3, %v5634_v19 }
 0x12d   : > { %v4974_v38 = vadd.f32 %v1439_v37, %v1047_v63  ;;  %v1068_v56 = vadd.f32 %v3669_v53, %v4858_v20  ;;  %v3704_v6 = vpop.f32.mrf.mxu0  ;;  %3875 = vmatprep.mubr.msk.bf16.mxu1 %vm664_vm3, %v5635_v36 }
 0x12e   : > { %v1059_v30 = vpop.f32.mrf.mxu1 }
 0x12f   : > { %v4979_v3 = vadd.f32 %v3703_v12, %v1068_v56  ;;  %v1060_v1 = vadd.f32 %v1059_v30, %v4868_v55  ;;  %v1455_v62 = vpop.f32.mrf.mxu0 }
 0x130   : > { %v3670_v59 = vpop.f32.mrf.mxu1 }
 0x131   : > { %v4982_v9 = vadd.f32 %v1452_v24, %v1060_v1  ;;  %v1071_v34 = vadd.f32 %v3670_v59, %v4874_v39  ;;  %v3707_v19 = vpop.f32.mrf.mxu0  ;;  %3910 = vmatmul.mubr.msk.bf16.gmra.mxu0 %vm664_vm3, %v4630_v23 }
 0x132   : > { %v1062_v20 = vpop.f32.mrf.mxu1  ;;  %3913 = vmatprep.mubr.msk.bf16.mxu0 %vm664_vm3, %v4635_v8 }
 0x133   : > { %v4989_v36 = vadd.f32 %v3704_v6, %v1071_v34  ;;  %v1063_v12 = vadd.f32 %v1062_v20, %v4884_v44  ;;  %v1468_v37 = vpop.f32.mrf.mxu0 }
 0x134   : > { %v3673_v55 = vpop.f32.mrf.mxu1  ;;  %3876 = vmatmul.mubr.msk.bf16.gmra.mxu1 %vm664_vm3, %v4417_v15 }
 0x135   : > { %v4994_v14 = vadd.f32 %v1455_v62, %v1063_v12  ;;  %v1084_v39 = vadd.f32 %v3673_v55, %v4890_v18  ;;  %v3708_v10 = vpop.f32.mrf.mxu0  ;;  %3879 = vmatprep.mubr.msk.bf16.mxu1 %vm664_vm3, %v5636_v26 }
 0x136   : > { %v1075_v23 = vpop.f32.mrf.mxu1 }
 0x137   : > { %v4999_v42 = vadd.f32 %v3707_v19, %v1084_v39  ;;  %v1076_v8 = vadd.f32 %v1075_v23, %v4900_v29  ;;  %v1471_v63 = vpop.f32.mrf.mxu0 }
 0x138   : > { %v3674_v44 = vpop.f32.mrf.mxu1 }
 0x139   : > { %v5002_v24 = vadd.f32 %v1468_v37, %v1076_v8  ;;  %v1087_v53 = vadd.f32 %v3674_v44, %v4906_v43  ;;  %v3711_v15 = vpop.f32.mrf.mxu0  ;;  %3914 = vmatmul.mubr.msk.bf16.gmra.mxu0 %vm664_vm3, %v4668_v13  ;;  %v2451_v37 = vshll.u32 %v4910_v28, 16 }
 0x13a   : > { %v1078_v18 = vpop.f32.mrf.mxu1  ;;  %3917 = vmatprep.mubr.msk.bf16.mxu0 %vm664_vm3, %v4670_v16 }
 0x13b   : > { %v5009_v26 = vadd.f32 %v3708_v10, %v1087_v53  ;;  %v1079_v56 = vadd.f32 %v1078_v18, %v4919_v31  ;;  %v1484_v6 = vpop.f32.mrf.mxu0  ;;  %v2453_v44 = vrot.slane %v2451_v37, 5 }
 0x13c   : > { %v3677_v29 = vpop.f32.mrf.mxu1  ;;  %3880 = vmatmul.mubr.msk.bf16.gmra.mxu1 %vm664_vm3, %v5637_v0 }
 0x13d   : > { %v5014_v30 = vadd.f32 %v1471_v63, %v1079_v56  ;;  %v1100_v43 = vadd.f32 %v3677_v29, %v4927_v25  ;;  %v3712_v1 = vpop.f32.mrf.mxu0  ;;  %3883 = vmatprep.mubr.msk.bf16.mxu1 %vm664_vm3, %v5638_v35 }
 0x13e   : > { %v1091_v13 = vpop.f32.mrf.mxu1 }
 0x13f   : > { %v5019_v62 = vadd.f32 %v3711_v15, %v1100_v43  ;;  %v1092_v16 = vadd.f32 %v1091_v13, %v4932_v41  ;;  %v1487_v59 = vpop.f32.mrf.mxu0  ;;  %v2448_v41 = vshrl.u32 %v4910_v28, 16 }
 0x140   : > { %v3678_v31 = vpop.f32.mrf.mxu1 }
 0x141   : > { %v5022_v34 = vadd.f32 %v1484_v6, %v1092_v16  ;;  %v1103_v19 = vadd.f32 %v3678_v31, %v4938_v51  ;;  %v3715_v0 = vpop.f32.mrf.mxu0  ;;  %3918 = vmatmul.mubr.msk.bf16.gmra.mxu0 %vm664_vm3, %v4585_v21  ;;  %v2457_v51 = vshll.u32 %v4913_v61, 16  ;;  %v2461_v21 = vshrl.u32 %v4913_v61, 16 }
 0x142   : > { %v1094_v25 = vpop.f32.mrf.mxu1  ;;  %3921 = vmatprep.mubr.msk.bf16.mxu0 %vm664_vm3, %v4600_v50 }
 0x143   : > { %v5029_v35 = vadd.f32 %v3712_v1, %v1103_v19  ;;  %v1095_v20 = vadd.f32 %v1094_v25, %v4944_v27  ;;  %v1500_v12 = vpop.f32.mrf.mxu0  ;;  %v2459_v15 = vrot.slane %v2457_v51, 5  ;;  %v2463_v18 = vrot.slane %v2461_v21, 4 }
 0x144   : > { %v3681_v55 = vpop.f32.mrf.mxu1  ;;  %3884 = vmatmul.mubr.msk.bf16.gmra.mxu1 %vm664_vm3, %v5639_v40  ;;  %v2450_v40 = vrot.slane %v2448_v41, 4  ;;  %v3387_v19 = vrot.slane %v4910_v28, 9 }
 0x145   : > { %v5038_v39 = vadd.f32 %v1487_v59, %v1095_v20  ;;  %v1116_v50 = vadd.f32 %v3681_v55, %v4832_v47  ;;  %v3716_v10 = vpop.f32.mrf.mxu0  ;;  %3887 = vmatprep.mubr.msk.bf16.mxu1 %vm664_vm3, %v5640_v57  ;;  %v2678_v57 = vrot.slane %v4913_v61, 5 }
 0x146   : > { %v1107_v27 = vpop.f32.mrf.mxu1 }
 0x147   : > { %v5043_v23 = vadd.f32 %v3715_v0, %v1116_v50  ;;  %v1108_v8 = vadd.f32 %v1107_v27, %v4838_v33  ;;  %v1503_v63 = vpop.f32.mrf.mxu0  ;;  %v225_v33 = vld [vmem:[%s4028_s23 + $0xd4] sm:$0x1] }
 0x148   : > { %v3682_v53 = vpop.f32.mrf.mxu1  ;;  %v2467_v31 = vshll.u32 %v225_v33, 16  ;;  %v2681_v25 = vrot.slane %v225_v33, 5 }
 0x149   : > { %v5046_v56 = vadd.f32 %v1500_v12, %v1108_v8  ;;  %v1119_v47 = vadd.f32 %v3682_v53, %v4848_v17  ;;  %v3719_v6 = vpop.f32.mrf.mxu0  ;;  %3922 = vmatmul.mubr.msk.bf16.gmra.mxu0 %vm664_vm3, %v4622_v52  ;;  %v2454_v17 = vor.u32 %v2453_v44, %v2450_v40 }
 0x14a   : > { %v1110_v29 = vpop.f32.mrf.mxu1  ;;  %3925 = vmatprep.mubr.msk.bf16.mxu0 %vm664_vm3, %v4633_v58  ;;  %v2464_v58 = vor.u32 %v2463_v18, %v2459_v15  ;;  %v2469_v28 = vrot.slane %v2467_v31, 5 }
 0x14b   : > { %v5055_v43 = vadd.f32 %v3716_v10, %v1119_v47  ;;  %v1111_v1 = vadd.f32 %v1110_v29, %v4854_v4  ;;  %v1516_v13 = vpop.f32.mrf.mxu0  ;;  %v2680_v4 = vrot.slane %v2678_v57, 4  ;;  %v2455_v37 = vrot.slane %v2454_v17, 4  ;;  %v5654_v47 = vld [vmem:[#allocation16_spill] sm:$0xff]  ;;  %v5655_v29 = vld [vmem:[#allocation18_spill] sm:$0xff]  ;;  %v5656_v17 = vld [vmem:[#allocation21_spill] sm:$0xff] }
 0x14c   : > { %v3685_v16 = vpop.f32.mrf.mxu1  ;;  %3888 = vmatmul.mubr.msk.bf16.gmra.mxu1 %vm664_vm3, %v5641_v7 }
 0x14d   : > { %v5060_v59 = vadd.f32 %v1503_v63, %v1111_v1  ;;  %v1132_v52 = vadd.f32 %v3685_v16, %v4864_v48  ;;  %v3720_v61 = vpop.f32.mrf.mxu0  ;;  %3891 = vmatprep.mubr.msk.bf16.mxu1 %vm664_vm3, %v4391_v5  ;;  %v2465_v5 = vrot.slane %v2464_v58, 4  ;;  %v2682_v50 = vsel %vm4396_vm7, %v2680_v4, %v2681_v25  ;;  %v5651_v63 = vld [vmem:[#allocation25_spill] sm:$0xff] }
 0x14e   : > { %v1123_v0 = vpop.f32.mrf.mxu1  ;;  %v2460_v40 = vsel %vm4073_vm4, %v2455_v37, %v2459_v15 }
 0x14f   : > { %v5066_v20 = vadd.f32 %v3719_v6, %v1132_v52  ;;  %v1124_v7 = vadd.f32 %v1123_v0, %v4870_v45  ;;  %v1519_v12 = vpop.f32.mrf.mxu0  ;;  %v2679_v45 = vsel %vm4396_vm7, %v3387_v19, %v2678_v57  ;;  %v2470_v60 = vsel %vm4073_vm4, %v2465_v5, %v2469_v28  ;;  %v5657_v19 = vld [vmem:[#allocation23_spill] sm:$0xff] }
 0x150   : > { %v3686_v41 = vpop.f32.mrf.mxu1  ;;  %v3370_v15 = vcombine.low %v2460_v40, %v2470_v60  ;;  %v5659_v5 = vld [vmem:[#allocation3_spill] sm:$0xff]  ;;  %v5661_v40 = vld [vmem:[#allocation6_spill] sm:$0xff] }
 0x151   : > { %v5069_v55 = vadd.f32 %v1516_v13, %v1124_v7  ;;  %v1135_v48 = vadd.f32 %v3686_v41, %v4880_v22  ;;  %v3723_v51 = vpop.f32.mrf.mxu0  ;;  %3926 = vmatmul.mubr.msk.bf16.gmra.mxu0 %vm664_vm3, %v4642_v2 }
 0x152   : > { %v1126_v21 = vpop.f32.mrf.mxu1  ;;  %3929 = vmatprep.mubr.msk.bf16.mxu0 %vm664_vm3, %v4721_v11  ;;  %v5653_v11 = vld [vmem:[#allocation20_spill] sm:$0xff] }
 0x153   : > { %v5080_v10 = vadd.f32 %v3720_v61, %v1135_v48  ;;  %v1127_v22 = vadd.f32 %v1126_v21, %v4886_v49  ;;  %v1532_v27 = vpop.f32.mrf.mxu0  ;;  %v3389_v49 = vcombine.low %v2679_v45, %v2682_v50 }
 0x154   : > { %v3689_v8 = vpop.f32.mrf.mxu1  ;;  %3892 = vmatmul.mubr.msk.bf16.gmra.mxu1 %vm664_vm3, %v5651_v63 }
 0x155   : > { %v5087_v44 = vadd.f32 %v1519_v12, %v1127_v22  ;;  %v1148_v53 = vadd.f32 %v3689_v8, %v5653_v11  ;;  %v3724_v18 = vpop.f32.mrf.mxu0  ;;  %3895 = vmatprep.mubr.msk.bf16.mxu1 %vm664_vm3, %v5654_v47  ;;  %v5658_v12 = vld [vmem:[#allocation8_spill] sm:$0xff] }
 0x156   : > { %v1139_v6 = vpop.f32.mrf.mxu1  ;;  %v5660_v22 = vld [vmem:[#allocation4_spill] sm:$0xff] }
 0x157   : > { %v5094_v57 = vadd.f32 %v3723_v51, %v1148_v53  ;;  %v1140_v33 = vadd.f32 %v1139_v6, %v5655_v29  ;;  %v1535_v1 = vpop.f32.mrf.mxu0 }
 0x158   : > { %v3690_v13 = vpop.f32.mrf.mxu1 }
 0x159   : > { %v5097_v16 = vadd.f32 %v1532_v27, %v1140_v33  ;;  %v1151_v52 = vadd.f32 %v3690_v13, %v5656_v17  ;;  %v3727_v61 = vpop.f32.mrf.mxu0  ;;  %3930 = vmatmul.mubr.msk.bf16.gmra.mxu0 %vm664_vm3, %v3389_v49 }
 0x15a   : > { %v1142_v58 = vpop.f32.mrf.mxu1 }
 0x15b   : > { %v5101_v31 = vadd.f32 %v3724_v18, %v1151_v52  ;;  %v1143_v0 = vadd.f32 %v1142_v58, %v5657_v19  ;;  %v1548_v4 = vpop.f32.mrf.mxu0 }
 0x15c   : > { %v3693_v25 = vpop.f32.mrf.mxu1  ;;  %3896 = vmatmul.mubr.msk.bf16.gmra.mxu1 %vm664_vm3, %v3370_v15 }
 0x15d   : > { %v5105_v7 = vadd.f32 %v1535_v1, %v1143_v0  ;;  %v1164_v41 = vadd.f32 %v3693_v25, %v5658_v12  ;;  %v3728_v37 = vpop.f32.mrf.mxu0 }
 0x15e   : > { %v1155_v48 = vpop.f32.mrf.mxu1 }
 0x15f   : > { %v5108_v51 = vadd.f32 %v3727_v61, %v1164_v41  ;;  %v1156_v28 = vadd.f32 %v1155_v48, %v5659_v5  ;;  %v1551_v21 = vpop.f32.mrf.mxu0 }
 0x160   : > { %v3694_v45 = vpop.f32.mrf.mxu1 }
 0x161   : > { %v5111_v50 = vadd.f32 %v1548_v4, %v1156_v28  ;;  %v1167_v27 = vadd.f32 %v3694_v45, %v5660_v22  ;;  %v3767_v8 = vpop.f32.mrf.mxu0 }
 0x162   : > { %v1158_v63 = vpop.f32.mrf.mxu1 }
 0x163   : > { %v5114_v2 = vadd.f32 %v3728_v37, %v1167_v27  ;;  %v1159_v11 = vadd.f32 %v1158_v63, %v5661_v40  ;;  %v1870_v53 = vpop.f32.mrf.mxu0 }
 0x164   : > { %v3733_v18 = vpop.f32.mrf.mxu1 }
 0x165   : > { %v5117_v47 = vadd.f32 %v1551_v21, %v1159_v11  ;;  %v1771_v60 = vadd.f32 %v3733_v18, %v4959_v54  ;;  %v3768_v49 = vpop.f32.mrf.mxu0 }
 0x166   : > { %v1642_v6 = vpop.f32.mrf.mxu1 }
 0x167   : > { %v5120_v29 = vadd.f32 %v3767_v8, %v1771_v60  ;;  %v1769_v33 = vadd.f32 %v1642_v6, %v4962_v32  ;;  %v1873_v1 = vpop.f32.mrf.mxu0 }
 0x168   : > { %v3734_v13 = vpop.f32.mrf.mxu1 }
 0x169   : > { %v5123_v15 = vadd.f32 %v1870_v53, %v1769_v33  ;;  %v1772_v17 = vadd.f32 %v3734_v13, %v4969_v46  ;;  %v3771_v52 = vpop.f32.mrf.mxu0 }
 0x16a   : > { %v1645_v61 = vpop.f32.mrf.mxu1 }
 0x16b   : > { %v5126_v58 = vadd.f32 %v3768_v49, %v1772_v17  ;;  %v1770_v19 = vadd.f32 %v1645_v61, %v4974_v38  ;;  %v1886_v0 = vpop.f32.mrf.mxu0 }
 0x16c   : > { %v3737_v54 = vpop.f32.mrf.mxu1 }
 0x16d   : > { %v5129_v4 = vadd.f32 %v1873_v1, %v1770_v19  ;;  %v1775_v25 = vadd.f32 %v3737_v54, %v4979_v3  ;;  %v3772_v12 = vpop.f32.mrf.mxu0 }
 0x16e   : > { %v1658_v32 = vpop.f32.mrf.mxu1 }
 0x16f   : > { %v5132_v41 = vadd.f32 %v3771_v52, %v1775_v25  ;;  %v1773_v37 = vadd.f32 %v1658_v32, %v4982_v9  ;;  %v1889_v48 = vpop.f32.mrf.mxu0 }
 0x170   : > { %v3738_v46 = vpop.f32.mrf.mxu1 }
 0x171   : > { %v5135_v5 = vadd.f32 %v1886_v0, %v1773_v37  ;;  %v1776_v28 = vadd.f32 %v3738_v46, %v4989_v36  ;;  %v3775_v21 = vpop.f32.mrf.mxu0 }
 0x172   : > { %v1661_v38 = vpop.f32.mrf.mxu1 }
 0x173   : > { %v5138_v45 = vadd.f32 %v3772_v12, %v1776_v28  ;;  %v1774_v22 = vadd.f32 %v1661_v38, %v4994_v14  ;;  %v1902_v27 = vpop.f32.mrf.mxu0 }
 0x174   : > { %v3741_v3 = vpop.f32.mrf.mxu1 }
 0x175   : > { %v5141_v8 = vadd.f32 %v1889_v48, %v1774_v22  ;;  %v1779_v63 = vadd.f32 %v3741_v3, %v4999_v42  ;;  %v3776_v40 = vpop.f32.mrf.mxu0 }
 0x176   : > { %v1674_v9 = vpop.f32.mrf.mxu1 }
 0x177   : > { %v5144_v11 = vadd.f32 %v3775_v21, %v1779_v63  ;;  %v1777_v53 = vadd.f32 %v1674_v9, %v5002_v24  ;;  %v1905_v18 = vpop.f32.mrf.mxu0 }
 0x178   : > { %v3742_v36 = vpop.f32.mrf.mxu1 }
 0x179   : > { %v5147_v60 = vadd.f32 %v1902_v27, %v1777_v53  ;;  %v1780_v49 = vadd.f32 %v3742_v36, %v5009_v26  ;;  %v3779_v6 = vpop.f32.mrf.mxu0 }
 0x17a   : > { %v1677_v14 = vpop.f32.mrf.mxu1 }
 0x17b   : > { %v5150_v33 = vadd.f32 %v3776_v40, %v1780_v49  ;;  %v1778_v1 = vadd.f32 %v1677_v14, %v5014_v30  ;;  %v1918_v13 = vpop.f32.mrf.mxu0 }
 0x17c   : > { %v3745_v42 = vpop.f32.mrf.mxu1 }
 0x17d   : > { %v5153_v17 = vadd.f32 %v1905_v18, %v1778_v1  ;;  %v1783_v52 = vadd.f32 %v3745_v42, %v5019_v62  ;;  %v3780_v61 = vpop.f32.mrf.mxu0 }
 0x17e   : > { %v1690_v24 = vpop.f32.mrf.mxu1 }
 0x17f   : > { %v5156_v19 = vadd.f32 %v3779_v6, %v1783_v52  ;;  %v1781_v0 = vadd.f32 %v1690_v24, %v5022_v34  ;;  %v1921_v54 = vpop.f32.mrf.mxu0 }
 0x180   : > { %v3746_v26 = vpop.f32.mrf.mxu1 }
 0x181   : > { %v5159_v25 = vadd.f32 %v1918_v13, %v1781_v0  ;;  %v1784_v12 = vadd.f32 %v3746_v26, %v5029_v35  ;;  %v3783_v32 = vpop.f32.mrf.mxu0 }
 0x182   : > { %v1693_v30 = vpop.f32.mrf.mxu1 }
 0x183   : > { %v5162_v37 = vadd.f32 %v3780_v61, %v1784_v12  ;;  %v1782_v48 = vadd.f32 %v1693_v30, %v5038_v39  ;;  %v1934_v46 = vpop.f32.mrf.mxu0 }
 0x184   : > { %v3749_v62 = vpop.f32.mrf.mxu1 }
 0x185   : > { %v5165_v28 = vadd.f32 %v1921_v54, %v1782_v48  ;;  %v1787_v21 = vadd.f32 %v3749_v62, %v5043_v23  ;;  %v3784_v38 = vpop.f32.mrf.mxu0 }
 0x186   : > { %v1706_v34 = vpop.f32.mrf.mxu1 }
 0x187   : > { %v5168_v22 = vadd.f32 %v3783_v32, %v1787_v21  ;;  %v1785_v27 = vadd.f32 %v1706_v34, %v5046_v56  ;;  %v1937_v3 = vpop.f32.mrf.mxu0 }
 0x188   : > { %v3750_v35 = vpop.f32.mrf.mxu1 }
 0x189   : > { %v5171_v63 = vadd.f32 %v1934_v46, %v1785_v27  ;;  %v1788_v40 = vadd.f32 %v3750_v35, %v5055_v43  ;;  %v3787_v9 = vpop.f32.mrf.mxu0 }
 0x18a   : > { %v1709_v39 = vpop.f32.mrf.mxu1 }
 0x18b   : > { %v5174_v53 = vadd.f32 %v3784_v38, %v1788_v40  ;;  %v1786_v18 = vadd.f32 %v1709_v39, %v5060_v59  ;;  %v1950_v36 = vpop.f32.mrf.mxu0 }
 0x18c   : > { %v3753_v23 = vpop.f32.mrf.mxu1 }
 0x18d   : > { %5662 = vst [vmem:[#allocation9_spill] sm:$0xff] %v5174_v53  ;;  %v5177_v49 = vadd.f32 %v1937_v3, %v1786_v18  ;;  %v1791_v6 = vadd.f32 %v3753_v23, %v5066_v20  ;;  %v3788_v14 = vpop.f32.mrf.mxu0 }
 0x18e   : > { %v1722_v56 = vpop.f32.mrf.mxu1 }
 0x18f   : > { %5663 = vst [vmem:[#allocation7_spill] sm:$0xff] %v5177_v49  ;;  %v5180_v1 = vadd.f32 %v3787_v9, %v1791_v6  ;;  %v1789_v13 = vadd.f32 %v1722_v56, %v5069_v55  ;;  %v1953_v42 = vpop.f32.mrf.mxu0 }
 0x190   : > { %v3754_v43 = vpop.f32.mrf.mxu1 }
 0x191   : > { %5664 = vst [vmem:[#allocation11_spill] sm:$0xff] %v5180_v1  ;;  %v5183_v52 = vadd.f32 %v1950_v36, %v1789_v13  ;;  %v1792_v61 = vadd.f32 %v3754_v43, %v5080_v10  ;;  %v3791_v24 = vpop.f32.mrf.mxu0 }
 0x192   : > { %v1725_v59 = vpop.f32.mrf.mxu1 }
 0x193   : > { %5665 = vst [vmem:[#allocation13_spill] sm:$0xff] %v5183_v52  ;;  %v5186_v0 = vadd.f32 %v3788_v14, %v1792_v61  ;;  %v1790_v54 = vadd.f32 %v1725_v59, %v5087_v44  ;;  %v1966_v26 = vpop.f32.mrf.mxu0 }
 0x194   : > { %v3757_v20 = vpop.f32.mrf.mxu1 }
 0x195   : > { %5666 = vst [vmem:[#allocation15_spill] sm:$0xff] %v5186_v0  ;;  %v5189_v12 = vadd.f32 %v1953_v42, %v1790_v54  ;;  %v1795_v32 = vadd.f32 %v3757_v20, %v5094_v57  ;;  %v3792_v30 = vpop.f32.mrf.mxu0 }
 0x196   : > { %v1738_v55 = vpop.f32.mrf.mxu1 }
 0x197   : > { %5667 = vst [vmem:[#allocation19_spill] sm:$0xff] %v5189_v12  ;;  %v5192_v48 = vadd.f32 %v3791_v24, %v1795_v32  ;;  %v1793_v46 = vadd.f32 %v1738_v55, %v5097_v16  ;;  %v1969_v62 = vpop.f32.mrf.mxu0 }
 0x198   : > { %v3758_v10 = vpop.f32.mrf.mxu1 }
 0x199   : > { %5668 = vst [vmem:[#allocation24_spill] sm:$0xff] %v5192_v48  ;;  %v5195_v21 = vadd.f32 %v1966_v26, %v1793_v46  ;;  %v1796_v38 = vadd.f32 %v3758_v10, %v5101_v31  ;;  %v3795_v34 = vpop.f32.mrf.mxu0 }
 0x19a   : > { %v1741_v44 = vpop.f32.mrf.mxu1 }
 0x19b   : > { %5669 = vst [vmem:[#allocation5_spill] sm:$0xff] %v5195_v21  ;;  %v5198_v27 = vadd.f32 %v3792_v30, %v1796_v38  ;;  %v1794_v3 = vadd.f32 %v1741_v44, %v5105_v7  ;;  %v1982_v35 = vpop.f32.mrf.mxu0 }
 0x19c   : > { %v3761_v57 = vpop.f32.mrf.mxu1 }
 0x19d   : > { %5670 = vst [vmem:[#allocation10_spill] sm:$0xff] %v5198_v27  ;;  %v5201_v40 = vadd.f32 %v1969_v62, %v1794_v3  ;;  %v1799_v9 = vadd.f32 %v3761_v57, %v5108_v51  ;;  %v3796_v39 = vpop.f32.mrf.mxu0 }
 0x19e   : > { %v1754_v16 = vpop.f32.mrf.mxu1 }
 0x19f   : > { %5671 = vst [vmem:[#allocation12_spill] sm:$0xff] %v5201_v40  ;;  %v5204_v18 = vadd.f32 %v3795_v34, %v1799_v9  ;;  %v1797_v36 = vadd.f32 %v1754_v16, %v5111_v50  ;;  %v1985_v23 = vpop.f32.mrf.mxu0 }
 0x1a0   : > { %v3762_v31 = vpop.f32.mrf.mxu1 }
 0x1a1   : > { %5672 = vst [vmem:[#allocation14_spill] sm:$0xff] %v5204_v18  ;;  %v5207_v6 = vadd.f32 %v1982_v35, %v1797_v36  ;;  %v1800_v14 = vadd.f32 %v3762_v31, %v5114_v2  ;;  %v5210_v56 = vpop.f32.mrf.mxu0 }
 0x1a2   : > { %v1757_v7 = vpop.f32.mrf.mxu1 }
 0x1a3   : > { %5673 = vst [vmem:[#allocation17_spill] sm:$0xff] %v5207_v6  ;;  %v5212_v13 = vadd.f32 %v3796_v39, %v1800_v14  ;;  %v1798_v42 = vadd.f32 %v1757_v7, %v5117_v47  ;;  %v5215_v51 = vpop.f32.mrf.mxu0 }
 0x1a4   : > { %v3801_v43 = vpop.f32.mrf.mxu1 }
 0x1a5   : > { %5674 = vst [vmem:[#allocation22_spill] sm:$0xff] %v5212_v13  ;;  %v5217_v61 = vadd.f32 %v1985_v23, %v1798_v42  ;;  %v5219_v24 = vpop.f32.mrf.mxu0 }
 0x1a6   : > { %v2082_v50 = vpop.f32.mrf.mxu1 }
 0x1a7   : > { %5675 = vst [vmem:[#allocation25_spill] sm:$0xff] %v5217_v61  ;;  %v5221_v59 = vpop.f32.mrf.mxu0 }
 0x1a8   : > { %v3802_v54 = vpop.f32.mrf.mxu1 }
 0x1a9   : > { %v5223_v26 = vpop.f32.mrf.mxu0 }
 0x1aa   : > { %v5225_v2 = vpop.f32.mrf.mxu1 }
 0x1ab   : > { %v5227_v20 = vpop.f32.mrf.mxu0 }
 0x1ac   : > { %v5229_v32 = vpop.f32.mrf.mxu1 }
 0x1ad   : > { %v5231_v47 = vpop.f32.mrf.mxu0 }
 0x1ae   : > { %v5233_v30 = vpop.f32.mrf.mxu1 }
 0x1af   : > { %v5235_v55 = vpop.f32.mrf.mxu0 }
 0x1b0   : > { %v5237_v46 = vpop.f32.mrf.mxu1 }
 0x1b1   : > { %v5239_v62 = vpop.f32.mrf.mxu0 }
 0x1b2   : > { %v5241_v10 = vpop.f32.mrf.mxu1 }
 0x1b3   : > { %v5243_v38 = vpop.f32.mrf.mxu0 }
 0x1b4   : > { %v5245_v34 = vpop.f32.mrf.mxu1 }
 0x1b5   : > { %v5247_v44 = vpop.f32.mrf.mxu0 }
 0x1b6   : > { %v5249_v3 = vpop.f32.mrf.mxu1 }
 0x1b7   : > { %v5251_v35 = vpop.f32.mrf.mxu0 }
 0x1b8   : > { %v5253_v57 = vpop.f32.mrf.mxu1 }
 0x1b9   : > { %v5255_v9 = vpop.f32.mrf.mxu0 }
 0x1ba   : > { %v5257_v39 = vpop.f32.mrf.mxu1 }
 0x1bb   : > { %v5259_v16 = vpop.f32.mrf.mxu0 }
 0x1bc   : > { %v5261_v36 = vpop.f32.mrf.mxu1 }
 0x1bd   : > { %v5263_v23 = vpop.f32.mrf.mxu0 }
 0x1be   : > { %v5265_v31 = vpop.f32.mrf.mxu1 }
 0x1bf   : > { %v5267_v14 = vpop.f32.mrf.mxu0 }
 0x1c0   : > { %v5269_v7 = vpop.f32.mrf.mxu1 }
 0x1c1   : > { %v5271_v42 = vpop.f32.mrf.mxu0 }
 0x1c2   : > { %v5273_v61 = vpop.f32.mrf.mxu1 }
 0x1c3   : > { %v5275_v13 = vpop.f32.mrf.mxu0 }
 0x1c4   : > { %5676 = vst [vmem:[#allocation2_spill] sm:$0xff] %v5275_v13  ;;  %v5277_v6 = vpop.f32.mrf.mxu1 }
 0x1c5   : > { %v5279_v18 = vpop.f32.mrf.mxu0 }
 0x1c6   : > { %5677 = vst [vmem:[#allocation20_spill] sm:$0xff] %v5279_v18  ;;  %v5281_v40 = vpop.f32.mrf.mxu1 }
 0x1c7   : > { %v5283_v27 = vpop.f32.mrf.mxu0 }
 0x1c8   : > { %5678 = vst [vmem:[#allocation16_spill] sm:$0xff] %v5283_v27  ;;  %v5285_v21 = vpop.f32.mrf.mxu1 }
 0x1c9   : > { %5679 = vst [vmem:[#allocation18_spill] sm:$0xff] %v5285_v21  ;;  %v5287_v48 = vpop.f32.mrf.mxu0 }
 0x1ca   : > { %5680 = vst [vmem:[#allocation21_spill] sm:$0xff] %v5287_v48  ;;  %v5289_v12 = vpop.f32.mrf.mxu1 }
 0x1cb   : > { %5681 = vst [vmem:[#allocation23_spill] sm:$0xff] %v5289_v12  ;;  %v5291_v0 = vpop.f32.mrf.mxu0 }
 0x1cc   : > { %5682 = vst [vmem:[#allocation8_spill] sm:$0xff] %v5291_v0  ;;  %v5293_v52 = vpop.f32.mrf.mxu1 }
 0x1cd   : > { %5683 = vst [vmem:[#allocation3_spill] sm:$0xff] %v5293_v52  ;;  %v5295_v1 = vpop.f32.mrf.mxu0 }
 0x1ce   : > { %5684 = vst [vmem:[#allocation4_spill] sm:$0xff] %v5295_v1  ;;  %v5297_v49 = vpop.f32.mrf.mxu1 }
 0x1cf   : > { %5685 = vst [vmem:[#allocation6_spill] sm:$0xff] %v5297_v49  ;;  %v5299_v13 = vpop.f32.mrf.mxu0 }
 0x1d0   : > { %5686 = vst [vmem:[#allocation26_spill] sm:$0xff] %v5299_v13  ;;  %v5301_v18 = vpop.f32.mrf.mxu1 }
 0x1d1   : > { %5687 = vst [vmem:[#allocation27_spill] sm:$0xff] %v5301_v18  ;;  %v5303_v53 = vpop.f32.mrf.mxu0 }
 0x1d2   : > { %5688 = vst [vmem:[#allocation28_spill] sm:$0xff] %v5303_v53  ;;  %v5305_v27 = vpop.f32.mrf.mxu1 }
 0x1d3   : > { %5689 = vst [vmem:[#allocation29_spill] sm:$0xff] %v5305_v27  ;;  %v5307_v21 = vpop.f32.mrf.mxu0 }
 0x1d4   : > { %5690 = vst [vmem:[#allocation30_spill] sm:$0xff] %v5307_v21  ;;  %v5309_v48 = vpop.f32.mrf.mxu1 }
 0x1d5   : > { %5691 = vst [vmem:[#allocation31_spill] sm:$0xff] %v5309_v48  ;;  %v5311_v12 = vpop.f32.mrf.mxu0 }
 0x1d6   : > { %5692 = vst [vmem:[#allocation32_spill] sm:$0xff] %v5311_v12  ;;  %v5313_v0 = vpop.f32.mrf.mxu1  ;;  %v2211_v12 = vadd.f32 %v3801_v43, %v5120_v29  ;;  %v2210_v29 = vadd.f32 %v5225_v2, %v5129_v4 }
 0x1d7   : > { %5693 = vst [vmem:[#allocation33_spill] sm:$0xff] %v5313_v0  ;;  %v5315_v52 = vpop.f32.mrf.mxu0 }
 0x1d8   : > { %5694 = vst [vmem:[#allocation34_spill] sm:$0xff] %v5315_v52  ;;  %v5317_v1 = vpop.f32.mrf.mxu1  ;;  %v2209_v52 = vadd.f32 %v2082_v50, %v5123_v15  ;;  %v5347_v15 = vld [vmem:[%s5542_s2] ss:$0 sm:$0xff] }
 0x1d9   : > { %5695 = vst [vmem:[#allocation35_spill] sm:$0xff] %v5317_v1  ;;  %v5319_v49 = vpop.f32.mrf.mxu0 }
 0x1da   : > { %5696 = vst [vmem:[#allocation36_spill] sm:$0xff] %v5319_v49  ;;  %v5321_v13 = vpop.f32.mrf.mxu1 }
 0x1db   : > { %5697 = vst [vmem:[#allocation37_spill] sm:$0xff] %v5321_v13  ;;  %v5323_v18 = vpop.f32.mrf.mxu0  ;;  %v2417_v13 = vadd.f32 %v5210_v56, %v2211_v12 }
 0x1dc   : > { %5698 = vst [vmem:[#allocation38_spill] sm:$0xff] %v5323_v18  ;;  %v5325_v53 = vpop.f32.mrf.mxu1  ;;  %v2212_v18 = vadd.f32 %v3802_v54, %v5126_v58 }
 0x1dd   : > { %5699 = vst [vmem:[#allocation39_spill] sm:$0xff] %v5325_v53  ;;  %v5327_v27 = vpop.f32.mrf.mxu0 }
 0x1de   : > { %5700 = vst [vmem:[#allocation40_spill] sm:$0xff] %v5327_v27  ;;  %v5329_v21 = vpop.f32.mrf.mxu1  ;;  %v2418_v12 = vadd.f32 %v5219_v24, %v2212_v18 }
 0x1df   : > { %5701 = vst [vmem:[#allocation41_spill] sm:$0xff] %v5329_v21  ;;  %v5332_v48 = vpop.f32.mrf.mxu0  ;;  %v2415_v21 = vadd.f32 %v5215_v51, %v2209_v52  ;;  %v2213_v52 = vadd.f32 %v5233_v30, %v5135_v5  ;;  %v2214_v30 = vadd.f32 %v5241_v10, %v5141_v8  ;;  %v2219_v8 = vadd.f32 %v5245_v34, %v5144_v11 }
 0x1e0   : > { %5702 = vst [vmem:[#allocation42_spill] sm:$0xff] %v5332_v48  ;;  %v5334_v0 = vpop.f32.mrf.mxu1 }
 0x1e1   : > { %5703 = vst [vmem:[#allocation43_spill] sm:$0xff] %v5334_v0  ;;  %v3903_v1 = vpop.f32.mrf.mxu0 }
 0x1e2   : > { %v5337_v49 = vpop.f32.mrf.mxu1 }
 0x1e3   : > { %5704 = vst [vmem:[#allocation44_spill] sm:$0xff] %v5337_v49  ;;  %v2728_v53 = vpop.f32.mrf.mxu0  ;;  %v2215_v49 = vadd.f32 %v5229_v32, %v5132_v41 }
 0x1e4   : > { %v3869_v27 = vpop.f32.mrf.mxu1 }
 0x1e5   : > { %v2645_v43 = vadd.f32 %v3869_v27, %v2417_v13  ;;  %v3904_v48 = vpop.f32.mrf.mxu0  ;;  %v2416_v27 = vadd.f32 %v5221_v59, %v2210_v29  ;;  %v2421_v5 = vadd.f32 %v5223_v26, %v2215_v49  ;;  %v2419_v59 = vadd.f32 %v5227_v20, %v2213_v52 }
 0x1e6   : > { %v2516_v50 = vpop.f32.mrf.mxu1 }
 0x1e7   : > { %v2857_v56 = vadd.f32 %v3903_v1, %v2645_v43  ;;  %v2643_v58 = vadd.f32 %v2516_v50, %v2415_v21  ;;  %v2731_v54 = vpop.f32.mrf.mxu0  ;;  %v2216_v1 = vadd.f32 %v5237_v46, %v5138_v45 }
 0x1e8   : > { %v3870_v4 = vpop.f32.mrf.mxu1 }
 0x1e9   : > { %v2896_v13 = vadd.f32 %v5347_v15, %v2857_v56  ;;  %v2855_v51 = vadd.f32 %v2728_v53, %v2643_v58  ;;  %v2646_v2 = vadd.f32 %v3870_v4, %v2418_v12  ;;  %v3907_v0 = vpop.f32.mrf.mxu0  ;;  %v2422_v26 = vadd.f32 %v5231_v47, %v2216_v1 }
 0x1ea   : > { %v2519_v21 = vpop.f32.mrf.mxu1  ;;  %v2420_v4 = vadd.f32 %v5235_v55, %v2214_v30  ;;  %v2217_v1 = vadd.f32 %v5249_v3, %v5147_v60 }
 0x1eb   : > { %v2928_v18 = vmax.f32 %v2896_v13, 0.0  ;;  %v2894_v24 = vadd.f32 %v5347_v15, %v2855_v51  ;;  %v2858_v41 = vadd.f32 %v3904_v48, %v2646_v2  ;;  %v2644_v32 = vadd.f32 %v2519_v21, %v2416_v27  ;;  %v2744_v43 = vpop.f32.mrf.mxu0 }
 0x1ec   : > { %v3873_v45 = vpop.f32.mrf.mxu1  ;;  %v2425_v2 = vadd.f32 %v5239_v62, %v2219_v8  ;;  %v2220_v21 = vadd.f32 %v5253_v57, %v5150_v33  ;;  %v2218_v62 = vadd.f32 %v5257_v39, %v5153_v17 }
 0x1ed   : > { %v3444_v53 = vpack.c.bf16 %v2928_v18, %v2928_v18  ;;  %v2926_v46 = vmax.f32 %v2894_v24, 0.0  ;;  %v2897_v48 = vadd.f32 %v5347_v15, %v2858_v41  ;;  %v2856_v29 = vadd.f32 %v2731_v54, %v2644_v32  ;;  %v3908_v49 = vpop.f32.mrf.mxu0 }
 0x1ee   : > { %v2649_v20 = vadd.f32 %v3873_v45, %v2421_v5  ;;  %v2532_v10 = vpop.f32.mrf.mxu1  ;;  %v2423_v45 = vadd.f32 %v5243_v38, %v2217_v1 }
 0x1ef   : > { %3089 = vst.msk [vmem:[%s5367_s15 + $0x8] sm:$0xf] %vm3086_vm8, %v3444_v53  ;;  %v3442_v50 = vpack.c.bf16 %v2926_v46, %v2926_v46  ;;  %v2929_v12 = vmax.f32 %v2897_v48, 0.0  ;;  %v2895_v56 = vadd.f32 %v5347_v15, %v2856_v29  ;;  %v2647_v58 = vadd.f32 %v2532_v10, %v2419_v59  ;;  %v2747_v52 = vpop.f32.mrf.mxu0 }
 0x1f0   : > { %v2861_v54 = vadd.f32 %v3907_v0, %v2649_v20  ;;  %v3874_v27 = vpop.f32.mrf.mxu1  ;;  %v2426_v53 = vadd.f32 %v5247_v44, %v2220_v21  ;;  %v2223_v46 = vadd.f32 %v5261_v36, %v5156_v19  ;;  %v2424_v20 = vadd.f32 %v5251_v35, %v2218_v62 }
 0x1f1   : > { %3087 = vst.msk [vmem:[%s5367_s15] sm:$0xf] %vm3086_vm8, %v3442_v50  ;;  %v3445_v47 = vpack.c.bf16 %v2929_v12, %v2929_v12  ;;  %v2927_v13 = vmax.f32 %v2895_v56, 0.0  ;;  %v2859_v11 = vadd.f32 %v2744_v43, %v2647_v58  ;;  %v2650_v34 = vadd.f32 %v3874_v27, %v2422_v26  ;;  %v3911_v51 = vpop.f32.mrf.mxu0 }
 0x1f2   : > { %v2900_v55 = vadd.f32 %v5347_v15, %v2861_v54  ;;  %v2535_v0 = vpop.f32.mrf.mxu1  ;;  %v2221_v10 = vadd.f32 %v5265_v31, %v5159_v25  ;;  %v2429_v58 = vadd.f32 %v5255_v9, %v2223_v46 }
 0x1f3   : > { %3090 = vst.msk [vmem:[%s5367_s15 + $0xc] sm:$0xf] %vm3086_vm8, %v3445_v47  ;;  %v3443_v18 = vpack.c.bf16 %v2927_v13, %v2927_v13  ;;  %v2898_v24 = vadd.f32 %v5347_v15, %v2859_v11  ;;  %v2862_v41 = vadd.f32 %v3908_v49, %v2650_v34  ;;  %v2648_v32 = vadd.f32 %v2535_v0, %v2420_v4  ;;  %v2760_v43 = vpop.f32.mrf.mxu0 }
 0x1f4   : > { %v2932_v5 = vmax.f32 %v2900_v55, 0.0  ;;  %v3877_v59 = vpop.f32.mrf.mxu1  ;;  %v2427_v47 = vadd.f32 %v5259_v16, %v2221_v10  ;;  %v2224_v13 = vadd.f32 %v5269_v7, %v5162_v37  ;;  %v2222_v11 = vadd.f32 %v5273_v61, %v5165_v28 }
 0x1f5   : > { %3088 = vst.msk [vmem:[%s5367_s15 + $0x4] sm:$0xf] %vm3086_vm8, %v3443_v18  ;;  %v2930_v60 = vmax.f32 %v2898_v24, 0.0  ;;  %v2901_v33 = vadd.f32 %v5347_v15, %v2862_v41  ;;  %v2860_v3 = vadd.f32 %v2747_v52, %v2648_v32  ;;  %v2653_v57 = vadd.f32 %v3877_v59, %v2425_v2  ;;  %v3912_v30 = vpop.f32.mrf.mxu0 }
 0x1f6   : > { %v3448_v17 = vpack.c.bf16 %v2932_v5, %v2932_v5  ;;  %v2548_v39 = vpop.f32.mrf.mxu1  ;;  %v2227_v16 = vadd.f32 %v5277_v6, %v5168_v22  ;;  %v2430_v41 = vadd.f32 %v5263_v23, %v2224_v13  ;;  %v2428_v32 = vadd.f32 %v5267_v14, %v2222_v11  ;;  %v5714_v13 = vld [vmem:[#allocation6_spill] sm:$0xff] }
 0x1f7   : > { %v3446_v48 = vpack.c.bf16 %v2930_v60, %v2930_v60  ;;  %v2933_v29 = vmax.f32 %v2901_v33, 0.0  ;;  %v2899_v49 = vadd.f32 %v5347_v15, %v2860_v3  ;;  %v2865_v26 = vadd.f32 %v3911_v51, %v2653_v57  ;;  %v2763_v8 = vpop.f32.mrf.mxu0  ;;  %v5705_v57 = vld [vmem:[#allocation9_spill] sm:$0xff] }
 0x1f8   : > { %3093 = vst.msk [vmem:[%s5367_s15 + $0x18] sm:$0xf] %vm3086_vm8, %v3448_v17  ;;  %v2651_v38 = vadd.f32 %v2548_v39, %v2423_v45  ;;  %v3878_v44 = vpop.f32.mrf.mxu1  ;;  %v2433_v3 = vadd.f32 %v5271_v42, %v2227_v16  ;;  %v5707_v39 = vld [vmem:[#allocation2_spill] sm:$0xff]  ;;  %v5715_v16 = vld [vmem:[#allocation16_spill] sm:$0xff] }
 0x1f9   : > { %3091 = vst.msk [vmem:[%s5367_s15 + $0x10] sm:$0xf] %vm3086_vm8, %v3446_v48  ;;  %v3449_v19 = vpack.c.bf16 %v2933_v29, %v2933_v29  ;;  %v2931_v36 = vmax.f32 %v2899_v49, 0.0  ;;  %v2904_v50 = vadd.f32 %v5347_v15, %v2865_v26  ;;  %v2654_v12 = vadd.f32 %v3878_v44, %v2426_v53  ;;  %v3915_v56 = vpop.f32.mrf.mxu0 }
 0x1fa   : > { %v2863_v52 = vadd.f32 %v2760_v43, %v2651_v38  ;;  %v2551_v35 = vpop.f32.mrf.mxu1  ;;  %v2225_v43 = vadd.f32 %v5281_v40, %v5171_v63  ;;  %v5708_v38 = vld [vmem:[#allocation20_spill] sm:$0xff] }
 0x1fb   : > { %3094 = vst.msk [vmem:[%s5367_s15 + $0x1c] sm:$0xf] %vm3086_vm8, %v3449_v19  ;;  %v3447_v25 = vpack.c.bf16 %v2931_v36, %v2931_v36  ;;  %v2936_v31 = vmax.f32 %v2904_v50, 0.0  ;;  %v2866_v4 = vadd.f32 %v3912_v30, %v2654_v12  ;;  %v2652_v54 = vadd.f32 %v2551_v35, %v2424_v20  ;;  %v2776_v27 = vpop.f32.mrf.mxu0  ;;  %v5706_v30 = vld [vmem:[#allocation18_spill] sm:$0xff]  ;;  %v5709_v19 = vld [vmem:[#allocation7_spill] sm:$0xff] }
 0x1fc   : > { %v2902_v9 = vadd.f32 %v5347_v15, %v2863_v52  ;;  %v3881_v34 = vpop.f32.mrf.mxu1  ;;  %v2228_v45 = vadd.f32 %v5706_v30, %v5705_v57  ;;  %v2431_v48 = vadd.f32 %v5707_v39, %v2225_v43  ;;  %v5710_v36 = vld [vmem:[#allocation23_spill] sm:$0xff] }
 0x1fd   : > { %3092 = vst.msk [vmem:[%s5367_s15 + $0x14] sm:$0xf] %vm3086_vm8, %v3447_v25  ;;  %v3452_v51 = vpack.c.bf16 %v2936_v31, %v2936_v31  ;;  %v2905_v2 = vadd.f32 %v5347_v15, %v2866_v4  ;;  %v2864_v1 = vadd.f32 %v2763_v8, %v2652_v54  ;;  %v2657_v21 = vadd.f32 %v3881_v34, %v2429_v58  ;;  %v3916_v55 = vpop.f32.mrf.mxu0  ;;  %v5711_v12 = vld [vmem:[#allocation11_spill] sm:$0xff] }
 0x1fe   : > { %v2934_v0 = vmax.f32 %v2902_v9, 0.0  ;;  %v2564_v18 = vpop.f32.mrf.mxu1  ;;  %v2434_v44 = vadd.f32 %v5708_v38, %v2228_v45  ;;  %v2226_v50 = vadd.f32 %v5710_v36, %v5709_v19  ;;  %v5725_v38 = vld [vmem:[#allocation31_spill] sm:$0xff]  ;;  %v5726_v19 = vld [vmem:[#allocation5_spill] sm:$0xff] }
 0x1ff   : > { %3097 = vst.msk [vmem:[%s5367_s15 + $0x28] sm:$0xf] %vm3086_vm8, %v3452_v51  ;;  %v2937_v37 = vmax.f32 %v2905_v2, 0.0  ;;  %v2903_v28 = vadd.f32 %v5347_v15, %v2864_v1  ;;  %v2869_v61 = vadd.f32 %v3915_v56, %v2657_v21  ;;  %v2655_v7 = vadd.f32 %v2564_v18, %v2427_v47  ;;  %v2779_v24 = vpop.f32.mrf.mxu0  ;;  %v5712_v56 = vld [vmem:[#allocation3_spill] sm:$0xff]  ;;  %v5713_v47 = vld [vmem:[#allocation13_spill] sm:$0xff] }
 0x200   : > { %v3450_v22 = vpack.c.bf16 %v2934_v0, %v2934_v0  ;;  %v3882_v6 = vpop.f32.mrf.mxu1  ;;  %v2231_v58 = vadd.f32 %v5712_v56, %v5711_v12  ;;  %v2229_v11 = vadd.f32 %v5714_v13, %v5713_v47  ;;  %v2432_v0 = vadd.f32 %v5715_v16, %v2226_v50  ;;  %v5716_v18 = vld [vmem:[#allocation21_spill] sm:$0xff] }
 0x201   : > { %v3453_v62 = vpack.c.bf16 %v2937_v37, %v2937_v37  ;;  %v2935_v5 = vmax.f32 %v2903_v28, 0.0  ;;  %v2908_v59 = vadd.f32 %v5347_v15, %v2869_v61  ;;  %v2867_v60 = vadd.f32 %v2776_v27, %v2655_v7  ;;  %v3919_v33 = vpop.f32.mrf.mxu0  ;;  %v5717_v28 = vld [vmem:[#allocation15_spill] sm:$0xff]  ;;  %v5727_v36 = vld [vmem:[#allocation33_spill] sm:$0xff] }
 0x202   : > { %3095 = vst.msk [vmem:[%s5367_s15 + $0x20] sm:$0xf] %vm3086_vm8, %v3450_v22  ;;  %v2658_v23 = vadd.f32 %v3882_v6, %v2430_v41  ;;  %v2567_v14 = vpop.f32.mrf.mxu1  ;;  %v2437_v37 = vadd.f32 %v5716_v18, %v2231_v58  ;;  %v5718_v61 = vld [vmem:[#allocation27_spill] sm:$0xff]  ;;  %v2233_v50 = vadd.f32 %v5727_v36, %v5726_v19  ;;  %v5733_v18 = vld [vmem:[#allocation37_spill] sm:$0xff] }
 0x203   : > { %3098 = vst.msk [vmem:[%s5367_s15 + $0x2c] sm:$0xf] %vm3086_vm8, %v3453_v62  ;;  %v3451_v63 = vpack.c.bf16 %v2935_v5, %v2935_v5  ;;  %v2940_v40 = vmax.f32 %v2908_v59, 0.0  ;;  %v2906_v53 = vadd.f32 %v5347_v15, %v2867_v60  ;;  %v2656_v46 = vadd.f32 %v2567_v14, %v2428_v32  ;;  %v2792_v17 = vpop.f32.mrf.mxu0  ;;  %v5719_v5 = vld [vmem:[#allocation8_spill] sm:$0xff]  ;;  %v5720_v60 = vld [vmem:[#allocation19_spill] sm:$0xff] }
 0x204   : > { %v2870_v29 = vadd.f32 %v3916_v55, %v2658_v23  ;;  %v3885_v42 = vpop.f32.mrf.mxu1  ;;  %v2232_v7 = vadd.f32 %v5718_v61, %v5717_v28  ;;  %v2435_v59 = vadd.f32 %v5719_v5, %v2229_v11  ;;  %v5736_v5 = vld [vmem:[#allocation39_spill] sm:$0xff] }
 0x205   : > { %3096 = vst.msk [vmem:[%s5367_s15 + $0x24] sm:$0xf] %vm3086_vm8, %v3451_v63  ;;  %v3456_v49 = vpack.c.bf16 %v2940_v40, %v2940_v40  ;;  %v2938_v26 = vmax.f32 %v2906_v53, 0.0  ;;  %v2868_v8 = vadd.f32 %v2779_v24, %v2656_v46  ;;  %v2661_v20 = vadd.f32 %v3885_v42, %v2433_v3  ;;  %v3920_v10 = vpop.f32.mrf.mxu0  ;;  %v5722_v53 = vld [vmem:[#allocation4_spill] sm:$0xff] }
 0x206   : > { %v2909_v52 = vadd.f32 %v5347_v15, %v2870_v29  ;;  %v2580_v35 = vpop.f32.mrf.mxu1  ;;  %v2438_v46 = vadd.f32 %v5722_v53, %v2232_v7 }
 0x207   : > { %3101 = vst.msk [vmem:[%s5367_s15 + $0x38] sm:$0xf] %vm3086_vm8, %v3456_v49  ;;  %v3454_v25 = vpack.c.bf16 %v2938_v26, %v2938_v26  ;;  %v2907_v31 = vadd.f32 %v5347_v15, %v2868_v8  ;;  %v2873_v4 = vadd.f32 %v3919_v33, %v2661_v20  ;;  %v2659_v54 = vadd.f32 %v2580_v35, %v2431_v48  ;;  %v2795_v27 = vpop.f32.mrf.mxu0  ;;  %v5721_v33 = vld [vmem:[#allocation29_spill] sm:$0xff]  ;;  %v5723_v8 = vld [vmem:[#allocation26_spill] sm:$0xff] }
 0x208   : > { %v2941_v9 = vmax.f32 %v2909_v52, 0.0  ;;  %v3886_v34 = vpop.f32.mrf.mxu1  ;;  %v2230_v3 = vadd.f32 %v5721_v33, %v5720_v60 }
 0x209   : > { %3099 = vst.msk [vmem:[%s5367_s15 + $0x30] sm:$0xf] %vm3086_vm8, %v3454_v25  ;;  %v2939_v51 = vmax.f32 %v2907_v31, 0.0  ;;  %v2912_v2 = vadd.f32 %v5347_v15, %v2873_v4  ;;  %v2871_v1 = vadd.f32 %v2792_v17, %v2659_v54  ;;  %v2662_v21 = vadd.f32 %v3886_v34, %v2434_v44  ;;  %v3923_v55 = vpop.f32.mrf.mxu0  ;;  %v5728_v4 = vld [vmem:[#allocation10_spill] sm:$0xff]  ;;  %v5729_v54 = vld [vmem:[#allocation35_spill] sm:$0xff] }
 0x20a   : > { %v3457_v24 = vpack.c.bf16 %v2941_v9, %v2941_v9  ;;  %v2583_v41 = vpop.f32.mrf.mxu1  ;;  %v2436_v20 = vadd.f32 %v5723_v8, %v2230_v3  ;;  %v5740_v8 = vld [vmem:[#allocation41_spill] sm:$0xff] }
 0x20b   : > { %v3455_v32 = vpack.c.bf16 %v2939_v51, %v2939_v51  ;;  %v2944_v43 = vmax.f32 %v2912_v2, 0.0  ;;  %v2910_v22 = vadd.f32 %v5347_v15, %v2871_v1  ;;  %v2874_v6 = vadd.f32 %v3920_v10, %v2662_v21  ;;  %v2808_v62 = vpop.f32.mrf.mxu0  ;;  %v5724_v10 = vld [vmem:[#allocation24_spill] sm:$0xff] }
 0x20c   : > { %3102 = vst.msk [vmem:[%s5367_s15 + $0x3c] sm:$0xf] %vm3086_vm8, %v3457_v24  ;;  %v2660_v57 = vadd.f32 %v2583_v41, %v2432_v0  ;;  %v3889_v30 = vpop.f32.mrf.mxu1  ;;  %v2235_v44 = vadd.f32 %v5725_v38, %v5724_v10  ;;  %v5730_v1 = vld [vmem:[#allocation28_spill] sm:$0xff]  ;;  %v5741_v10 = vld [vmem:[#allocation22_spill] sm:$0xff]  ;;  %v5742_v38 = vld [vmem:[#allocation43_spill] sm:$0xff] }
 0x20d   : > { %3100 = vst.msk [vmem:[%s5367_s15 + $0x34] sm:$0xf] %vm3086_vm8, %v3455_v32  ;;  %v3460_v45 = vpack.c.bf16 %v2944_v43, %v2944_v43  ;;  %v2942_v23 = vmax.f32 %v2910_v22, 0.0  ;;  %v2913_v14 = vadd.f32 %v5347_v15, %v2874_v6  ;;  %v2665_v63 = vadd.f32 %v3889_v30, %v2437_v37  ;;  %v3924_v40 = vpop.f32.mrf.mxu0  ;;  %v5732_v0 = vld [vmem:[#allocation12_spill] sm:$0xff] }
 0x20e   : > { %v2872_v17 = vadd.f32 %v2795_v27, %v2660_v57  ;;  %v2596_v39 = vpop.f32.mrf.mxu1  ;;  %v2236_v27 = vadd.f32 %v5729_v54, %v5728_v4  ;;  %v2441_v21 = vadd.f32 %v5730_v1, %v2235_v44  ;;  %v2234_v37 = vadd.f32 %v5733_v18, %v5732_v0  ;;  %v5734_v22 = vld [vmem:[#allocation32_spill] sm:$0xff] }
 0x20f   : > { %3105 = vst.msk [vmem:[%s5367_s15 + $0x48] sm:$0xf] %vm3086_vm8, %v3460_v45  ;;  %v3458_v48 = vpack.c.bf16 %v2942_v23, %v2942_v23  ;;  %v2945_v29 = vmax.f32 %v2913_v14, 0.0  ;;  %v2877_v42 = vadd.f32 %v3923_v55, %v2665_v63  ;;  %v2663_v49 = vadd.f32 %v2596_v39, %v2435_v59  ;;  %v2811_v26 = vpop.f32.mrf.mxu0  ;;  %v5731_v55 = vld [vmem:[#allocation30_spill] sm:$0xff] }
 0x210   : > { %v2911_v12 = vadd.f32 %v5347_v15, %v2872_v17  ;;  %v3890_v56 = vpop.f32.mrf.mxu1  ;;  %v2439_v16 = vadd.f32 %v5731_v55, %v2233_v50  ;;  %v2442_v6 = vadd.f32 %v5734_v22, %v2236_v27  ;;  %v5737_v14 = vld [vmem:[#allocation34_spill] sm:$0xff]  ;;  %v2240_v44 = vadd.f32 %v5742_v38, %v5741_v10 }
 0x211   : > { %3103 = vst.msk [vmem:[%s5367_s15 + $0x40] sm:$0xf] %vm3086_vm8, %v3458_v48  ;;  %v3461_v58 = vpack.c.bf16 %v2945_v29, %v2945_v29  ;;  %v2916_v52 = vadd.f32 %v5347_v15, %v2877_v42  ;;  %v2875_v35 = vadd.f32 %v2808_v62, %v2663_v49  ;;  %v2666_v25 = vadd.f32 %v3890_v56, %v2438_v46  ;;  %v3927_v31 = vpop.f32.mrf.mxu0  ;;  %v5735_v62 = vld [vmem:[#allocation14_spill] sm:$0xff]  ;;  %v5738_v42 = vld [vmem:[#allocation36_spill] sm:$0xff] }
 0x212   : > { %v2943_v47 = vmax.f32 %v2911_v12, 0.0  ;;  %v2599_v13 = vpop.f32.mrf.mxu1  ;;  %v2239_v59 = vadd.f32 %v5736_v5, %v5735_v62  ;;  %v2440_v63 = vadd.f32 %v5737_v14, %v2234_v37  ;;  %v5747_v37 = vld [vmem:[#allocation42_spill] sm:$0xff] }
 0x213   : > { %3106 = vst.msk [vmem:[%s5367_s15 + $0x4c] sm:$0xf] %vm3086_vm8, %v3461_v58  ;;  %v2948_v11 = vmax.f32 %v2916_v52, 0.0  ;;  %v2914_v9 = vadd.f32 %v5347_v15, %v2875_v35  ;;  %v2878_v34 = vadd.f32 %v3924_v40, %v2666_v25  ;;  %v2664_v51 = vadd.f32 %v2599_v13, %v2436_v20  ;;  %v2824_v2 = vpop.f32.mrf.mxu0  ;;  %v5743_v52 = vld [vmem:[#allocation25_spill] sm:$0xff]  ;;  %v5744_v35 = vld [vmem:[#allocation44_spill] sm:$0xff] }
 0x214   : > { %v3459_v28 = vpack.c.bf16 %v2943_v47, %v2943_v47  ;;  %v3893_v61 = vpop.f32.mrf.mxu1  ;;  %v2445_v49 = vadd.f32 %v5738_v42, %v2239_v59  ;;  %v2238_v25 = vadd.f32 %v5744_v35, %v5743_v52 }
 0x215   : > { %v3464_v7 = vpack.c.bf16 %v2948_v11, %v2948_v11  ;;  %v2946_v24 = vmax.f32 %v2914_v9, 0.0  ;;  %v2917_v41 = vadd.f32 %v5347_v15, %v2878_v34  ;;  %v2876_v32 = vadd.f32 %v2811_v26, %v2664_v51  ;;  %v3928_v43 = vpop.f32.mrf.mxu0  ;;  %v5739_v26 = vld [vmem:[#allocation17_spill] sm:$0xff]  ;;  %v5745_v9 = vld [vmem:[#allocation38_spill] sm:$0xff]  ;;  %v5746_v51 = vld [vmem:[#allocation40_spill] sm:$0xff] }
 0x216   : > { %3104 = vst.msk [vmem:[%s5367_s15 + $0x44] sm:$0xf] %vm3086_vm8, %v3459_v28  ;;  %v2669_v60 = vadd.f32 %v3893_v61, %v2441_v21  ;;  %v2612_v33 = vpop.f32.mrf.mxu1  ;;  %v2237_v20 = vadd.f32 %v5740_v8, %v5739_v26  ;;  %v2444_v28 = vadd.f32 %v5747_v37, %v2238_v25 }
 0x217   : > { %3109 = vst.msk [vmem:[%s5367_s15 + $0x58] sm:$0xf] %vm3086_vm8, %v3464_v7  ;;  %v3462_v3 = vpack.c.bf16 %v2946_v24, %v2946_v24  ;;  %v2949_v57 = vmax.f32 %v2917_v41, 0.0  ;;  %v2915_v30 = vadd.f32 %v5347_v15, %v2876_v32  ;;  %v2667_v45 = vadd.f32 %v2612_v33, %v2439_v16  ;;  %v2827_v23 = vpop.f32.mrf.mxu0 }
 0x218   : > { %v2881_v40 = vadd.f32 %v3927_v31, %v2669_v60  ;;  %v3894_v53 = vpop.f32.mrf.mxu1  ;;  %v2443_v34 = vadd.f32 %v5745_v9, %v2237_v20 }
 0x219   : > { %3107 = vst.msk [vmem:[%s5367_s15 + $0x50] sm:$0xf] %vm3086_vm8, %v3462_v3  ;;  %v3465_v46 = vpack.c.bf16 %v2949_v57, %v2949_v57  ;;  %v2947_v17 = vmax.f32 %v2915_v30, 0.0  ;;  %v2879_v39 = vadd.f32 %v2824_v2, %v2667_v45  ;;  %v2670_v48 = vadd.f32 %v3894_v53, %v2442_v6  ;;  %v3931_v29 = vpop.f32.mrf.mxu0 }
 0x21a   : > { %v2920_v19 = vadd.f32 %v5347_v15, %v2881_v40  ;;  %v2615_v36 = vpop.f32.mrf.mxu1  ;;  %v2446_v2 = vadd.f32 %v5746_v51, %v2240_v44 }
 0x21b   : > { %3110 = vst.msk [vmem:[%s5367_s15 + $0x5c] sm:$0xf] %vm3086_vm8, %v3465_v46  ;;  %v3463_v50 = vpack.c.bf16 %v2947_v17, %v2947_v17  ;;  %v2918_v12 = vadd.f32 %v5347_v15, %v2879_v39  ;;  %v2882_v56 = vadd.f32 %v3928_v43, %v2670_v48  ;;  %v2668_v58 = vadd.f32 %v2615_v36, %v2440_v63  ;;  %v2840_v54 = vpop.f32.mrf.mxu0 }
 0x21c   : > { %v2952_v31 = vmax.f32 %v2920_v19, 0.0  ;;  %v3897_v4 = vpop.f32.mrf.mxu1 }
 0x21d   : > { %3108 = vst.msk [vmem:[%s5367_s15 + $0x54] sm:$0xf] %vm3086_vm8, %v3463_v50  ;;  %v2950_v27 = vmax.f32 %v2918_v12, 0.0  ;;  %v2921_v47 = vadd.f32 %v5347_v15, %v2882_v56  ;;  %v2880_v13 = vadd.f32 %v2827_v23, %v2668_v58  ;;  %v2673_v11 = vadd.f32 %v3897_v4, %v2445_v49  ;;  %v3932_v24 = vpop.f32.mrf.mxu0 }
 0x21e   : > { %v3468_v1 = vpack.c.bf16 %v2952_v31, %v2952_v31  ;;  %v2628_v21 = vpop.f32.mrf.mxu1 }
 0x21f   : > { %v3466_v55 = vpack.c.bf16 %v2950_v27, %v2950_v27  ;;  %v2953_v16 = vmax.f32 %v2921_v47, 0.0  ;;  %v2919_v0 = vadd.f32 %v5347_v15, %v2880_v13  ;;  %v2885_v18 = vadd.f32 %v3931_v29, %v2673_v11  ;;  %v2843_v57 = vpop.f32.mrf.mxu0 }
 0x220   : > { %3113 = vst.msk [vmem:[%s5367_s15 + $0x68] sm:$0xf] %vm3086_vm8, %v3468_v1  ;;  %v2671_v61 = vadd.f32 %v2628_v21, %v2443_v34  ;;  %v3898_v7 = vpop.f32.mrf.mxu1 }
 0x221   : > { %3111 = vst.msk [vmem:[%s5367_s15 + $0x60] sm:$0xf] %vm3086_vm8, %v3466_v55  ;;  %v3469_v41 = vpack.c.bf16 %v2953_v16, %v2953_v16  ;;  %v2951_v32 = vmax.f32 %v2919_v0, 0.0  ;;  %v2924_v43 = vadd.f32 %v5347_v15, %v2885_v18  ;;  %v2674_v22 = vadd.f32 %v3898_v7, %v2446_v2 }
 0x222   : > { %v2883_v6 = vadd.f32 %v2840_v54, %v2671_v61  ;;  %v2631_v62 = vpop.f32.mrf.mxu1 }
 0x223   : > { %3114 = vst.msk [vmem:[%s5367_s15 + $0x6c] sm:$0xf] %vm3086_vm8, %v3469_v41  ;;  %v3467_v5 = vpack.c.bf16 %v2951_v32, %v2951_v32  ;;  %v2956_v59 = vmax.f32 %v2924_v43, 0.0  ;;  %v2886_v60 = vadd.f32 %v3932_v24, %v2674_v22  ;;  %v2672_v33 = vadd.f32 %v2631_v62, %v2444_v28 }
 0x224   : > { %v2922_v3 = vadd.f32 %v5347_v15, %v2883_v6 }
 0x225   : > { %3112 = vst.msk [vmem:[%s5367_s15 + $0x64] sm:$0xf] %vm3086_vm8, %v3467_v5  ;;  %v3472_v30 = vpack.c.bf16 %v2956_v59, %v2956_v59  ;;  %v2925_v45 = vadd.f32 %v5347_v15, %v2886_v60  ;;  %v2884_v23 = vadd.f32 %v2843_v57, %v2672_v33 }
 0x226   : > { %v2954_v14 = vmax.f32 %v2922_v3, 0.0 }
 0x227   : > { %3117 = vst.msk [vmem:[%s5367_s15 + $0x78] sm:$0xf] %vm3086_vm8, %v3472_v30  ;;  %v2957_v63 = vmax.f32 %v2925_v45, 0.0  ;;  %v2923_v40 = vadd.f32 %v5347_v15, %v2884_v23 }
 0x228   : > { %v3470_v53 = vpack.c.bf16 %v2954_v14, %v2954_v14 }
 0x229   : > { %v3473_v46 = vpack.c.bf16 %v2957_v63, %v2957_v63  ;;  %v2955_v17 = vmax.f32 %v2923_v40, 0.0 }
 0x22a   : > { %3115 = vst.msk [vmem:[%s5367_s15 + $0x70] sm:$0xf] %vm3086_vm8, %v3470_v53 }
 0x22b   : > { %3118 = vst.msk [vmem:[%s5367_s15 + $0x7c] sm:$0xf] %vm3086_vm8, %v3473_v46  ;;  %v3471_v39 = vpack.c.bf16 %v2955_v17, %v2955_v17 }
 0x22d   : > { %3116 = vst.msk [vmem:[%s5367_s15 + $0x74] sm:$0xf] %vm3086_vm8, %v3471_v39 }
 0x22e PF: > { %s13_s12 = sadd.s32 1, %s3978_s12  }
 0x22f   : > { %p10_p4 = scmp.ge.s32.totalorder %s13_s12, 4  }
 0x231   :  { %12 = sbr.rel (!%p10_p4) target bundleno = 1 (0x1), region = 70 }

</bundles_post_ra>
